<compile_context>
chip_gen: v7x
topology: tpu7x:2x2x1
jax: 0.10.0
libtpu: 0.0.40
codegen_flags: <defaults>
</compile_context>

<pallas_src>
import functools

import numpy as np

import jax
import jax.numpy as jnp
from jax.experimental import pallas as pl
from jax.experimental.pallas import tpu as pltpu

BN_EPS = 1e-3
_INDEX_AFTER = (1, 3, 5)  # conv layer indices followed by an indexBlock


# ----------------------------------------------------------------------------
# Trace-time constant builders (numpy): masks & pooling gather matrices
# ----------------------------------------------------------------------------
def _interior_mask_flat(h, w):
    """(Hp*Wp,) float mask: 1 on interior pixels, 0 on the padding ring."""
    hp, wp = h + 2, w + 2
    m = np.zeros((hp, wp), np.float32)
    m[1:-1, 1:-1] = 1.0
    return m.reshape(-1)


def _pool_gather_matrix(h, w):
    """(L, L_next): picks each 2x2-window-origin lane of stage (h, w) and drops
    it at the matching interior lane of the NEXT padded-flat stage (so stride-2
    compaction and zero-ring re-padding are a single matmul)."""
    hp, wp = h + 2, w + 2
    h2, w2 = h // 2, w // 2
    wpn = w2 + 2
    g = np.zeros((hp * wp, (h2 + 2) * wpn), np.float32)
    for r in range(h2):
        for c in range(w2):
            g[(1 + 2 * r) * wp + (1 + 2 * c), (1 + r) * wpn + (1 + c)] = 1.0
    return g


def _interior_gather_matrix(h, w):
    """(L, h*w): extracts the valid interior of a padded-flat plane."""
    hp, wp = h + 2, w + 2
    g = np.zeros((hp * wp, h * w), np.float32)
    for r in range(h):
        for c in range(w):
            g[(1 + r) * wp + (1 + c), r * w + c] = 1.0
    return g


# ----------------------------------------------------------------------------
# The fused Pallas kernel: full VGGBackboneBN forward for one image
# ----------------------------------------------------------------------------
def _fused_vgg_kernel(x_ref, masks_ref, *rest, plan):
    """rest = (*weight_refs_in_plan_order, o_ref).

    plan: tuple of (h, w, kind) per conv layer, kind in {"conv","index","final"}:
      "conv"  : output feeds another 3x3 conv -> re-zero the padding ring
      "index" : output feeds a fused indexBlock (pool/parity/1x1s/merge/re-pad)
      "final" : last layer -> gather the valid interior (lane-dense output)
    """
    o_ref = rest[-1]
    wit = iter(rest[:-1])

    masks = masks_ref[...]            # (n_masks, Lmax)
    x = x_ref[...]                    # (C0, L0) padded-flat, zero ring
    mask_row = 0

    for (sh, sw, kind) in plan:
        hp, wp = sh + 2, sw + 2
        L = hp * wp

        wk = next(wit)[...]           # (Cout, 9*Cin)
        bss = next(wit)[...]          # (Cout, 3) = [bias, bn_scale, bn_shift]

        # --- Conv3x3(pad=1): build im2col from lane-rolled views, one deep-K dot
        taps = []
        for dy in range(3):
            for dx in range(3):
                s = (dy - 1) * wp + (dx - 1)
                taps.append(x if s == 0 else jnp.roll(x, -s, axis=1))
        im2col = jnp.concatenate(taps, axis=0)                       # (9*Cin, L)
        y = jnp.dot(wk, im2col, preferred_element_type=jnp.float32)  # (Cout, L)
        # bias -> ReLU -> BatchNorm(eval) folded as affine scale/shift
        y = jnp.maximum(y + bss[:, 0:1], 0.0) * bss[:, 1:2] + bss[:, 2:3]

        if kind == "conv":
            # next consumer is another 3x3 conv: re-zero the padding ring so the
            # plane is directly its padded input (interior lanes are exact; only
            # ring lanes carry roll wrap-around + bias/shift garbage).
            x = y * masks[mask_row:mask_row + 1, 0:L]
            mask_row += 1

        elif kind == "index":
            # --- fused indexBlock at full resolution (only window-origin lanes
            # matter; at those lanes all 4 taps read genuine interior values).
            y1 = jnp.roll(y, -1, axis=1)          # (r, c+1)
            yw = jnp.roll(y, -wp, axis=1)         # (r+1, c)
            yw1 = jnp.roll(y, -(wp + 1), axis=1)  # (r+1, c+1)
            mfull = jnp.maximum(jnp.maximum(y, y1), jnp.maximum(yw, yw1))

            # PyTorch MaxPool2d(return_indices): first max wins (window scan
            # order (r,c),(r,c+1),(r+1,c),(r+1,c+1));
            # index_x = (index // width) % 2 -> row parity,
            # index_y = (index %  width) % 2 -> col parity.
            is00 = y == mfull
            is01 = jnp.logical_and(jnp.logical_not(is00), y1 == mfull)
            is10 = jnp.logical_and(
                jnp.logical_not(jnp.logical_or(is00, is01)), yw == mfull)
            px = jnp.where(jnp.logical_or(is00, is01), 0.0, 1.0)   # row parity
            py = jnp.where(is00, 0.0,
                           jnp.where(is01, 1.0,
                                     jnp.where(is10, 0.0, 1.0)))   # col parity

            w1p = next(wit)[...]      # (out1, 2c) columns reordered [x-par | y-par]
            b1 = next(wit)[...]       # (out1, 1)
            w2 = next(wit)[...]       # (out2, out1)
            b2 = next(wit)[...]       # (out2, 1)
            wm = next(wit)[...]       # (c, c + out2)
            bm = next(wit)[...]       # (c, 1)
            gmat = next(wit)[...]     # (L, L_next) pooling gather + re-pad

            pxy = jnp.concatenate([px, py], axis=0)                # (2c, L)
            hid1 = jnp.maximum(
                jnp.dot(w1p, pxy, preferred_element_type=jnp.float32) + b1, 0.0)
            hid2 = jnp.maximum(
                jnp.dot(w2, hid1, preferred_element_type=jnp.float32) + b2, 0.0)
            # merge on concat([pooled, hdd]) along channels
            mh = jnp.concatenate([mfull, hid2], axis=0)            # (c+out2, L)
            merged = jnp.dot(wm, mh, preferred_element_type=jnp.float32) + bm
            # stride-2 compaction + zero-ring re-pad in one gather matmul
            x = jnp.dot(merged, gmat, preferred_element_type=jnp.float32)

        else:  # "final": extract the valid interior -> lane-dense output
            gmat = next(wit)[...]                                  # (L, sh*sw)
            x = jnp.dot(y, gmat, preferred_element_type=jnp.float32)

    o_ref[...] = x.astype(o_ref.dtype)


# ----------------------------------------------------------------------------
# Wrapper: one pallas_call for the whole forward
# ----------------------------------------------------------------------------
def vgg_backbone_bn_forward(x_nchw, params):
    n, cin, h, w = x_nchw.shape
    assert h % 8 == 0 and w % 8 == 0, "H, W must be divisible by 8 (3 poolings)"

    convs = params["convs"]
    idx_blocks = params["index_blocks"]
    n_layers = len(convs)

    # ---- static per-layer plan (input spatial size + what follows) ----------
    plan = []
    cur_h, cur_w = h, w
    for i in range(n_layers):
        if i == n_layers - 1:
            kind = "final"
        elif i in _INDEX_AFTER:
            kind = "index"
        else:
            kind = "conv"
        plan.append((cur_h, cur_w, kind))
        if kind == "index":
            cur_h //= 2
            cur_w //= 2
    plan = tuple(plan)
    h_out, w_out = cur_h, cur_w

    # ---- input: pad channels to a sublane-friendly 8, add the zero ring -----
    c0 = max(8, -(-cin // 8) * 8)
    x = x_nchw.astype(jnp.float32)
    if c0 != cin:
        x = jnp.pad(x, ((0, 0), (0, c0 - cin), (0, 0), (0, 0)))
    x = jnp.pad(x, ((0, 0), (0, 0), (1, 1), (1, 1)))
    L0 = (h + 2) * (w + 2)
    x = x.reshape(n, c0, L0)

    # ---- packed interior masks (one row per conv->conv stage) ---------------
    mask_rows = [_interior_mask_flat(sh, sw) for (sh, sw, k) in plan if k == "conv"]
    masks_np = np.zeros((max(len(mask_rows), 1), L0), np.float32)
    for r, mrow in enumerate(mask_rows):
        masks_np[r, :mrow.shape[0]] = mrow
    masks = jnp.asarray(masks_np)

    # ---- flatten all weights / constants into the kernel operand order ------
    operands = [x, masks]
    in_specs = [
        pl.BlockSpec((None, c0, L0), lambda i: (i, 0, 0)),
        pl.BlockSpec(masks.shape, lambda i: (0, 0)),
    ]

    def add_full(arr):
        arr = jnp.asarray(arr, jnp.float32)
        operands.append(arr)
        in_specs.append(pl.BlockSpec(arr.shape, lambda i: (0, 0)))

    prev_c = c0
    idx_j = 0
    for i, cb in enumerate(convs):
        wgt = cb["w"].astype(jnp.float32)                 # (Cout, Cin_w, 3, 3)
        cout, cin_w = wgt.shape[0], wgt.shape[1]
        if cin_w < prev_c:                                # first layer: zero-pad Cin
            wgt = jnp.pad(wgt, ((0, 0), (0, prev_c - cin_w), (0, 0), (0, 0)))
        # (Cout, Cin, 3, 3) -> (Cout, 9*Cin) with row order k*Cin+ci, k=dy*3+dx
        wk = jnp.transpose(wgt, (0, 2, 3, 1)).reshape(cout, 9 * prev_c)
        # NOTE: BN scale is NOT folded into the conv weights (ReLU sits between).
        bn_scale = cb["gamma"] / jnp.sqrt(cb["var"] + BN_EPS)
        bn_shift = cb["beta"] - cb["mean"] * bn_scale
        bss = jnp.stack([cb["b"], bn_scale, bn_shift], axis=1)      # (Cout, 3)
        add_full(wk)
        add_full(bss)

        sh, sw, kind = plan[i]
        if kind == "index":
            p = idx_blocks[idx_j]
            idx_j += 1
            # fold the per-channel [x_parity, y_parity] interleave into w1 cols
            w1 = p["w1"][:, :, 0, 0].astype(jnp.float32)            # (out1, 2c)
            w1p = jnp.concatenate([w1[:, 0::2], w1[:, 1::2]], axis=1)
            add_full(w1p)
            add_full(p["b1"].reshape(-1, 1))
            add_full(p["w2"][:, :, 0, 0])
            add_full(p["b2"].reshape(-1, 1))
            add_full(p["wm"][:, :, 0, 0])                           # (c, c+out2)
            add_full(p["bm"].reshape(-1, 1))
            add_full(_pool_gather_matrix(sh, sw))
        elif kind == "final":
            add_full(_interior_gather_matrix(sh, sw))
        prev_c = cout

    c_last = prev_c
    kernel = functools.partial(_fused_vgg_kernel, plan=plan)
    out = pl.pallas_call(
        kernel,
        out_shape=jax.ShapeDtypeStruct((n, c_last, h_out * w_out), jnp.float32),
        grid=(n,),
        in_specs=in_specs,
        out_specs=pl.BlockSpec((None, c_last, h_out * w_out), lambda i: (i, 0, 0)),
        compiler_params=pltpu.CompilerParams(
            dimension_semantics=("parallel",)),
    )(*operands)
    return out.reshape(n, c_last, h_out, w_out)


# ----------------------------------------------------------------------------
# Parameter init (deterministic, synthetic)
# ----------------------------------------------------------------------------
def _conv_params(key, cin, cout, ksize):
    kw, kb = jax.random.split(key)
    fan_in = cin * ksize * ksize
    w = jax.random.normal(kw, (cout, cin, ksize, ksize), jnp.float32) / jnp.sqrt(fan_in)
    b = 0.01 * jax.random.normal(kb, (cout,), jnp.float32)
    return w, b


def _bn_params(key, c):
    k1, k2, k3, k4 = jax.random.split(key, 4)
    gamma = 1.0 + 0.1 * jax.random.normal(k1, (c,), jnp.float32)
    beta = 0.1 * jax.random.normal(k2, (c,), jnp.float32)
    mean = 0.1 * jax.random.normal(k3, (c,), jnp.float32)
    var = 0.5 + jnp.abs(jax.random.normal(k4, (c,), jnp.float32))
    return gamma, beta, mean, var


def _index_block_params(key, c):
    out1 = c * 4
    out2 = max(4, int(c * 0.4))
    k1, k2, k3 = jax.random.split(key, 3)
    w1, b1 = _conv_params(k1, 2 * c, out1, 1)
    w2, b2 = _conv_params(k2, out1, out2, 1)
    wm, bm = _conv_params(k3, c + out2, c, 1)
    return dict(w1=w1, b1=b1, w2=w2, b2=b2, wm=wm, bm=bm)


def init_params(key, config, input_channel=1):
    channels = config["channels"]
    in_outs = [(input_channel, channels[0])] + [
        (channels[i - 1], channels[i]) for i in range(1, 8)]
    keys = jax.random.split(key, 2 * len(in_outs) + 3)
    convs = []
    for i, (cin, cout) in enumerate(in_outs):
        w, b = _conv_params(keys[2 * i], cin, cout, 3)
        gamma, beta, mean, var = _bn_params(keys[2 * i + 1], cout)
        convs.append(dict(w=w, b=b, gamma=gamma, beta=beta, mean=mean, var=var))
    index_blocks = [
        _index_block_params(keys[-3], channels[1]),
        _index_block_params(keys[-2], channels[3]),
        _index_block_params(keys[-1], channels[5]),
    ]
    return dict(convs=convs, index_blocks=index_blocks)


# ----------------------------------------------------------------------------
if __name__ == "__main__":
    config = {"channels": [8, 8, 8, 8, 16, 16, 16, 16]}
    key = jax.random.PRNGKey(0)
    kx, kp = jax.random.split(key)

    # small NCHW input consistent with the module: 3 indexBlock pools -> H,W % 8 == 0
    x = jax.random.normal(kx, (2, 1, 16, 16), jnp.float32)
    params = init_params(kp, config, input_channel=1)

    fwd = jax.jit(vgg_backbone_bn_forward)
    feat_map = fwd(x, params)
    jax.block_until_ready(feat_map)

    assert feat_map.shape == (2, config["channels"][7], 2, 2), feat_map.shape
    print("KERNEL_OK")
</pallas_src>

<mosaic_0001>
module attributes {stable_mosaic.version = 11 : i64} {
  func.func @_fused_vgg_kernel(%arg0: i32, %arg1: memref<1x8x324xf32, #tpu.memory_space<vmem>>, %arg2: memref<4x324xf32, #tpu.memory_space<vmem>>, %arg3: memref<8x72xf32, #tpu.memory_space<vmem>>, %arg4: memref<8x3xf32, #tpu.memory_space<vmem>>, %arg5: memref<8x72xf32, #tpu.memory_space<vmem>>, %arg6: memref<8x3xf32, #tpu.memory_space<vmem>>, %arg7: memref<32x16xf32, #tpu.memory_space<vmem>>, %arg8: memref<32x1xf32, #tpu.memory_space<vmem>>, %arg9: memref<4x32xf32, #tpu.memory_space<vmem>>, %arg10: memref<4x1xf32, #tpu.memory_space<vmem>>, %arg11: memref<8x12xf32, #tpu.memory_space<vmem>>, %arg12: memref<8x1xf32, #tpu.memory_space<vmem>>, %arg13: memref<324x100xf32, #tpu.memory_space<vmem>>, %arg14: memref<8x72xf32, #tpu.memory_space<vmem>>, %arg15: memref<8x3xf32, #tpu.memory_space<vmem>>, %arg16: memref<8x72xf32, #tpu.memory_space<vmem>>, %arg17: memref<8x3xf32, #tpu.memory_space<vmem>>, %arg18: memref<32x16xf32, #tpu.memory_space<vmem>>, %arg19: memref<32x1xf32, #tpu.memory_space<vmem>>, %arg20: memref<4x32xf32, #tpu.memory_space<vmem>>, %arg21: memref<4x1xf32, #tpu.memory_space<vmem>>, %arg22: memref<8x12xf32, #tpu.memory_space<vmem>>, %arg23: memref<8x1xf32, #tpu.memory_space<vmem>>, %arg24: memref<100x36xf32, #tpu.memory_space<vmem>>, %arg25: memref<16x72xf32, #tpu.memory_space<vmem>>, %arg26: memref<16x3xf32, #tpu.memory_space<vmem>>, %arg27: memref<16x144xf32, #tpu.memory_space<vmem>>, %arg28: memref<16x3xf32, #tpu.memory_space<vmem>>, %arg29: memref<64x32xf32, #tpu.memory_space<vmem>>, %arg30: memref<64x1xf32, #tpu.memory_space<vmem>>, %arg31: memref<6x64xf32, #tpu.memory_space<vmem>>, %arg32: memref<6x1xf32, #tpu.memory_space<vmem>>, %arg33: memref<16x22xf32, #tpu.memory_space<vmem>>, %arg34: memref<16x1xf32, #tpu.memory_space<vmem>>, %arg35: memref<36x16xf32, #tpu.memory_space<vmem>>, %arg36: memref<16x144xf32, #tpu.memory_space<vmem>>, %arg37: memref<16x3xf32, #tpu.memory_space<vmem>>, %arg38: memref<16x144xf32, #tpu.memory_space<vmem>>, %arg39: memref<16x3xf32, #tpu.memory_space<vmem>>, %arg40: memref<16x4xf32, #tpu.memory_space<vmem>>, %arg41: memref<1x16x4xf32, #tpu.memory_space<vmem>>) attributes {dimension_semantics = [#tpu.dimension_semantics<parallel>], iteration_bounds = array<i64: 2>, scalar_prefetch = 0 : i64, scratch_operands = 0 : i64, tpu.core_type = #tpu.core_type<tc>, window_params = [{transform_indices = @transform_0, window_bounds = array<i64: 1, 8, 324>}, {pipeline_mode = #tpu.pipeline_mode<synchronous>, transform_indices = @transform_1, window_bounds = array<i64: 4, 324>}, {pipeline_mode = #tpu.pipeline_mode<synchronous>, transform_indices = @transform_2, window_bounds = array<i64: 8, 72>}, {pipeline_mode = #tpu.pipeline_mode<synchronous>, transform_indices = @transform_3, window_bounds = array<i64: 8, 3>}, {pipeline_mode = #tpu.pipeline_mode<synchronous>, transform_indices = @transform_4, window_bounds = array<i64: 8, 72>}, {pipeline_mode = #tpu.pipeline_mode<synchronous>, transform_indices = @transform_5, window_bounds = array<i64: 8, 3>}, {pipeline_mode = #tpu.pipeline_mode<synchronous>, transform_indices = @transform_6, window_bounds = array<i64: 32, 16>}, {pipeline_mode = #tpu.pipeline_mode<synchronous>, transform_indices = @transform_7, window_bounds = array<i64: 32, 1>}, {pipeline_mode = #tpu.pipeline_mode<synchronous>, transform_indices = @transform_8, window_bounds = array<i64: 4, 32>}, {pipeline_mode = #tpu.pipeline_mode<synchronous>, transform_indices = @transform_9, window_bounds = array<i64: 4, 1>}, {pipeline_mode = #tpu.pipeline_mode<synchronous>, transform_indices = @transform_10, window_bounds = array<i64: 8, 12>}, {pipeline_mode = #tpu.pipeline_mode<synchronous>, transform_indices = @transform_11, window_bounds = array<i64: 8, 1>}, {pipeline_mode = #tpu.pipeline_mode<synchronous>, transform_indices = @transform_12, window_bounds = array<i64: 324, 100>}, {pipeline_mode = #tpu.pipeline_mode<synchronous>, transform_indices = @transform_13, window_bounds = array<i64: 8, 72>}, {pipeline_mode = #tpu.pipeline_mode<synchronous>, transform_indices = @transform_14, window_bounds = array<i64: 8, 3>}, {pipeline_mode = #tpu.pipeline_mode<synchronous>, transform_indices = @transform_15, window_bounds = array<i64: 8, 72>}, {pipeline_mode = #tpu.pipeline_mode<synchronous>, transform_indices = @transform_16, window_bounds = array<i64: 8, 3>}, {pipeline_mode = #tpu.pipeline_mode<synchronous>, transform_indices = @transform_17, window_bounds = array<i64: 32, 16>}, {pipeline_mode = #tpu.pipeline_mode<synchronous>, transform_indices = @transform_18, window_bounds = array<i64: 32, 1>}, {pipeline_mode = #tpu.pipeline_mode<synchronous>, transform_indices = @transform_19, window_bounds = array<i64: 4, 32>}, {pipeline_mode = #tpu.pipeline_mode<synchronous>, transform_indices = @transform_20, window_bounds = array<i64: 4, 1>}, {pipeline_mode = #tpu.pipeline_mode<synchronous>, transform_indices = @transform_21, window_bounds = array<i64: 8, 12>}, {pipeline_mode = #tpu.pipeline_mode<synchronous>, transform_indices = @transform_22, window_bounds = array<i64: 8, 1>}, {pipeline_mode = #tpu.pipeline_mode<synchronous>, transform_indices = @transform_23, window_bounds = array<i64: 100, 36>}, {pipeline_mode = #tpu.pipeline_mode<synchronous>, transform_indices = @transform_24, window_bounds = array<i64: 16, 72>}, {pipeline_mode = #tpu.pipeline_mode<synchronous>, transform_indices = @transform_25, window_bounds = array<i64: 16, 3>}, {pipeline_mode = #tpu.pipeline_mode<synchronous>, transform_indices = @transform_26, window_bounds = array<i64: 16, 144>}, {pipeline_mode = #tpu.pipeline_mode<synchronous>, transform_indices = @transform_27, window_bounds = array<i64: 16, 3>}, {pipeline_mode = #tpu.pipeline_mode<synchronous>, transform_indices = @transform_28, window_bounds = array<i64: 64, 32>}, {pipeline_mode = #tpu.pipeline_mode<synchronous>, transform_indices = @transform_29, window_bounds = array<i64: 64, 1>}, {pipeline_mode = #tpu.pipeline_mode<synchronous>, transform_indices = @transform_30, window_bounds = array<i64: 6, 64>}, {pipeline_mode = #tpu.pipeline_mode<synchronous>, transform_indices = @transform_31, window_bounds = array<i64: 6, 1>}, {pipeline_mode = #tpu.pipeline_mode<synchronous>, transform_indices = @transform_32, window_bounds = array<i64: 16, 22>}, {pipeline_mode = #tpu.pipeline_mode<synchronous>, transform_indices = @transform_33, window_bounds = array<i64: 16, 1>}, {pipeline_mode = #tpu.pipeline_mode<synchronous>, transform_indices = @transform_34, window_bounds = array<i64: 36, 16>}, {pipeline_mode = #tpu.pipeline_mode<synchronous>, transform_indices = @transform_35, window_bounds = array<i64: 16, 144>}, {pipeline_mode = #tpu.pipeline_mode<synchronous>, transform_indices = @transform_36, window_bounds = array<i64: 16, 3>}, {pipeline_mode = #tpu.pipeline_mode<synchronous>, transform_indices = @transform_37, window_bounds = array<i64: 16, 144>}, {pipeline_mode = #tpu.pipeline_mode<synchronous>, transform_indices = @transform_38, window_bounds = array<i64: 16, 3>}, {pipeline_mode = #tpu.pipeline_mode<synchronous>, transform_indices = @transform_39, window_bounds = array<i64: 16, 4>}, {transform_indices = @transform_40, window_bounds = array<i64: 1, 16, 4>}]} {
    %c0 = arith.constant 0 : index
    %c0_0 = arith.constant 0 : index
    %0 = vector.load %arg2[%c0, %c0_0] : memref<4x324xf32, #tpu.memory_space<vmem>>, vector<4x324xf32>
    %c0_1 = arith.constant 0 : index
    %c0_2 = arith.constant 0 : index
    %c0_3 = arith.constant 0 : index
    %1 = vector.load %arg1[%c0_1, %c0_2, %c0_3] : memref<1x8x324xf32, #tpu.memory_space<vmem>>, vector<1x8x324xf32>
    %2 = vector.shape_cast %1 : vector<1x8x324xf32> to vector<8x324xf32>
    %c0_4 = arith.constant 0 : index
    %c0_5 = arith.constant 0 : index
    %3 = vector.load %arg3[%c0_4, %c0_5] : memref<8x72xf32, #tpu.memory_space<vmem>>, vector<8x72xf32>
    %c0_6 = arith.constant 0 : index
    %c0_7 = arith.constant 0 : index
    %4 = vector.load %arg4[%c0_6, %c0_7] : memref<8x3xf32, #tpu.memory_space<vmem>>, vector<8x3xf32>
    %5 = vector.extract_strided_slice %2 {offsets = [0, 305], sizes = [8, 19], strides = [1, 1]} : vector<8x324xf32> to vector<8x19xf32>
    %6 = vector.extract_strided_slice %2 {offsets = [0, 0], sizes = [8, 305], strides = [1, 1]} : vector<8x324xf32> to vector<8x305xf32>
    %7 = tpu.concatenate %5, %6 in 1 : vector<8x19xf32>, vector<8x305xf32> -> vector<8x324xf32>
    %8 = vector.extract_strided_slice %2 {offsets = [0, 306], sizes = [8, 18], strides = [1, 1]} : vector<8x324xf32> to vector<8x18xf32>
    %9 = vector.extract_strided_slice %2 {offsets = [0, 0], sizes = [8, 306], strides = [1, 1]} : vector<8x324xf32> to vector<8x306xf32>
    %10 = tpu.concatenate %8, %9 in 1 : vector<8x18xf32>, vector<8x306xf32> -> vector<8x324xf32>
    %11 = vector.extract_strided_slice %2 {offsets = [0, 307], sizes = [8, 17], strides = [1, 1]} : vector<8x324xf32> to vector<8x17xf32>
    %12 = vector.extract_strided_slice %2 {offsets = [0, 0], sizes = [8, 307], strides = [1, 1]} : vector<8x324xf32> to vector<8x307xf32>
    %13 = tpu.concatenate %11, %12 in 1 : vector<8x17xf32>, vector<8x307xf32> -> vector<8x324xf32>
    %14 = vector.extract_strided_slice %2 {offsets = [0, 323], sizes = [8, 1], strides = [1, 1]} : vector<8x324xf32> to vector<8x1xf32>
    %15 = vector.extract_strided_slice %2 {offsets = [0, 0], sizes = [8, 323], strides = [1, 1]} : vector<8x324xf32> to vector<8x323xf32>
    %16 = tpu.concatenate %14, %15 in 1 : vector<8x1xf32>, vector<8x323xf32> -> vector<8x324xf32>
    %17 = vector.extract_strided_slice %2 {offsets = [0, 1], sizes = [8, 323], strides = [1, 1]} : vector<8x324xf32> to vector<8x323xf32>
    %18 = vector.extract_strided_slice %2 {offsets = [0, 0], sizes = [8, 1], strides = [1, 1]} : vector<8x324xf32> to vector<8x1xf32>
    %19 = tpu.concatenate %17, %18 in 1 : vector<8x323xf32>, vector<8x1xf32> -> vector<8x324xf32>
    %20 = vector.extract_strided_slice %2 {offsets = [0, 17], sizes = [8, 307], strides = [1, 1]} : vector<8x324xf32> to vector<8x307xf32>
    %21 = vector.extract_strided_slice %2 {offsets = [0, 0], sizes = [8, 17], strides = [1, 1]} : vector<8x324xf32> to vector<8x17xf32>
    %22 = tpu.concatenate %20, %21 in 1 : vector<8x307xf32>, vector<8x17xf32> -> vector<8x324xf32>
    %23 = vector.extract_strided_slice %2 {offsets = [0, 18], sizes = [8, 306], strides = [1, 1]} : vector<8x324xf32> to vector<8x306xf32>
    %24 = vector.extract_strided_slice %2 {offsets = [0, 0], sizes = [8, 18], strides = [1, 1]} : vector<8x324xf32> to vector<8x18xf32>
    %25 = tpu.concatenate %23, %24 in 1 : vector<8x306xf32>, vector<8x18xf32> -> vector<8x324xf32>
    %26 = vector.extract_strided_slice %2 {offsets = [0, 19], sizes = [8, 305], strides = [1, 1]} : vector<8x324xf32> to vector<8x305xf32>
    %27 = vector.extract_strided_slice %2 {offsets = [0, 0], sizes = [8, 19], strides = [1, 1]} : vector<8x324xf32> to vector<8x19xf32>
    %28 = tpu.concatenate %26, %27 in 1 : vector<8x305xf32>, vector<8x19xf32> -> vector<8x324xf32>
    %29 = tpu.concatenate %7, %10, %13, %16, %2, %19, %22, %25, %28 in 0 : vector<8x324xf32>, vector<8x324xf32>, vector<8x324xf32>, vector<8x324xf32>, vector<8x324xf32>, vector<8x324xf32>, vector<8x324xf32>, vector<8x324xf32>, vector<8x324xf32> -> vector<72x324xf32>
    %cst = arith.constant dense<0.000000e+00> : vector<8x324xf32>
    %30 = tpu.matmul %3, %29, %cst {dimension_numbers = #tpu.dot_dimension_numbers<[1], [0], [0], [1], [0, 0, 1, 1], [], []>} : vector<8x72xf32>, vector<72x324xf32>, vector<8x324xf32> -> vector<8x324xf32>
    %31 = vector.extract_strided_slice %4 {offsets = [0, 0], sizes = [8, 1], strides = [1, 1]} : vector<8x3xf32> to vector<8x1xf32>
    %32 = vector.broadcast %31 : vector<8x1xf32> to vector<8x324xf32>
    %33 = arith.addf %30, %32 : vector<8x324xf32>
    %cst_8 = arith.constant 0.000000e+00 : f32
    %34 = vector.broadcast %cst_8 : f32 to vector<8x324xf32>
    %35 = arith.maximumf %33, %34 : vector<8x324xf32>
    %36 = vector.extract_strided_slice %4 {offsets = [0, 1], sizes = [8, 1], strides = [1, 1]} : vector<8x3xf32> to vector<8x1xf32>
    %37 = vector.broadcast %36 : vector<8x1xf32> to vector<8x324xf32>
    %38 = arith.mulf %35, %37 : vector<8x324xf32>
    %39 = vector.extract_strided_slice %4 {offsets = [0, 2], sizes = [8, 1], strides = [1, 1]} : vector<8x3xf32> to vector<8x1xf32>
    %40 = vector.broadcast %39 : vector<8x1xf32> to vector<8x324xf32>
    %41 = arith.addf %38, %40 : vector<8x324xf32>
    %42 = vector.extract_strided_slice %0 {offsets = [0, 0], sizes = [1, 324], strides = [1, 1]} : vector<4x324xf32> to vector<1x324xf32>
    %43 = vector.broadcast %42 : vector<1x324xf32> to vector<8x324xf32>
    %44 = arith.mulf %41, %43 : vector<8x324xf32>
    %c0_9 = arith.constant 0 : index
    %c0_10 = arith.constant 0 : index
    %45 = vector.load %arg5[%c0_9, %c0_10] : memref<8x72xf32, #tpu.memory_space<vmem>>, vector<8x72xf32>
    %c0_11 = arith.constant 0 : index
    %c0_12 = arith.constant 0 : index
    %46 = vector.load %arg6[%c0_11, %c0_12] : memref<8x3xf32, #tpu.memory_space<vmem>>, vector<8x3xf32>
    %47 = vector.extract_strided_slice %44 {offsets = [0, 305], sizes = [8, 19], strides = [1, 1]} : vector<8x324xf32> to vector<8x19xf32>
    %48 = vector.extract_strided_slice %44 {offsets = [0, 0], sizes = [8, 305], strides = [1, 1]} : vector<8x324xf32> to vector<8x305xf32>
    %49 = tpu.concatenate %47, %48 in 1 : vector<8x19xf32>, vector<8x305xf32> -> vector<8x324xf32>
    %50 = vector.extract_strided_slice %44 {offsets = [0, 306], sizes = [8, 18], strides = [1, 1]} : vector<8x324xf32> to vector<8x18xf32>
    %51 = vector.extract_strided_slice %44 {offsets = [0, 0], sizes = [8, 306], strides = [1, 1]} : vector<8x324xf32> to vector<8x306xf32>
    %52 = tpu.concatenate %50, %51 in 1 : vector<8x18xf32>, vector<8x306xf32> -> vector<8x324xf32>
    %53 = vector.extract_strided_slice %44 {offsets = [0, 307], sizes = [8, 17], strides = [1, 1]} : vector<8x324xf32> to vector<8x17xf32>
    %54 = vector.extract_strided_slice %44 {offsets = [0, 0], sizes = [8, 307], strides = [1, 1]} : vector<8x324xf32> to vector<8x307xf32>
    %55 = tpu.concatenate %53, %54 in 1 : vector<8x17xf32>, vector<8x307xf32> -> vector<8x324xf32>
    %56 = vector.extract_strided_slice %44 {offsets = [0, 323], sizes = [8, 1], strides = [1, 1]} : vector<8x324xf32> to vector<8x1xf32>
    %57 = vector.extract_strided_slice %44 {offsets = [0, 0], sizes = [8, 323], strides = [1, 1]} : vector<8x324xf32> to vector<8x323xf32>
    %58 = tpu.concatenate %56, %57 in 1 : vector<8x1xf32>, vector<8x323xf32> -> vector<8x324xf32>
    %59 = vector.extract_strided_slice %44 {offsets = [0, 1], sizes = [8, 323], strides = [1, 1]} : vector<8x324xf32> to vector<8x323xf32>
    %60 = vector.extract_strided_slice %44 {offsets = [0, 0], sizes = [8, 1], strides = [1, 1]} : vector<8x324xf32> to vector<8x1xf32>
    %61 = tpu.concatenate %59, %60 in 1 : vector<8x323xf32>, vector<8x1xf32> -> vector<8x324xf32>
    %62 = vector.extract_strided_slice %44 {offsets = [0, 17], sizes = [8, 307], strides = [1, 1]} : vector<8x324xf32> to vector<8x307xf32>
    %63 = vector.extract_strided_slice %44 {offsets = [0, 0], sizes = [8, 17], strides = [1, 1]} : vector<8x324xf32> to vector<8x17xf32>
    %64 = tpu.concatenate %62, %63 in 1 : vector<8x307xf32>, vector<8x17xf32> -> vector<8x324xf32>
    %65 = vector.extract_strided_slice %44 {offsets = [0, 18], sizes = [8, 306], strides = [1, 1]} : vector<8x324xf32> to vector<8x306xf32>
    %66 = vector.extract_strided_slice %44 {offsets = [0, 0], sizes = [8, 18], strides = [1, 1]} : vector<8x324xf32> to vector<8x18xf32>
    %67 = tpu.concatenate %65, %66 in 1 : vector<8x306xf32>, vector<8x18xf32> -> vector<8x324xf32>
    %68 = vector.extract_strided_slice %44 {offsets = [0, 19], sizes = [8, 305], strides = [1, 1]} : vector<8x324xf32> to vector<8x305xf32>
    %69 = vector.extract_strided_slice %44 {offsets = [0, 0], sizes = [8, 19], strides = [1, 1]} : vector<8x324xf32> to vector<8x19xf32>
    %70 = tpu.concatenate %68, %69 in 1 : vector<8x305xf32>, vector<8x19xf32> -> vector<8x324xf32>
    %71 = tpu.concatenate %49, %52, %55, %58, %44, %61, %64, %67, %70 in 0 : vector<8x324xf32>, vector<8x324xf32>, vector<8x324xf32>, vector<8x324xf32>, vector<8x324xf32>, vector<8x324xf32>, vector<8x324xf32>, vector<8x324xf32>, vector<8x324xf32> -> vector<72x324xf32>
    %cst_13 = arith.constant dense<0.000000e+00> : vector<8x324xf32>
    %72 = tpu.matmul %45, %71, %cst_13 {dimension_numbers = #tpu.dot_dimension_numbers<[1], [0], [0], [1], [0, 0, 1, 1], [], []>} : vector<8x72xf32>, vector<72x324xf32>, vector<8x324xf32> -> vector<8x324xf32>
    %73 = vector.extract_strided_slice %46 {offsets = [0, 0], sizes = [8, 1], strides = [1, 1]} : vector<8x3xf32> to vector<8x1xf32>
    %74 = vector.broadcast %73 : vector<8x1xf32> to vector<8x324xf32>
    %75 = arith.addf %72, %74 : vector<8x324xf32>
    %cst_14 = arith.constant 0.000000e+00 : f32
    %76 = vector.broadcast %cst_14 : f32 to vector<8x324xf32>
    %77 = arith.maximumf %75, %76 : vector<8x324xf32>
    %78 = vector.extract_strided_slice %46 {offsets = [0, 1], sizes = [8, 1], strides = [1, 1]} : vector<8x3xf32> to vector<8x1xf32>
    %79 = vector.broadcast %78 : vector<8x1xf32> to vector<8x324xf32>
    %80 = arith.mulf %77, %79 : vector<8x324xf32>
    %81 = vector.extract_strided_slice %46 {offsets = [0, 2], sizes = [8, 1], strides = [1, 1]} : vector<8x3xf32> to vector<8x1xf32>
    %82 = vector.broadcast %81 : vector<8x1xf32> to vector<8x324xf32>
    %83 = arith.addf %80, %82 : vector<8x324xf32>
    %84 = vector.extract_strided_slice %83 {offsets = [0, 1], sizes = [8, 323], strides = [1, 1]} : vector<8x324xf32> to vector<8x323xf32>
    %85 = vector.extract_strided_slice %83 {offsets = [0, 0], sizes = [8, 1], strides = [1, 1]} : vector<8x324xf32> to vector<8x1xf32>
    %86 = tpu.concatenate %84, %85 in 1 : vector<8x323xf32>, vector<8x1xf32> -> vector<8x324xf32>
    %87 = vector.extract_strided_slice %83 {offsets = [0, 18], sizes = [8, 306], strides = [1, 1]} : vector<8x324xf32> to vector<8x306xf32>
    %88 = vector.extract_strided_slice %83 {offsets = [0, 0], sizes = [8, 18], strides = [1, 1]} : vector<8x324xf32> to vector<8x18xf32>
    %89 = tpu.concatenate %87, %88 in 1 : vector<8x306xf32>, vector<8x18xf32> -> vector<8x324xf32>
    %90 = vector.extract_strided_slice %83 {offsets = [0, 19], sizes = [8, 305], strides = [1, 1]} : vector<8x324xf32> to vector<8x305xf32>
    %91 = vector.extract_strided_slice %83 {offsets = [0, 0], sizes = [8, 19], strides = [1, 1]} : vector<8x324xf32> to vector<8x19xf32>
    %92 = tpu.concatenate %90, %91 in 1 : vector<8x305xf32>, vector<8x19xf32> -> vector<8x324xf32>
    %93 = arith.maximumf %83, %86 : vector<8x324xf32>
    %94 = arith.maximumf %89, %92 : vector<8x324xf32>
    %95 = arith.maximumf %93, %94 : vector<8x324xf32>
    %96 = arith.cmpf oeq, %83, %95 : vector<8x324xf32>
    %cst_15 = arith.constant dense<true> : vector<8x324xi1>
    %97 = arith.xori %96, %cst_15 : vector<8x324xi1>
    %98 = arith.cmpf oeq, %86, %95 : vector<8x324xf32>
    %99 = arith.andi %97, %98 : vector<8x324xi1>
    %100 = arith.ori %96, %99 : vector<8x324xi1>
    %cst_16 = arith.constant dense<true> : vector<8x324xi1>
    %101 = arith.xori %100, %cst_16 : vector<8x324xi1>
    %102 = arith.cmpf oeq, %89, %95 : vector<8x324xf32>
    %103 = arith.andi %101, %102 : vector<8x324xi1>
    %104 = arith.ori %96, %99 : vector<8x324xi1>
    %cst_17 = arith.constant 0.000000e+00 : f32
    %cst_18 = arith.constant 1.000000e+00 : f32
    %105 = vector.broadcast %cst_17 : f32 to vector<8x324xf32>
    %106 = vector.broadcast %cst_18 : f32 to vector<8x324xf32>
    %107 = arith.select %104, %105, %106 : vector<8x324xi1>, vector<8x324xf32>
    %cst_19 = arith.constant 0.000000e+00 : f32
    %cst_20 = arith.constant 1.000000e+00 : f32
    %108 = vector.broadcast %cst_19 : f32 to vector<8x324xf32>
    %109 = vector.broadcast %cst_20 : f32 to vector<8x324xf32>
    %110 = arith.select %103, %108, %109 : vector<8x324xi1>, vector<8x324xf32>
    %cst_21 = arith.constant 1.000000e+00 : f32
    %111 = vector.broadcast %cst_21 : f32 to vector<8x324xf32>
    %112 = arith.select %99, %111, %110 : vector<8x324xi1>, vector<8x324xf32>
    %cst_22 = arith.constant 0.000000e+00 : f32
    %113 = vector.broadcast %cst_22 : f32 to vector<8x324xf32>
    %114 = arith.select %96, %113, %112 : vector<8x324xi1>, vector<8x324xf32>
    %c0_23 = arith.constant 0 : index
    %c0_24 = arith.constant 0 : index
    %115 = vector.load %arg7[%c0_23, %c0_24] : memref<32x16xf32, #tpu.memory_space<vmem>>, vector<32x16xf32>
    %c0_25 = arith.constant 0 : index
    %c0_26 = arith.constant 0 : index
    %116 = vector.load %arg8[%c0_25, %c0_26] : memref<32x1xf32, #tpu.memory_space<vmem>>, vector<32x1xf32>
    %c0_27 = arith.constant 0 : index
    %c0_28 = arith.constant 0 : index
    %117 = vector.load %arg9[%c0_27, %c0_28] : memref<4x32xf32, #tpu.memory_space<vmem>>, vector<4x32xf32>
    %c0_29 = arith.constant 0 : index
    %c0_30 = arith.constant 0 : index
    %118 = vector.load %arg10[%c0_29, %c0_30] : memref<4x1xf32, #tpu.memory_space<vmem>>, vector<4x1xf32>
    %c0_31 = arith.constant 0 : index
    %c0_32 = arith.constant 0 : index
    %119 = vector.load %arg11[%c0_31, %c0_32] : memref<8x12xf32, #tpu.memory_space<vmem>>, vector<8x12xf32>
    %c0_33 = arith.constant 0 : index
    %c0_34 = arith.constant 0 : index
    %120 = vector.load %arg12[%c0_33, %c0_34] : memref<8x1xf32, #tpu.memory_space<vmem>>, vector<8x1xf32>
    %c0_35 = arith.constant 0 : index
    %c0_36 = arith.constant 0 : index
    %121 = vector.load %arg13[%c0_35, %c0_36] : memref<324x100xf32, #tpu.memory_space<vmem>>, vector<324x100xf32>
    %122 = tpu.concatenate %107, %114 in 0 : vector<8x324xf32>, vector<8x324xf32> -> vector<16x324xf32>
    %cst_37 = arith.constant dense<0.000000e+00> : vector<32x324xf32>
    %123 = tpu.matmul %115, %122, %cst_37 {dimension_numbers = #tpu.dot_dimension_numbers<[1], [0], [0], [1], [0, 0, 1, 1], [], []>} : vector<32x16xf32>, vector<16x324xf32>, vector<32x324xf32> -> vector<32x324xf32>
    %124 = vector.broadcast %116 : vector<32x1xf32> to vector<32x324xf32>
    %125 = arith.addf %123, %124 : vector<32x324xf32>
    %cst_38 = arith.constant 0.000000e+00 : f32
    %126 = vector.broadcast %cst_38 : f32 to vector<32x324xf32>
    %127 = arith.maximumf %125, %126 : vector<32x324xf32>
    %cst_39 = arith.constant dense<0.000000e+00> : vector<4x324xf32>
    %128 = tpu.matmul %117, %127, %cst_39 {dimension_numbers = #tpu.dot_dimension_numbers<[1], [0], [0], [1], [0, 0, 1, 1], [], []>} : vector<4x32xf32>, vector<32x324xf32>, vector<4x324xf32> -> vector<4x324xf32>
    %129 = vector.broadcast %118 : vector<4x1xf32> to vector<4x324xf32>
    %130 = arith.addf %128, %129 : vector<4x324xf32>
    %cst_40 = arith.constant 0.000000e+00 : f32
    %131 = vector.broadcast %cst_40 : f32 to vector<4x324xf32>
    %132 = arith.maximumf %130, %131 : vector<4x324xf32>
    %133 = tpu.concatenate %95, %132 in 0 : vector<8x324xf32>, vector<4x324xf32> -> vector<12x324xf32>
    %cst_41 = arith.constant dense<0.000000e+00> : vector<8x324xf32>
    %134 = tpu.matmul %119, %133, %cst_41 {dimension_numbers = #tpu.dot_dimension_numbers<[1], [0], [0], [1], [0, 0, 1, 1], [], []>} : vector<8x12xf32>, vector<12x324xf32>, vector<8x324xf32> -> vector<8x324xf32>
    %135 = vector.broadcast %120 : vector<8x1xf32> to vector<8x324xf32>
    %136 = arith.addf %134, %135 : vector<8x324xf32>
    %cst_42 = arith.constant dense<0.000000e+00> : vector<8x100xf32>
    %137 = tpu.matmul %136, %121, %cst_42 {dimension_numbers = #tpu.dot_dimension_numbers<[1], [0], [0], [1], [0, 0, 1, 1], [], []>} : vector<8x324xf32>, vector<324x100xf32>, vector<8x100xf32> -> vector<8x100xf32>
    %c0_43 = arith.constant 0 : index
    %c0_44 = arith.constant 0 : index
    %138 = vector.load %arg14[%c0_43, %c0_44] : memref<8x72xf32, #tpu.memory_space<vmem>>, vector<8x72xf32>
    %c0_45 = arith.constant 0 : index
    %c0_46 = arith.constant 0 : index
    %139 = vector.load %arg15[%c0_45, %c0_46] : memref<8x3xf32, #tpu.memory_space<vmem>>, vector<8x3xf32>
    %140 = vector.extract_strided_slice %137 {offsets = [0, 89], sizes = [8, 11], strides = [1, 1]} : vector<8x100xf32> to vector<8x11xf32>
    %141 = vector.extract_strided_slice %137 {offsets = [0, 0], sizes = [8, 89], strides = [1, 1]} : vector<8x100xf32> to vector<8x89xf32>
    %142 = tpu.concatenate %140, %141 in 1 : vector<8x11xf32>, vector<8x89xf32> -> vector<8x100xf32>
    %143 = vector.extract_strided_slice %137 {offsets = [0, 90], sizes = [8, 10], strides = [1, 1]} : vector<8x100xf32> to vector<8x10xf32>
    %144 = vector.extract_strided_slice %137 {offsets = [0, 0], sizes = [8, 90], strides = [1, 1]} : vector<8x100xf32> to vector<8x90xf32>
    %145 = tpu.concatenate %143, %144 in 1 : vector<8x10xf32>, vector<8x90xf32> -> vector<8x100xf32>
    %146 = vector.extract_strided_slice %137 {offsets = [0, 91], sizes = [8, 9], strides = [1, 1]} : vector<8x100xf32> to vector<8x9xf32>
    %147 = vector.extract_strided_slice %137 {offsets = [0, 0], sizes = [8, 91], strides = [1, 1]} : vector<8x100xf32> to vector<8x91xf32>
    %148 = tpu.concatenate %146, %147 in 1 : vector<8x9xf32>, vector<8x91xf32> -> vector<8x100xf32>
    %149 = vector.extract_strided_slice %137 {offsets = [0, 99], sizes = [8, 1], strides = [1, 1]} : vector<8x100xf32> to vector<8x1xf32>
    %150 = vector.extract_strided_slice %137 {offsets = [0, 0], sizes = [8, 99], strides = [1, 1]} : vector<8x100xf32> to vector<8x99xf32>
    %151 = tpu.concatenate %149, %150 in 1 : vector<8x1xf32>, vector<8x99xf32> -> vector<8x100xf32>
    %152 = vector.extract_strided_slice %137 {offsets = [0, 1], sizes = [8, 99], strides = [1, 1]} : vector<8x100xf32> to vector<8x99xf32>
    %153 = vector.extract_strided_slice %137 {offsets = [0, 0], sizes = [8, 1], strides = [1, 1]} : vector<8x100xf32> to vector<8x1xf32>
    %154 = tpu.concatenate %152, %153 in 1 : vector<8x99xf32>, vector<8x1xf32> -> vector<8x100xf32>
    %155 = vector.extract_strided_slice %137 {offsets = [0, 9], sizes = [8, 91], strides = [1, 1]} : vector<8x100xf32> to vector<8x91xf32>
    %156 = vector.extract_strided_slice %137 {offsets = [0, 0], sizes = [8, 9], strides = [1, 1]} : vector<8x100xf32> to vector<8x9xf32>
    %157 = tpu.concatenate %155, %156 in 1 : vector<8x91xf32>, vector<8x9xf32> -> vector<8x100xf32>
    %158 = vector.extract_strided_slice %137 {offsets = [0, 10], sizes = [8, 90], strides = [1, 1]} : vector<8x100xf32> to vector<8x90xf32>
    %159 = vector.extract_strided_slice %137 {offsets = [0, 0], sizes = [8, 10], strides = [1, 1]} : vector<8x100xf32> to vector<8x10xf32>
    %160 = tpu.concatenate %158, %159 in 1 : vector<8x90xf32>, vector<8x10xf32> -> vector<8x100xf32>
    %161 = vector.extract_strided_slice %137 {offsets = [0, 11], sizes = [8, 89], strides = [1, 1]} : vector<8x100xf32> to vector<8x89xf32>
    %162 = vector.extract_strided_slice %137 {offsets = [0, 0], sizes = [8, 11], strides = [1, 1]} : vector<8x100xf32> to vector<8x11xf32>
    %163 = tpu.concatenate %161, %162 in 1 : vector<8x89xf32>, vector<8x11xf32> -> vector<8x100xf32>
    %164 = tpu.concatenate %142, %145, %148, %151, %137, %154, %157, %160, %163 in 0 : vector<8x100xf32>, vector<8x100xf32>, vector<8x100xf32>, vector<8x100xf32>, vector<8x100xf32>, vector<8x100xf32>, vector<8x100xf32>, vector<8x100xf32>, vector<8x100xf32> -> vector<72x100xf32>
    %cst_47 = arith.constant dense<0.000000e+00> : vector<8x100xf32>
    %165 = tpu.matmul %138, %164, %cst_47 {dimension_numbers = #tpu.dot_dimension_numbers<[1], [0], [0], [1], [0, 0, 1, 1], [], []>} : vector<8x72xf32>, vector<72x100xf32>, vector<8x100xf32> -> vector<8x100xf32>
    %166 = vector.extract_strided_slice %139 {offsets = [0, 0], sizes = [8, 1], strides = [1, 1]} : vector<8x3xf32> to vector<8x1xf32>
    %167 = vector.broadcast %166 : vector<8x1xf32> to vector<8x100xf32>
    %168 = arith.addf %165, %167 : vector<8x100xf32>
    %cst_48 = arith.constant 0.000000e+00 : f32
    %169 = vector.broadcast %cst_48 : f32 to vector<8x100xf32>
    %170 = arith.maximumf %168, %169 : vector<8x100xf32>
    %171 = vector.extract_strided_slice %139 {offsets = [0, 1], sizes = [8, 1], strides = [1, 1]} : vector<8x3xf32> to vector<8x1xf32>
    %172 = vector.broadcast %171 : vector<8x1xf32> to vector<8x100xf32>
    %173 = arith.mulf %170, %172 : vector<8x100xf32>
    %174 = vector.extract_strided_slice %139 {offsets = [0, 2], sizes = [8, 1], strides = [1, 1]} : vector<8x3xf32> to vector<8x1xf32>
    %175 = vector.broadcast %174 : vector<8x1xf32> to vector<8x100xf32>
    %176 = arith.addf %173, %175 : vector<8x100xf32>
    %177 = vector.extract_strided_slice %0 {offsets = [1, 0], sizes = [1, 100], strides = [1, 1]} : vector<4x324xf32> to vector<1x100xf32>
    %178 = vector.broadcast %177 : vector<1x100xf32> to vector<8x100xf32>
    %179 = arith.mulf %176, %178 : vector<8x100xf32>
    %c0_49 = arith.constant 0 : index
    %c0_50 = arith.constant 0 : index
    %180 = vector.load %arg16[%c0_49, %c0_50] : memref<8x72xf32, #tpu.memory_space<vmem>>, vector<8x72xf32>
    %c0_51 = arith.constant 0 : index
    %c0_52 = arith.constant 0 : index
    %181 = vector.load %arg17[%c0_51, %c0_52] : memref<8x3xf32, #tpu.memory_space<vmem>>, vector<8x3xf32>
    %182 = vector.extract_strided_slice %179 {offsets = [0, 89], sizes = [8, 11], strides = [1, 1]} : vector<8x100xf32> to vector<8x11xf32>
    %183 = vector.extract_strided_slice %179 {offsets = [0, 0], sizes = [8, 89], strides = [1, 1]} : vector<8x100xf32> to vector<8x89xf32>
    %184 = tpu.concatenate %182, %183 in 1 : vector<8x11xf32>, vector<8x89xf32> -> vector<8x100xf32>
    %185 = vector.extract_strided_slice %179 {offsets = [0, 90], sizes = [8, 10], strides = [1, 1]} : vector<8x100xf32> to vector<8x10xf32>
    %186 = vector.extract_strided_slice %179 {offsets = [0, 0], sizes = [8, 90], strides = [1, 1]} : vector<8x100xf32> to vector<8x90xf32>
    %187 = tpu.concatenate %185, %186 in 1 : vector<8x10xf32>, vector<8x90xf32> -> vector<8x100xf32>
    %188 = vector.extract_strided_slice %179 {offsets = [0, 91], sizes = [8, 9], strides = [1, 1]} : vector<8x100xf32> to vector<8x9xf32>
    %189 = vector.extract_strided_slice %179 {offsets = [0, 0], sizes = [8, 91], strides = [1, 1]} : vector<8x100xf32> to vector<8x91xf32>
    %190 = tpu.concatenate %188, %189 in 1 : vector<8x9xf32>, vector<8x91xf32> -> vector<8x100xf32>
    %191 = vector.extract_strided_slice %179 {offsets = [0, 99], sizes = [8, 1], strides = [1, 1]} : vector<8x100xf32> to vector<8x1xf32>
    %192 = vector.extract_strided_slice %179 {offsets = [0, 0], sizes = [8, 99], strides = [1, 1]} : vector<8x100xf32> to vector<8x99xf32>
    %193 = tpu.concatenate %191, %192 in 1 : vector<8x1xf32>, vector<8x99xf32> -> vector<8x100xf32>
    %194 = vector.extract_strided_slice %179 {offsets = [0, 1], sizes = [8, 99], strides = [1, 1]} : vector<8x100xf32> to vector<8x99xf32>
    %195 = vector.extract_strided_slice %179 {offsets = [0, 0], sizes = [8, 1], strides = [1, 1]} : vector<8x100xf32> to vector<8x1xf32>
    %196 = tpu.concatenate %194, %195 in 1 : vector<8x99xf32>, vector<8x1xf32> -> vector<8x100xf32>
    %197 = vector.extract_strided_slice %179 {offsets = [0, 9], sizes = [8, 91], strides = [1, 1]} : vector<8x100xf32> to vector<8x91xf32>
    %198 = vector.extract_strided_slice %179 {offsets = [0, 0], sizes = [8, 9], strides = [1, 1]} : vector<8x100xf32> to vector<8x9xf32>
    %199 = tpu.concatenate %197, %198 in 1 : vector<8x91xf32>, vector<8x9xf32> -> vector<8x100xf32>
    %200 = vector.extract_strided_slice %179 {offsets = [0, 10], sizes = [8, 90], strides = [1, 1]} : vector<8x100xf32> to vector<8x90xf32>
    %201 = vector.extract_strided_slice %179 {offsets = [0, 0], sizes = [8, 10], strides = [1, 1]} : vector<8x100xf32> to vector<8x10xf32>
    %202 = tpu.concatenate %200, %201 in 1 : vector<8x90xf32>, vector<8x10xf32> -> vector<8x100xf32>
    %203 = vector.extract_strided_slice %179 {offsets = [0, 11], sizes = [8, 89], strides = [1, 1]} : vector<8x100xf32> to vector<8x89xf32>
    %204 = vector.extract_strided_slice %179 {offsets = [0, 0], sizes = [8, 11], strides = [1, 1]} : vector<8x100xf32> to vector<8x11xf32>
    %205 = tpu.concatenate %203, %204 in 1 : vector<8x89xf32>, vector<8x11xf32> -> vector<8x100xf32>
    %206 = tpu.concatenate %184, %187, %190, %193, %179, %196, %199, %202, %205 in 0 : vector<8x100xf32>, vector<8x100xf32>, vector<8x100xf32>, vector<8x100xf32>, vector<8x100xf32>, vector<8x100xf32>, vector<8x100xf32>, vector<8x100xf32>, vector<8x100xf32> -> vector<72x100xf32>
    %cst_53 = arith.constant dense<0.000000e+00> : vector<8x100xf32>
    %207 = tpu.matmul %180, %206, %cst_53 {dimension_numbers = #tpu.dot_dimension_numbers<[1], [0], [0], [1], [0, 0, 1, 1], [], []>} : vector<8x72xf32>, vector<72x100xf32>, vector<8x100xf32> -> vector<8x100xf32>
    %208 = vector.extract_strided_slice %181 {offsets = [0, 0], sizes = [8, 1], strides = [1, 1]} : vector<8x3xf32> to vector<8x1xf32>
    %209 = vector.broadcast %208 : vector<8x1xf32> to vector<8x100xf32>
    %210 = arith.addf %207, %209 : vector<8x100xf32>
    %cst_54 = arith.constant 0.000000e+00 : f32
    %211 = vector.broadcast %cst_54 : f32 to vector<8x100xf32>
    %212 = arith.maximumf %210, %211 : vector<8x100xf32>
    %213 = vector.extract_strided_slice %181 {offsets = [0, 1], sizes = [8, 1], strides = [1, 1]} : vector<8x3xf32> to vector<8x1xf32>
    %214 = vector.broadcast %213 : vector<8x1xf32> to vector<8x100xf32>
    %215 = arith.mulf %212, %214 : vector<8x100xf32>
    %216 = vector.extract_strided_slice %181 {offsets = [0, 2], sizes = [8, 1], strides = [1, 1]} : vector<8x3xf32> to vector<8x1xf32>
    %217 = vector.broadcast %216 : vector<8x1xf32> to vector<8x100xf32>
    %218 = arith.addf %215, %217 : vector<8x100xf32>
    %219 = vector.extract_strided_slice %218 {offsets = [0, 1], sizes = [8, 99], strides = [1, 1]} : vector<8x100xf32> to vector<8x99xf32>
    %220 = vector.extract_strided_slice %218 {offsets = [0, 0], sizes = [8, 1], strides = [1, 1]} : vector<8x100xf32> to vector<8x1xf32>
    %221 = tpu.concatenate %219, %220 in 1 : vector<8x99xf32>, vector<8x1xf32> -> vector<8x100xf32>
    %222 = vector.extract_strided_slice %218 {offsets = [0, 10], sizes = [8, 90], strides = [1, 1]} : vector<8x100xf32> to vector<8x90xf32>
    %223 = vector.extract_strided_slice %218 {offsets = [0, 0], sizes = [8, 10], strides = [1, 1]} : vector<8x100xf32> to vector<8x10xf32>
    %224 = tpu.concatenate %222, %223 in 1 : vector<8x90xf32>, vector<8x10xf32> -> vector<8x100xf32>
    %225 = vector.extract_strided_slice %218 {offsets = [0, 11], sizes = [8, 89], strides = [1, 1]} : vector<8x100xf32> to vector<8x89xf32>
    %226 = vector.extract_strided_slice %218 {offsets = [0, 0], sizes = [8, 11], strides = [1, 1]} : vector<8x100xf32> to vector<8x11xf32>
    %227 = tpu.concatenate %225, %226 in 1 : vector<8x89xf32>, vector<8x11xf32> -> vector<8x100xf32>
    %228 = arith.maximumf %218, %221 : vector<8x100xf32>
    %229 = arith.maximumf %224, %227 : vector<8x100xf32>
    %230 = arith.maximumf %228, %229 : vector<8x100xf32>
    %231 = arith.cmpf oeq, %218, %230 : vector<8x100xf32>
    %cst_55 = arith.constant dense<true> : vector<8x100xi1>
    %232 = arith.xori %231, %cst_55 : vector<8x100xi1>
    %233 = arith.cmpf oeq, %221, %230 : vector<8x100xf32>
    %234 = arith.andi %232, %233 : vector<8x100xi1>
    %235 = arith.ori %231, %234 : vector<8x100xi1>
    %cst_56 = arith.constant dense<true> : vector<8x100xi1>
    %236 = arith.xori %235, %cst_56 : vector<8x100xi1>
    %237 = arith.cmpf oeq, %224, %230 : vector<8x100xf32>
    %238 = arith.andi %236, %237 : vector<8x100xi1>
    %239 = arith.ori %231, %234 : vector<8x100xi1>
    %cst_57 = arith.constant 0.000000e+00 : f32
    %cst_58 = arith.constant 1.000000e+00 : f32
    %240 = vector.broadcast %cst_57 : f32 to vector<8x100xf32>
    %241 = vector.broadcast %cst_58 : f32 to vector<8x100xf32>
    %242 = arith.select %239, %240, %241 : vector<8x100xi1>, vector<8x100xf32>
    %cst_59 = arith.constant 0.000000e+00 : f32
    %cst_60 = arith.constant 1.000000e+00 : f32
    %243 = vector.broadcast %cst_59 : f32 to vector<8x100xf32>
    %244 = vector.broadcast %cst_60 : f32 to vector<8x100xf32>
    %245 = arith.select %238, %243, %244 : vector<8x100xi1>, vector<8x100xf32>
    %cst_61 = arith.constant 1.000000e+00 : f32
    %246 = vector.broadcast %cst_61 : f32 to vector<8x100xf32>
    %247 = arith.select %234, %246, %245 : vector<8x100xi1>, vector<8x100xf32>
    %cst_62 = arith.constant 0.000000e+00 : f32
    %248 = vector.broadcast %cst_62 : f32 to vector<8x100xf32>
    %249 = arith.select %231, %248, %247 : vector<8x100xi1>, vector<8x100xf32>
    %c0_63 = arith.constant 0 : index
    %c0_64 = arith.constant 0 : index
    %250 = vector.load %arg18[%c0_63, %c0_64] : memref<32x16xf32, #tpu.memory_space<vmem>>, vector<32x16xf32>
    %c0_65 = arith.constant 0 : index
    %c0_66 = arith.constant 0 : index
    %251 = vector.load %arg19[%c0_65, %c0_66] : memref<32x1xf32, #tpu.memory_space<vmem>>, vector<32x1xf32>
    %c0_67 = arith.constant 0 : index
    %c0_68 = arith.constant 0 : index
    %252 = vector.load %arg20[%c0_67, %c0_68] : memref<4x32xf32, #tpu.memory_space<vmem>>, vector<4x32xf32>
    %c0_69 = arith.constant 0 : index
    %c0_70 = arith.constant 0 : index
    %253 = vector.load %arg21[%c0_69, %c0_70] : memref<4x1xf32, #tpu.memory_space<vmem>>, vector<4x1xf32>
    %c0_71 = arith.constant 0 : index
    %c0_72 = arith.constant 0 : index
    %254 = vector.load %arg22[%c0_71, %c0_72] : memref<8x12xf32, #tpu.memory_space<vmem>>, vector<8x12xf32>
    %c0_73 = arith.constant 0 : index
    %c0_74 = arith.constant 0 : index
    %255 = vector.load %arg23[%c0_73, %c0_74] : memref<8x1xf32, #tpu.memory_space<vmem>>, vector<8x1xf32>
    %c0_75 = arith.constant 0 : index
    %c0_76 = arith.constant 0 : index
    %256 = vector.load %arg24[%c0_75, %c0_76] : memref<100x36xf32, #tpu.memory_space<vmem>>, vector<100x36xf32>
    %257 = tpu.concatenate %242, %249 in 0 : vector<8x100xf32>, vector<8x100xf32> -> vector<16x100xf32>
    %cst_77 = arith.constant dense<0.000000e+00> : vector<32x100xf32>
    %258 = tpu.matmul %250, %257, %cst_77 {dimension_numbers = #tpu.dot_dimension_numbers<[1], [0], [0], [1], [0, 0, 1, 1], [], []>} : vector<32x16xf32>, vector<16x100xf32>, vector<32x100xf32> -> vector<32x100xf32>
    %259 = vector.broadcast %251 : vector<32x1xf32> to vector<32x100xf32>
    %260 = arith.addf %258, %259 : vector<32x100xf32>
    %cst_78 = arith.constant 0.000000e+00 : f32
    %261 = vector.broadcast %cst_78 : f32 to vector<32x100xf32>
    %262 = arith.maximumf %260, %261 : vector<32x100xf32>
    %cst_79 = arith.constant dense<0.000000e+00> : vector<4x100xf32>
    %263 = tpu.matmul %252, %262, %cst_79 {dimension_numbers = #tpu.dot_dimension_numbers<[1], [0], [0], [1], [0, 0, 1, 1], [], []>} : vector<4x32xf32>, vector<32x100xf32>, vector<4x100xf32> -> vector<4x100xf32>
    %264 = vector.broadcast %253 : vector<4x1xf32> to vector<4x100xf32>
    %265 = arith.addf %263, %264 : vector<4x100xf32>
    %cst_80 = arith.constant 0.000000e+00 : f32
    %266 = vector.broadcast %cst_80 : f32 to vector<4x100xf32>
    %267 = arith.maximumf %265, %266 : vector<4x100xf32>
    %268 = tpu.concatenate %230, %267 in 0 : vector<8x100xf32>, vector<4x100xf32> -> vector<12x100xf32>
    %cst_81 = arith.constant dense<0.000000e+00> : vector<8x100xf32>
    %269 = tpu.matmul %254, %268, %cst_81 {dimension_numbers = #tpu.dot_dimension_numbers<[1], [0], [0], [1], [0, 0, 1, 1], [], []>} : vector<8x12xf32>, vector<12x100xf32>, vector<8x100xf32> -> vector<8x100xf32>
    %270 = vector.broadcast %255 : vector<8x1xf32> to vector<8x100xf32>
    %271 = arith.addf %269, %270 : vector<8x100xf32>
    %cst_82 = arith.constant dense<0.000000e+00> : vector<8x36xf32>
    %272 = tpu.matmul %271, %256, %cst_82 {dimension_numbers = #tpu.dot_dimension_numbers<[1], [0], [0], [1], [0, 0, 1, 1], [], []>} : vector<8x100xf32>, vector<100x36xf32>, vector<8x36xf32> -> vector<8x36xf32>
    %c0_83 = arith.constant 0 : index
    %c0_84 = arith.constant 0 : index
    %273 = vector.load %arg25[%c0_83, %c0_84] : memref<16x72xf32, #tpu.memory_space<vmem>>, vector<16x72xf32>
    %c0_85 = arith.constant 0 : index
    %c0_86 = arith.constant 0 : index
    %274 = vector.load %arg26[%c0_85, %c0_86] : memref<16x3xf32, #tpu.memory_space<vmem>>, vector<16x3xf32>
    %275 = vector.extract_strided_slice %272 {offsets = [0, 29], sizes = [8, 7], strides = [1, 1]} : vector<8x36xf32> to vector<8x7xf32>
    %276 = vector.extract_strided_slice %272 {offsets = [0, 0], sizes = [8, 29], strides = [1, 1]} : vector<8x36xf32> to vector<8x29xf32>
    %277 = tpu.concatenate %275, %276 in 1 : vector<8x7xf32>, vector<8x29xf32> -> vector<8x36xf32>
    %278 = vector.extract_strided_slice %272 {offsets = [0, 30], sizes = [8, 6], strides = [1, 1]} : vector<8x36xf32> to vector<8x6xf32>
    %279 = vector.extract_strided_slice %272 {offsets = [0, 0], sizes = [8, 30], strides = [1, 1]} : vector<8x36xf32> to vector<8x30xf32>
    %280 = tpu.concatenate %278, %279 in 1 : vector<8x6xf32>, vector<8x30xf32> -> vector<8x36xf32>
    %281 = vector.extract_strided_slice %272 {offsets = [0, 31], sizes = [8, 5], strides = [1, 1]} : vector<8x36xf32> to vector<8x5xf32>
    %282 = vector.extract_strided_slice %272 {offsets = [0, 0], sizes = [8, 31], strides = [1, 1]} : vector<8x36xf32> to vector<8x31xf32>
    %283 = tpu.concatenate %281, %282 in 1 : vector<8x5xf32>, vector<8x31xf32> -> vector<8x36xf32>
    %284 = vector.extract_strided_slice %272 {offsets = [0, 35], sizes = [8, 1], strides = [1, 1]} : vector<8x36xf32> to vector<8x1xf32>
    %285 = vector.extract_strided_slice %272 {offsets = [0, 0], sizes = [8, 35], strides = [1, 1]} : vector<8x36xf32> to vector<8x35xf32>
    %286 = tpu.concatenate %284, %285 in 1 : vector<8x1xf32>, vector<8x35xf32> -> vector<8x36xf32>
    %287 = vector.extract_strided_slice %272 {offsets = [0, 1], sizes = [8, 35], strides = [1, 1]} : vector<8x36xf32> to vector<8x35xf32>
    %288 = vector.extract_strided_slice %272 {offsets = [0, 0], sizes = [8, 1], strides = [1, 1]} : vector<8x36xf32> to vector<8x1xf32>
    %289 = tpu.concatenate %287, %288 in 1 : vector<8x35xf32>, vector<8x1xf32> -> vector<8x36xf32>
    %290 = vector.extract_strided_slice %272 {offsets = [0, 5], sizes = [8, 31], strides = [1, 1]} : vector<8x36xf32> to vector<8x31xf32>
    %291 = vector.extract_strided_slice %272 {offsets = [0, 0], sizes = [8, 5], strides = [1, 1]} : vector<8x36xf32> to vector<8x5xf32>
    %292 = tpu.concatenate %290, %291 in 1 : vector<8x31xf32>, vector<8x5xf32> -> vector<8x36xf32>
    %293 = vector.extract_strided_slice %272 {offsets = [0, 6], sizes = [8, 30], strides = [1, 1]} : vector<8x36xf32> to vector<8x30xf32>
    %294 = vector.extract_strided_slice %272 {offsets = [0, 0], sizes = [8, 6], strides = [1, 1]} : vector<8x36xf32> to vector<8x6xf32>
    %295 = tpu.concatenate %293, %294 in 1 : vector<8x30xf32>, vector<8x6xf32> -> vector<8x36xf32>
    %296 = vector.extract_strided_slice %272 {offsets = [0, 7], sizes = [8, 29], strides = [1, 1]} : vector<8x36xf32> to vector<8x29xf32>
    %297 = vector.extract_strided_slice %272 {offsets = [0, 0], sizes = [8, 7], strides = [1, 1]} : vector<8x36xf32> to vector<8x7xf32>
    %298 = tpu.concatenate %296, %297 in 1 : vector<8x29xf32>, vector<8x7xf32> -> vector<8x36xf32>
    %299 = tpu.concatenate %277, %280, %283, %286, %272, %289, %292, %295, %298 in 0 : vector<8x36xf32>, vector<8x36xf32>, vector<8x36xf32>, vector<8x36xf32>, vector<8x36xf32>, vector<8x36xf32>, vector<8x36xf32>, vector<8x36xf32>, vector<8x36xf32> -> vector<72x36xf32>
    %cst_87 = arith.constant dense<0.000000e+00> : vector<16x36xf32>
    %300 = tpu.matmul %273, %299, %cst_87 {dimension_numbers = #tpu.dot_dimension_numbers<[1], [0], [0], [1], [0, 0, 1, 1], [], []>} : vector<16x72xf32>, vector<72x36xf32>, vector<16x36xf32> -> vector<16x36xf32>
    %301 = vector.extract_strided_slice %274 {offsets = [0, 0], sizes = [16, 1], strides = [1, 1]} : vector<16x3xf32> to vector<16x1xf32>
    %302 = vector.broadcast %301 : vector<16x1xf32> to vector<16x36xf32>
    %303 = arith.addf %300, %302 : vector<16x36xf32>
    %cst_88 = arith.constant 0.000000e+00 : f32
    %304 = vector.broadcast %cst_88 : f32 to vector<16x36xf32>
    %305 = arith.maximumf %303, %304 : vector<16x36xf32>
    %306 = vector.extract_strided_slice %274 {offsets = [0, 1], sizes = [16, 1], strides = [1, 1]} : vector<16x3xf32> to vector<16x1xf32>
    %307 = vector.broadcast %306 : vector<16x1xf32> to vector<16x36xf32>
    %308 = arith.mulf %305, %307 : vector<16x36xf32>
    %309 = vector.extract_strided_slice %274 {offsets = [0, 2], sizes = [16, 1], strides = [1, 1]} : vector<16x3xf32> to vector<16x1xf32>
    %310 = vector.broadcast %309 : vector<16x1xf32> to vector<16x36xf32>
    %311 = arith.addf %308, %310 : vector<16x36xf32>
    %312 = vector.extract_strided_slice %0 {offsets = [2, 0], sizes = [1, 36], strides = [1, 1]} : vector<4x324xf32> to vector<1x36xf32>
    %313 = vector.broadcast %312 : vector<1x36xf32> to vector<16x36xf32>
    %314 = arith.mulf %311, %313 : vector<16x36xf32>
    %c0_89 = arith.constant 0 : index
    %c0_90 = arith.constant 0 : index
    %315 = vector.load %arg27[%c0_89, %c0_90] : memref<16x144xf32, #tpu.memory_space<vmem>>, vector<16x144xf32>
    %c0_91 = arith.constant 0 : index
    %c0_92 = arith.constant 0 : index
    %316 = vector.load %arg28[%c0_91, %c0_92] : memref<16x3xf32, #tpu.memory_space<vmem>>, vector<16x3xf32>
    %317 = vector.extract_strided_slice %314 {offsets = [0, 29], sizes = [16, 7], strides = [1, 1]} : vector<16x36xf32> to vector<16x7xf32>
    %318 = vector.extract_strided_slice %314 {offsets = [0, 0], sizes = [16, 29], strides = [1, 1]} : vector<16x36xf32> to vector<16x29xf32>
    %319 = tpu.concatenate %317, %318 in 1 : vector<16x7xf32>, vector<16x29xf32> -> vector<16x36xf32>
    %320 = vector.extract_strided_slice %314 {offsets = [0, 30], sizes = [16, 6], strides = [1, 1]} : vector<16x36xf32> to vector<16x6xf32>
    %321 = vector.extract_strided_slice %314 {offsets = [0, 0], sizes = [16, 30], strides = [1, 1]} : vector<16x36xf32> to vector<16x30xf32>
    %322 = tpu.concatenate %320, %321 in 1 : vector<16x6xf32>, vector<16x30xf32> -> vector<16x36xf32>
    %323 = vector.extract_strided_slice %314 {offsets = [0, 31], sizes = [16, 5], strides = [1, 1]} : vector<16x36xf32> to vector<16x5xf32>
    %324 = vector.extract_strided_slice %314 {offsets = [0, 0], sizes = [16, 31], strides = [1, 1]} : vector<16x36xf32> to vector<16x31xf32>
    %325 = tpu.concatenate %323, %324 in 1 : vector<16x5xf32>, vector<16x31xf32> -> vector<16x36xf32>
    %326 = vector.extract_strided_slice %314 {offsets = [0, 35], sizes = [16, 1], strides = [1, 1]} : vector<16x36xf32> to vector<16x1xf32>
    %327 = vector.extract_strided_slice %314 {offsets = [0, 0], sizes = [16, 35], strides = [1, 1]} : vector<16x36xf32> to vector<16x35xf32>
    %328 = tpu.concatenate %326, %327 in 1 : vector<16x1xf32>, vector<16x35xf32> -> vector<16x36xf32>
    %329 = vector.extract_strided_slice %314 {offsets = [0, 1], sizes = [16, 35], strides = [1, 1]} : vector<16x36xf32> to vector<16x35xf32>
    %330 = vector.extract_strided_slice %314 {offsets = [0, 0], sizes = [16, 1], strides = [1, 1]} : vector<16x36xf32> to vector<16x1xf32>
    %331 = tpu.concatenate %329, %330 in 1 : vector<16x35xf32>, vector<16x1xf32> -> vector<16x36xf32>
    %332 = vector.extract_strided_slice %314 {offsets = [0, 5], sizes = [16, 31], strides = [1, 1]} : vector<16x36xf32> to vector<16x31xf32>
    %333 = vector.extract_strided_slice %314 {offsets = [0, 0], sizes = [16, 5], strides = [1, 1]} : vector<16x36xf32> to vector<16x5xf32>
    %334 = tpu.concatenate %332, %333 in 1 : vector<16x31xf32>, vector<16x5xf32> -> vector<16x36xf32>
    %335 = vector.extract_strided_slice %314 {offsets = [0, 6], sizes = [16, 30], strides = [1, 1]} : vector<16x36xf32> to vector<16x30xf32>
    %336 = vector.extract_strided_slice %314 {offsets = [0, 0], sizes = [16, 6], strides = [1, 1]} : vector<16x36xf32> to vector<16x6xf32>
    %337 = tpu.concatenate %335, %336 in 1 : vector<16x30xf32>, vector<16x6xf32> -> vector<16x36xf32>
    %338 = vector.extract_strided_slice %314 {offsets = [0, 7], sizes = [16, 29], strides = [1, 1]} : vector<16x36xf32> to vector<16x29xf32>
    %339 = vector.extract_strided_slice %314 {offsets = [0, 0], sizes = [16, 7], strides = [1, 1]} : vector<16x36xf32> to vector<16x7xf32>
    %340 = tpu.concatenate %338, %339 in 1 : vector<16x29xf32>, vector<16x7xf32> -> vector<16x36xf32>
    %341 = tpu.concatenate %319, %322, %325, %328, %314, %331, %334, %337, %340 in 0 : vector<16x36xf32>, vector<16x36xf32>, vector<16x36xf32>, vector<16x36xf32>, vector<16x36xf32>, vector<16x36xf32>, vector<16x36xf32>, vector<16x36xf32>, vector<16x36xf32> -> vector<144x36xf32>
    %cst_93 = arith.constant dense<0.000000e+00> : vector<16x36xf32>
    %342 = tpu.matmul %315, %341, %cst_93 {dimension_numbers = #tpu.dot_dimension_numbers<[1], [0], [0], [1], [0, 0, 1, 1], [], []>} : vector<16x144xf32>, vector<144x36xf32>, vector<16x36xf32> -> vector<16x36xf32>
    %343 = vector.extract_strided_slice %316 {offsets = [0, 0], sizes = [16, 1], strides = [1, 1]} : vector<16x3xf32> to vector<16x1xf32>
    %344 = vector.broadcast %343 : vector<16x1xf32> to vector<16x36xf32>
    %345 = arith.addf %342, %344 : vector<16x36xf32>
    %cst_94 = arith.constant 0.000000e+00 : f32
    %346 = vector.broadcast %cst_94 : f32 to vector<16x36xf32>
    %347 = arith.maximumf %345, %346 : vector<16x36xf32>
    %348 = vector.extract_strided_slice %316 {offsets = [0, 1], sizes = [16, 1], strides = [1, 1]} : vector<16x3xf32> to vector<16x1xf32>
    %349 = vector.broadcast %348 : vector<16x1xf32> to vector<16x36xf32>
    %350 = arith.mulf %347, %349 : vector<16x36xf32>
    %351 = vector.extract_strided_slice %316 {offsets = [0, 2], sizes = [16, 1], strides = [1, 1]} : vector<16x3xf32> to vector<16x1xf32>
    %352 = vector.broadcast %351 : vector<16x1xf32> to vector<16x36xf32>
    %353 = arith.addf %350, %352 : vector<16x36xf32>
    %354 = vector.extract_strided_slice %353 {offsets = [0, 1], sizes = [16, 35], strides = [1, 1]} : vector<16x36xf32> to vector<16x35xf32>
    %355 = vector.extract_strided_slice %353 {offsets = [0, 0], sizes = [16, 1], strides = [1, 1]} : vector<16x36xf32> to vector<16x1xf32>
    %356 = tpu.concatenate %354, %355 in 1 : vector<16x35xf32>, vector<16x1xf32> -> vector<16x36xf32>
    %357 = vector.extract_strided_slice %353 {offsets = [0, 6], sizes = [16, 30], strides = [1, 1]} : vector<16x36xf32> to vector<16x30xf32>
    %358 = vector.extract_strided_slice %353 {offsets = [0, 0], sizes = [16, 6], strides = [1, 1]} : vector<16x36xf32> to vector<16x6xf32>
    %359 = tpu.concatenate %357, %358 in 1 : vector<16x30xf32>, vector<16x6xf32> -> vector<16x36xf32>
    %360 = vector.extract_strided_slice %353 {offsets = [0, 7], sizes = [16, 29], strides = [1, 1]} : vector<16x36xf32> to vector<16x29xf32>
    %361 = vector.extract_strided_slice %353 {offsets = [0, 0], sizes = [16, 7], strides = [1, 1]} : vector<16x36xf32> to vector<16x7xf32>
    %362 = tpu.concatenate %360, %361 in 1 : vector<16x29xf32>, vector<16x7xf32> -> vector<16x36xf32>
    %363 = arith.maximumf %353, %356 : vector<16x36xf32>
    %364 = arith.maximumf %359, %362 : vector<16x36xf32>
    %365 = arith.maximumf %363, %364 : vector<16x36xf32>
    %366 = arith.cmpf oeq, %353, %365 : vector<16x36xf32>
    %cst_95 = arith.constant dense<true> : vector<16x36xi1>
    %367 = arith.xori %366, %cst_95 : vector<16x36xi1>
    %368 = arith.cmpf oeq, %356, %365 : vector<16x36xf32>
    %369 = arith.andi %367, %368 : vector<16x36xi1>
    %370 = arith.ori %366, %369 : vector<16x36xi1>
    %cst_96 = arith.constant dense<true> : vector<16x36xi1>
    %371 = arith.xori %370, %cst_96 : vector<16x36xi1>
    %372 = arith.cmpf oeq, %359, %365 : vector<16x36xf32>
    %373 = arith.andi %371, %372 : vector<16x36xi1>
    %374 = arith.ori %366, %369 : vector<16x36xi1>
    %cst_97 = arith.constant 0.000000e+00 : f32
    %cst_98 = arith.constant 1.000000e+00 : f32
    %375 = vector.broadcast %cst_97 : f32 to vector<16x36xf32>
    %376 = vector.broadcast %cst_98 : f32 to vector<16x36xf32>
    %377 = arith.select %374, %375, %376 : vector<16x36xi1>, vector<16x36xf32>
    %cst_99 = arith.constant 0.000000e+00 : f32
    %cst_100 = arith.constant 1.000000e+00 : f32
    %378 = vector.broadcast %cst_99 : f32 to vector<16x36xf32>
    %379 = vector.broadcast %cst_100 : f32 to vector<16x36xf32>
    %380 = arith.select %373, %378, %379 : vector<16x36xi1>, vector<16x36xf32>
    %cst_101 = arith.constant 1.000000e+00 : f32
    %381 = vector.broadcast %cst_101 : f32 to vector<16x36xf32>
    %382 = arith.select %369, %381, %380 : vector<16x36xi1>, vector<16x36xf32>
    %cst_102 = arith.constant 0.000000e+00 : f32
    %383 = vector.broadcast %cst_102 : f32 to vector<16x36xf32>
    %384 = arith.select %366, %383, %382 : vector<16x36xi1>, vector<16x36xf32>
    %c0_103 = arith.constant 0 : index
    %c0_104 = arith.constant 0 : index
    %385 = vector.load %arg29[%c0_103, %c0_104] : memref<64x32xf32, #tpu.memory_space<vmem>>, vector<64x32xf32>
    %c0_105 = arith.constant 0 : index
    %c0_106 = arith.constant 0 : index
    %386 = vector.load %arg30[%c0_105, %c0_106] : memref<64x1xf32, #tpu.memory_space<vmem>>, vector<64x1xf32>
    %c0_107 = arith.constant 0 : index
    %c0_108 = arith.constant 0 : index
    %387 = vector.load %arg31[%c0_107, %c0_108] : memref<6x64xf32, #tpu.memory_space<vmem>>, vector<6x64xf32>
    %c0_109 = arith.constant 0 : index
    %c0_110 = arith.constant 0 : index
    %388 = vector.load %arg32[%c0_109, %c0_110] : memref<6x1xf32, #tpu.memory_space<vmem>>, vector<6x1xf32>
    %c0_111 = arith.constant 0 : index
    %c0_112 = arith.constant 0 : index
    %389 = vector.load %arg33[%c0_111, %c0_112] : memref<16x22xf32, #tpu.memory_space<vmem>>, vector<16x22xf32>
    %c0_113 = arith.constant 0 : index
    %c0_114 = arith.constant 0 : index
    %390 = vector.load %arg34[%c0_113, %c0_114] : memref<16x1xf32, #tpu.memory_space<vmem>>, vector<16x1xf32>
    %c0_115 = arith.constant 0 : index
    %c0_116 = arith.constant 0 : index
    %391 = vector.load %arg35[%c0_115, %c0_116] : memref<36x16xf32, #tpu.memory_space<vmem>>, vector<36x16xf32>
    %392 = tpu.concatenate %377, %384 in 0 : vector<16x36xf32>, vector<16x36xf32> -> vector<32x36xf32>
    %cst_117 = arith.constant dense<0.000000e+00> : vector<64x36xf32>
    %393 = tpu.matmul %385, %392, %cst_117 {dimension_numbers = #tpu.dot_dimension_numbers<[1], [0], [0], [1], [0, 0, 1, 1], [], []>} : vector<64x32xf32>, vector<32x36xf32>, vector<64x36xf32> -> vector<64x36xf32>
    %394 = vector.broadcast %386 : vector<64x1xf32> to vector<64x36xf32>
    %395 = arith.addf %393, %394 : vector<64x36xf32>
    %cst_118 = arith.constant 0.000000e+00 : f32
    %396 = vector.broadcast %cst_118 : f32 to vector<64x36xf32>
    %397 = arith.maximumf %395, %396 : vector<64x36xf32>
    %cst_119 = arith.constant dense<0.000000e+00> : vector<6x36xf32>
    %398 = tpu.matmul %387, %397, %cst_119 {dimension_numbers = #tpu.dot_dimension_numbers<[1], [0], [0], [1], [0, 0, 1, 1], [], []>} : vector<6x64xf32>, vector<64x36xf32>, vector<6x36xf32> -> vector<6x36xf32>
    %399 = vector.broadcast %388 : vector<6x1xf32> to vector<6x36xf32>
    %400 = arith.addf %398, %399 : vector<6x36xf32>
    %cst_120 = arith.constant 0.000000e+00 : f32
    %401 = vector.broadcast %cst_120 : f32 to vector<6x36xf32>
    %402 = arith.maximumf %400, %401 : vector<6x36xf32>
    %403 = tpu.concatenate %365, %402 in 0 : vector<16x36xf32>, vector<6x36xf32> -> vector<22x36xf32>
    %cst_121 = arith.constant dense<0.000000e+00> : vector<16x36xf32>
    %404 = tpu.matmul %389, %403, %cst_121 {dimension_numbers = #tpu.dot_dimension_numbers<[1], [0], [0], [1], [0, 0, 1, 1], [], []>} : vector<16x22xf32>, vector<22x36xf32>, vector<16x36xf32> -> vector<16x36xf32>
    %405 = vector.broadcast %390 : vector<16x1xf32> to vector<16x36xf32>
    %406 = arith.addf %404, %405 : vector<16x36xf32>
    %cst_122 = arith.constant dense<0.000000e+00> : vector<16x16xf32>
    %407 = tpu.matmul %406, %391, %cst_122 {dimension_numbers = #tpu.dot_dimension_numbers<[1], [0], [0], [1], [0, 0, 1, 1], [], []>} : vector<16x36xf32>, vector<36x16xf32>, vector<16x16xf32> -> vector<16x16xf32>
    %c0_123 = arith.constant 0 : index
    %c0_124 = arith.constant 0 : index
    %408 = vector.load %arg36[%c0_123, %c0_124] : memref<16x144xf32, #tpu.memory_space<vmem>>, vector<16x144xf32>
    %c0_125 = arith.constant 0 : index
    %c0_126 = arith.constant 0 : index
    %409 = vector.load %arg37[%c0_125, %c0_126] : memref<16x3xf32, #tpu.memory_space<vmem>>, vector<16x3xf32>
    %410 = vector.extract_strided_slice %407 {offsets = [0, 11], sizes = [16, 5], strides = [1, 1]} : vector<16x16xf32> to vector<16x5xf32>
    %411 = vector.extract_strided_slice %407 {offsets = [0, 0], sizes = [16, 11], strides = [1, 1]} : vector<16x16xf32> to vector<16x11xf32>
    %412 = tpu.concatenate %410, %411 in 1 : vector<16x5xf32>, vector<16x11xf32> -> vector<16x16xf32>
    %413 = vector.extract_strided_slice %407 {offsets = [0, 12], sizes = [16, 4], strides = [1, 1]} : vector<16x16xf32> to vector<16x4xf32>
    %414 = vector.extract_strided_slice %407 {offsets = [0, 0], sizes = [16, 12], strides = [1, 1]} : vector<16x16xf32> to vector<16x12xf32>
    %415 = tpu.concatenate %413, %414 in 1 : vector<16x4xf32>, vector<16x12xf32> -> vector<16x16xf32>
    %416 = vector.extract_strided_slice %407 {offsets = [0, 13], sizes = [16, 3], strides = [1, 1]} : vector<16x16xf32> to vector<16x3xf32>
    %417 = vector.extract_strided_slice %407 {offsets = [0, 0], sizes = [16, 13], strides = [1, 1]} : vector<16x16xf32> to vector<16x13xf32>
    %418 = tpu.concatenate %416, %417 in 1 : vector<16x3xf32>, vector<16x13xf32> -> vector<16x16xf32>
    %419 = vector.extract_strided_slice %407 {offsets = [0, 15], sizes = [16, 1], strides = [1, 1]} : vector<16x16xf32> to vector<16x1xf32>
    %420 = vector.extract_strided_slice %407 {offsets = [0, 0], sizes = [16, 15], strides = [1, 1]} : vector<16x16xf32> to vector<16x15xf32>
    %421 = tpu.concatenate %419, %420 in 1 : vector<16x1xf32>, vector<16x15xf32> -> vector<16x16xf32>
    %422 = vector.extract_strided_slice %407 {offsets = [0, 1], sizes = [16, 15], strides = [1, 1]} : vector<16x16xf32> to vector<16x15xf32>
    %423 = vector.extract_strided_slice %407 {offsets = [0, 0], sizes = [16, 1], strides = [1, 1]} : vector<16x16xf32> to vector<16x1xf32>
    %424 = tpu.concatenate %422, %423 in 1 : vector<16x15xf32>, vector<16x1xf32> -> vector<16x16xf32>
    %425 = vector.extract_strided_slice %407 {offsets = [0, 3], sizes = [16, 13], strides = [1, 1]} : vector<16x16xf32> to vector<16x13xf32>
    %426 = vector.extract_strided_slice %407 {offsets = [0, 0], sizes = [16, 3], strides = [1, 1]} : vector<16x16xf32> to vector<16x3xf32>
    %427 = tpu.concatenate %425, %426 in 1 : vector<16x13xf32>, vector<16x3xf32> -> vector<16x16xf32>
    %428 = vector.extract_strided_slice %407 {offsets = [0, 4], sizes = [16, 12], strides = [1, 1]} : vector<16x16xf32> to vector<16x12xf32>
    %429 = vector.extract_strided_slice %407 {offsets = [0, 0], sizes = [16, 4], strides = [1, 1]} : vector<16x16xf32> to vector<16x4xf32>
    %430 = tpu.concatenate %428, %429 in 1 : vector<16x12xf32>, vector<16x4xf32> -> vector<16x16xf32>
    %431 = vector.extract_strided_slice %407 {offsets = [0, 5], sizes = [16, 11], strides = [1, 1]} : vector<16x16xf32> to vector<16x11xf32>
    %432 = vector.extract_strided_slice %407 {offsets = [0, 0], sizes = [16, 5], strides = [1, 1]} : vector<16x16xf32> to vector<16x5xf32>
    %433 = tpu.concatenate %431, %432 in 1 : vector<16x11xf32>, vector<16x5xf32> -> vector<16x16xf32>
    %434 = tpu.concatenate %412, %415, %418, %421, %407, %424, %427, %430, %433 in 0 : vector<16x16xf32>, vector<16x16xf32>, vector<16x16xf32>, vector<16x16xf32>, vector<16x16xf32>, vector<16x16xf32>, vector<16x16xf32>, vector<16x16xf32>, vector<16x16xf32> -> vector<144x16xf32>
    %cst_127 = arith.constant dense<0.000000e+00> : vector<16x16xf32>
    %435 = tpu.matmul %408, %434, %cst_127 {dimension_numbers = #tpu.dot_dimension_numbers<[1], [0], [0], [1], [0, 0, 1, 1], [], []>} : vector<16x144xf32>, vector<144x16xf32>, vector<16x16xf32> -> vector<16x16xf32>
    %436 = vector.extract_strided_slice %409 {offsets = [0, 0], sizes = [16, 1], strides = [1, 1]} : vector<16x3xf32> to vector<16x1xf32>
    %437 = vector.broadcast %436 : vector<16x1xf32> to vector<16x16xf32>
    %438 = arith.addf %435, %437 : vector<16x16xf32>
    %cst_128 = arith.constant 0.000000e+00 : f32
    %439 = vector.broadcast %cst_128 : f32 to vector<16x16xf32>
    %440 = arith.maximumf %438, %439 : vector<16x16xf32>
    %441 = vector.extract_strided_slice %409 {offsets = [0, 1], sizes = [16, 1], strides = [1, 1]} : vector<16x3xf32> to vector<16x1xf32>
    %442 = vector.broadcast %441 : vector<16x1xf32> to vector<16x16xf32>
    %443 = arith.mulf %440, %442 : vector<16x16xf32>
    %444 = vector.extract_strided_slice %409 {offsets = [0, 2], sizes = [16, 1], strides = [1, 1]} : vector<16x3xf32> to vector<16x1xf32>
    %445 = vector.broadcast %444 : vector<16x1xf32> to vector<16x16xf32>
    %446 = arith.addf %443, %445 : vector<16x16xf32>
    %447 = vector.extract_strided_slice %0 {offsets = [3, 0], sizes = [1, 16], strides = [1, 1]} : vector<4x324xf32> to vector<1x16xf32>
    %448 = vector.broadcast %447 : vector<1x16xf32> to vector<16x16xf32>
    %449 = arith.mulf %446, %448 : vector<16x16xf32>
    %c0_129 = arith.constant 0 : index
    %c0_130 = arith.constant 0 : index
    %450 = vector.load %arg38[%c0_129, %c0_130] : memref<16x144xf32, #tpu.memory_space<vmem>>, vector<16x144xf32>
    %c0_131 = arith.constant 0 : index
    %c0_132 = arith.constant 0 : index
    %451 = vector.load %arg39[%c0_131, %c0_132] : memref<16x3xf32, #tpu.memory_space<vmem>>, vector<16x3xf32>
    %452 = vector.extract_strided_slice %449 {offsets = [0, 11], sizes = [16, 5], strides = [1, 1]} : vector<16x16xf32> to vector<16x5xf32>
    %453 = vector.extract_strided_slice %449 {offsets = [0, 0], sizes = [16, 11], strides = [1, 1]} : vector<16x16xf32> to vector<16x11xf32>
    %454 = tpu.concatenate %452, %453 in 1 : vector<16x5xf32>, vector<16x11xf32> -> vector<16x16xf32>
    %455 = vector.extract_strided_slice %449 {offsets = [0, 12], sizes = [16, 4], strides = [1, 1]} : vector<16x16xf32> to vector<16x4xf32>
    %456 = vector.extract_strided_slice %449 {offsets = [0, 0], sizes = [16, 12], strides = [1, 1]} : vector<16x16xf32> to vector<16x12xf32>
    %457 = tpu.concatenate %455, %456 in 1 : vector<16x4xf32>, vector<16x12xf32> -> vector<16x16xf32>
    %458 = vector.extract_strided_slice %449 {offsets = [0, 13], sizes = [16, 3], strides = [1, 1]} : vector<16x16xf32> to vector<16x3xf32>
    %459 = vector.extract_strided_slice %449 {offsets = [0, 0], sizes = [16, 13], strides = [1, 1]} : vector<16x16xf32> to vector<16x13xf32>
    %460 = tpu.concatenate %458, %459 in 1 : vector<16x3xf32>, vector<16x13xf32> -> vector<16x16xf32>
    %461 = vector.extract_strided_slice %449 {offsets = [0, 15], sizes = [16, 1], strides = [1, 1]} : vector<16x16xf32> to vector<16x1xf32>
    %462 = vector.extract_strided_slice %449 {offsets = [0, 0], sizes = [16, 15], strides = [1, 1]} : vector<16x16xf32> to vector<16x15xf32>
    %463 = tpu.concatenate %461, %462 in 1 : vector<16x1xf32>, vector<16x15xf32> -> vector<16x16xf32>
    %464 = vector.extract_strided_slice %449 {offsets = [0, 1], sizes = [16, 15], strides = [1, 1]} : vector<16x16xf32> to vector<16x15xf32>
    %465 = vector.extract_strided_slice %449 {offsets = [0, 0], sizes = [16, 1], strides = [1, 1]} : vector<16x16xf32> to vector<16x1xf32>
    %466 = tpu.concatenate %464, %465 in 1 : vector<16x15xf32>, vector<16x1xf32> -> vector<16x16xf32>
    %467 = vector.extract_strided_slice %449 {offsets = [0, 3], sizes = [16, 13], strides = [1, 1]} : vector<16x16xf32> to vector<16x13xf32>
    %468 = vector.extract_strided_slice %449 {offsets = [0, 0], sizes = [16, 3], strides = [1, 1]} : vector<16x16xf32> to vector<16x3xf32>
    %469 = tpu.concatenate %467, %468 in 1 : vector<16x13xf32>, vector<16x3xf32> -> vector<16x16xf32>
    %470 = vector.extract_strided_slice %449 {offsets = [0, 4], sizes = [16, 12], strides = [1, 1]} : vector<16x16xf32> to vector<16x12xf32>
    %471 = vector.extract_strided_slice %449 {offsets = [0, 0], sizes = [16, 4], strides = [1, 1]} : vector<16x16xf32> to vector<16x4xf32>
    %472 = tpu.concatenate %470, %471 in 1 : vector<16x12xf32>, vector<16x4xf32> -> vector<16x16xf32>
    %473 = vector.extract_strided_slice %449 {offsets = [0, 5], sizes = [16, 11], strides = [1, 1]} : vector<16x16xf32> to vector<16x11xf32>
    %474 = vector.extract_strided_slice %449 {offsets = [0, 0], sizes = [16, 5], strides = [1, 1]} : vector<16x16xf32> to vector<16x5xf32>
    %475 = tpu.concatenate %473, %474 in 1 : vector<16x11xf32>, vector<16x5xf32> -> vector<16x16xf32>
    %476 = tpu.concatenate %454, %457, %460, %463, %449, %466, %469, %472, %475 in 0 : vector<16x16xf32>, vector<16x16xf32>, vector<16x16xf32>, vector<16x16xf32>, vector<16x16xf32>, vector<16x16xf32>, vector<16x16xf32>, vector<16x16xf32>, vector<16x16xf32> -> vector<144x16xf32>
    %cst_133 = arith.constant dense<0.000000e+00> : vector<16x16xf32>
    %477 = tpu.matmul %450, %476, %cst_133 {dimension_numbers = #tpu.dot_dimension_numbers<[1], [0], [0], [1], [0, 0, 1, 1], [], []>} : vector<16x144xf32>, vector<144x16xf32>, vector<16x16xf32> -> vector<16x16xf32>
    %478 = vector.extract_strided_slice %451 {offsets = [0, 0], sizes = [16, 1], strides = [1, 1]} : vector<16x3xf32> to vector<16x1xf32>
    %479 = vector.broadcast %478 : vector<16x1xf32> to vector<16x16xf32>
    %480 = arith.addf %477, %479 : vector<16x16xf32>
    %cst_134 = arith.constant 0.000000e+00 : f32
    %481 = vector.broadcast %cst_134 : f32 to vector<16x16xf32>
    %482 = arith.maximumf %480, %481 : vector<16x16xf32>
    %483 = vector.extract_strided_slice %451 {offsets = [0, 1], sizes = [16, 1], strides = [1, 1]} : vector<16x3xf32> to vector<16x1xf32>
    %484 = vector.broadcast %483 : vector<16x1xf32> to vector<16x16xf32>
    %485 = arith.mulf %482, %484 : vector<16x16xf32>
    %486 = vector.extract_strided_slice %451 {offsets = [0, 2], sizes = [16, 1], strides = [1, 1]} : vector<16x3xf32> to vector<16x1xf32>
    %487 = vector.broadcast %486 : vector<16x1xf32> to vector<16x16xf32>
    %488 = arith.addf %485, %487 : vector<16x16xf32>
    %c0_135 = arith.constant 0 : index
    %c0_136 = arith.constant 0 : index
    %489 = vector.load %arg40[%c0_135, %c0_136] : memref<16x4xf32, #tpu.memory_space<vmem>>, vector<16x4xf32>
    %cst_137 = arith.constant dense<0.000000e+00> : vector<16x4xf32>
    %490 = tpu.matmul %488, %489, %cst_137 {dimension_numbers = #tpu.dot_dimension_numbers<[1], [0], [0], [1], [0, 0, 1, 1], [], []>} : vector<16x16xf32>, vector<16x4xf32>, vector<16x4xf32> -> vector<16x4xf32>
    %c0_138 = arith.constant 0 : index
    %c0_139 = arith.constant 0 : index
    %c0_140 = arith.constant 0 : index
    %491 = vector.load %arg41[%c0_138, %c0_139, %c0_140] : memref<1x16x4xf32, #tpu.memory_space<vmem>>, vector<1x16x4xf32>
    %492 = vector.shape_cast %491 : vector<1x16x4xf32> to vector<16x4xf32>
    %493 = vector.shape_cast %490 : vector<16x4xf32> to vector<1x16x4xf32>
    tpu.vector_store %arg41[%c0_138, %c0_139, %c0_140], %493 {strides = array<i32>} : memref<1x16x4xf32, #tpu.memory_space<vmem>>, vector<1x16x4xf32>,
    return
  }
  func.func @transform_0(%arg0: i32) -> (i32, i32, i32) {
    %c0_i32 = arith.constant 0 : i32
    %c0_i32_0 = arith.constant 0 : i32
    %c0_i32_1 = arith.constant 0 : i32
    return %arg0, %c0_i32, %c0_i32_0 : i32, i32, i32
  }
  func.func @transform_1(%arg0: i32) -> (i32, i32) {
    %c0_i32 = arith.constant 0 : i32
    %c0_i32_0 = arith.constant 0 : i32
    %c0_i32_1 = arith.constant 0 : i32
    return %c0_i32, %c0_i32_0 : i32, i32
  }
  func.func @transform_2(%arg0: i32) -> (i32, i32) {
    %c0_i32 = arith.constant 0 : i32
    %c0_i32_0 = arith.constant 0 : i32
    %c0_i32_1 = arith.constant 0 : i32
    return %c0_i32, %c0_i32_0 : i32, i32
  }
  func.func @transform_3(%arg0: i32) -> (i32, i32) {
    %c0_i32 = arith.constant 0 : i32
    %c0_i32_0 = arith.constant 0 : i32
    %c0_i32_1 = arith.constant 0 : i32
    return %c0_i32, %c0_i32_0 : i32, i32
  }
  func.func @transform_4(%arg0: i32) -> (i32, i32) {
    %c0_i32 = arith.constant 0 : i32
    %c0_i32_0 = arith.constant 0 : i32
    %c0_i32_1 = arith.constant 0 : i32
    return %c0_i32, %c0_i32_0 : i32, i32
  }
  func.func @transform_5(%arg0: i32) -> (i32, i32) {
    %c0_i32 = arith.constant 0 : i32
    %c0_i32_0 = arith.constant 0 : i32
    %c0_i32_1 = arith.constant 0 : i32
    return %c0_i32, %c0_i32_0 : i32, i32
  }
  func.func @transform_6(%arg0: i32) -> (i32, i32) {
    %c0_i32 = arith.constant 0 : i32
    %c0_i32_0 = arith.constant 0 : i32
    %c0_i32_1 = arith.constant 0 : i32
    return %c0_i32, %c0_i32_0 : i32, i32
  }
  func.func @transform_7(%arg0: i32) -> (i32, i32) {
    %c0_i32 = arith.constant 0 : i32
    %c0_i32_0 = arith.constant 0 : i32
    %c0_i32_1 = arith.constant 0 : i32
    return %c0_i32, %c0_i32_0 : i32, i32
  }
  func.func @transform_8(%arg0: i32) -> (i32, i32) {
    %c0_i32 = arith.constant 0 : i32
    %c0_i32_0 = arith.constant 0 : i32
    %c0_i32_1 = arith.constant 0 : i32
    return %c0_i32, %c0_i32_0 : i32, i32
  }
  func.func @transform_9(%arg0: i32) -> (i32, i32) {
    %c0_i32 = arith.constant 0 : i32
    %c0_i32_0 = arith.constant 0 : i32
    %c0_i32_1 = arith.constant 0 : i32
    return %c0_i32, %c0_i32_0 : i32, i32
  }
  func.func @transform_10(%arg0: i32) -> (i32, i32) {
    %c0_i32 = arith.constant 0 : i32
    %c0_i32_0 = arith.constant 0 : i32
    %c0_i32_1 = arith.constant 0 : i32
    return %c0_i32, %c0_i32_0 : i32, i32
  }
  func.func @transform_11(%arg0: i32) -> (i32, i32) {
    %c0_i32 = arith.constant 0 : i32
    %c0_i32_0 = arith.constant 0 : i32
    %c0_i32_1 = arith.constant 0 : i32
    return %c0_i32, %c0_i32_0 : i32, i32
  }
  func.func @transform_12(%arg0: i32) -> (i32, i32) {
    %c0_i32 = arith.constant 0 : i32
    %c0_i32_0 = arith.constant 0 : i32
    %c0_i32_1 = arith.constant 0 : i32
    return %c0_i32, %c0_i32_0 : i32, i32
  }
  func.func @transform_13(%arg0: i32) -> (i32, i32) {
    %c0_i32 = arith.constant 0 : i32
    %c0_i32_0 = arith.constant 0 : i32
    %c0_i32_1 = arith.constant 0 : i32
    return %c0_i32, %c0_i32_0 : i32, i32
  }
  func.func @transform_14(%arg0: i32) -> (i32, i32) {
    %c0_i32 = arith.constant 0 : i32
    %c0_i32_0 = arith.constant 0 : i32
    %c0_i32_1 = arith.constant 0 : i32
    return %c0_i32, %c0_i32_0 : i32, i32
  }
  func.func @transform_15(%arg0: i32) -> (i32, i32) {
    %c0_i32 = arith.constant 0 : i32
    %c0_i32_0 = arith.constant 0 : i32
    %c0_i32_1 = arith.constant 0 : i32
    return %c0_i32, %c0_i32_0 : i32, i32
  }
  func.func @transform_16(%arg0: i32) -> (i32, i32) {
    %c0_i32 = arith.constant 0 : i32
    %c0_i32_0 = arith.constant 0 : i32
    %c0_i32_1 = arith.constant 0 : i32
    return %c0_i32, %c0_i32_0 : i32, i32
  }
  func.func @transform_17(%arg0: i32) -> (i32, i32) {
    %c0_i32 = arith.constant 0 : i32
    %c0_i32_0 = arith.constant 0 : i32
    %c0_i32_1 = arith.constant 0 : i32
    return %c0_i32, %c0_i32_0 : i32, i32
  }
  func.func @transform_18(%arg0: i32) -> (i32, i32) {
    %c0_i32 = arith.constant 0 : i32
    %c0_i32_0 = arith.constant 0 : i32
    %c0_i32_1 = arith.constant 0 : i32
    return %c0_i32, %c0_i32_0 : i32, i32
  }
  func.func @transform_19(%arg0: i32) -> (i32, i32) {
    %c0_i32 = arith.constant 0 : i32
    %c0_i32_0 = arith.constant 0 : i32
    %c0_i32_1 = arith.constant 0 : i32
    return %c0_i32, %c0_i32_0 : i32, i32
  }
  func.func @transform_20(%arg0: i32) -> (i32, i32) {
    %c0_i32 = arith.constant 0 : i32
    %c0_i32_0 = arith.constant 0 : i32
    %c0_i32_1 = arith.constant 0 : i32
    return %c0_i32, %c0_i32_0 : i32, i32
  }
  func.func @transform_21(%arg0: i32) -> (i32, i32) {
    %c0_i32 = arith.constant 0 : i32
    %c0_i32_0 = arith.constant 0 : i32
    %c0_i32_1 = arith.constant 0 : i32
    return %c0_i32, %c0_i32_0 : i32, i32
  }
  func.func @transform_22(%arg0: i32) -> (i32, i32) {
    %c0_i32 = arith.constant 0 : i32
    %c0_i32_0 = arith.constant 0 : i32
    %c0_i32_1 = arith.constant 0 : i32
    return %c0_i32, %c0_i32_0 : i32, i32
  }
  func.func @transform_23(%arg0: i32) -> (i32, i32) {
    %c0_i32 = arith.constant 0 : i32
    %c0_i32_0 = arith.constant 0 : i32
    %c0_i32_1 = arith.constant 0 : i32
    return %c0_i32, %c0_i32_0 : i32, i32
  }
  func.func @transform_24(%arg0: i32) -> (i32, i32) {
    %c0_i32 = arith.constant 0 : i32
    %c0_i32_0 = arith.constant 0 : i32
    %c0_i32_1 = arith.constant 0 : i32
    return %c0_i32, %c0_i32_0 : i32, i32
  }
  func.func @transform_25(%arg0: i32) -> (i32, i32) {
    %c0_i32 = arith.constant 0 : i32
    %c0_i32_0 = arith.constant 0 : i32
    %c0_i32_1 = arith.constant 0 : i32
    return %c0_i32, %c0_i32_0 : i32, i32
  }
  func.func @transform_26(%arg0: i32) -> (i32, i32) {
    %c0_i32 = arith.constant 0 : i32
    %c0_i32_0 = arith.constant 0 : i32
    %c0_i32_1 = arith.constant 0 : i32
    return %c0_i32, %c0_i32_0 : i32, i32
  }
  func.func @transform_27(%arg0: i32) -> (i32, i32) {
    %c0_i32 = arith.constant 0 : i32
    %c0_i32_0 = arith.constant 0 : i32
    %c0_i32_1 = arith.constant 0 : i32
    return %c0_i32, %c0_i32_0 : i32, i32
  }
  func.func @transform_28(%arg0: i32) -> (i32, i32) {
    %c0_i32 = arith.constant 0 : i32
    %c0_i32_0 = arith.constant 0 : i32
    %c0_i32_1 = arith.constant 0 : i32
    return %c0_i32, %c0_i32_0 : i32, i32
  }
  func.func @transform_29(%arg0: i32) -> (i32, i32) {
    %c0_i32 = arith.constant 0 : i32
    %c0_i32_0 = arith.constant 0 : i32
    %c0_i32_1 = arith.constant 0 : i32
    return %c0_i32, %c0_i32_0 : i32, i32
  }
  func.func @transform_30(%arg0: i32) -> (i32, i32) {
    %c0_i32 = arith.constant 0 : i32
    %c0_i32_0 = arith.constant 0 : i32
    %c0_i32_1 = arith.constant 0 : i32
    return %c0_i32, %c0_i32_0 : i32, i32
  }
  func.func @transform_31(%arg0: i32) -> (i32, i32) {
    %c0_i32 = arith.constant 0 : i32
    %c0_i32_0 = arith.constant 0 : i32
    %c0_i32_1 = arith.constant 0 : i32
    return %c0_i32, %c0_i32_0 : i32, i32
  }
  func.func @transform_32(%arg0: i32) -> (i32, i32) {
    %c0_i32 = arith.constant 0 : i32
    %c0_i32_0 = arith.constant 0 : i32
    %c0_i32_1 = arith.constant 0 : i32
    return %c0_i32, %c0_i32_0 : i32, i32
  }
  func.func @transform_33(%arg0: i32) -> (i32, i32) {
    %c0_i32 = arith.constant 0 : i32
    %c0_i32_0 = arith.constant 0 : i32
    %c0_i32_1 = arith.constant 0 : i32
    return %c0_i32, %c0_i32_0 : i32, i32
  }
  func.func @transform_34(%arg0: i32) -> (i32, i32) {
    %c0_i32 = arith.constant 0 : i32
    %c0_i32_0 = arith.constant 0 : i32
    %c0_i32_1 = arith.constant 0 : i32
    return %c0_i32, %c0_i32_0 : i32, i32
  }
  func.func @transform_35(%arg0: i32) -> (i32, i32) {
    %c0_i32 = arith.constant 0 : i32
    %c0_i32_0 = arith.constant 0 : i32
    %c0_i32_1 = arith.constant 0 : i32
    return %c0_i32, %c0_i32_0 : i32, i32
  }
  func.func @transform_36(%arg0: i32) -> (i32, i32) {
    %c0_i32 = arith.constant 0 : i32
    %c0_i32_0 = arith.constant 0 : i32
    %c0_i32_1 = arith.constant 0 : i32
    return %c0_i32, %c0_i32_0 : i32, i32
  }
  func.func @transform_37(%arg0: i32) -> (i32, i32) {
    %c0_i32 = arith.constant 0 : i32
    %c0_i32_0 = arith.constant 0 : i32
    %c0_i32_1 = arith.constant 0 : i32
    return %c0_i32, %c0_i32_0 : i32, i32
  }
  func.func @transform_38(%arg0: i32) -> (i32, i32) {
    %c0_i32 = arith.constant 0 : i32
    %c0_i32_0 = arith.constant 0 : i32
    %c0_i32_1 = arith.constant 0 : i32
    return %c0_i32, %c0_i32_0 : i32, i32
  }
  func.func @transform_39(%arg0: i32) -> (i32, i32) {
    %c0_i32 = arith.constant 0 : i32
    %c0_i32_0 = arith.constant 0 : i32
    %c0_i32_1 = arith.constant 0 : i32
    return %c0_i32, %c0_i32_0 : i32, i32
  }
  func.func @transform_40(%arg0: i32) -> (i32, i32, i32) {
    %c0_i32 = arith.constant 0 : i32
    %c0_i32_0 = arith.constant 0 : i32
    %c0_i32_1 = arith.constant 0 : i32
    return %arg0, %c0_i32, %c0_i32_0 : i32, i32, i32
  }
}

</mosaic_0001>

<bundles_post_ra>
// kernel: vgg_backbone_bn_forward.1
= control target key start
LH: loop header
LB: loop body
LE: loop exit
PB: predicated region body
PF: predicated region fallthrough
CT: control target
= control target key end

     0   :  { %s6349_s6 = smov 1   ;;  %s6350_s10 = smov 2   ;;  %s7660_s0 = inlined_call_operand.smem [shape: u32[41], index: -1, kind: input, shape index: {}] }
   0x1   :  { %s6458_s5 = sld [smem:[%s7660_s0]]   ;;  %s6351_s14 = smov 3  }
   0x2   :  { %s6463_s9 = sld [smem:[%s7660_s0 + %s6349_s6]]   ;;  %s6352_s18 = smov 4  }
   0x3   :  { %s6468_s13 = sld [smem:[%s7660_s0 + %s6350_s10]]   ;;  %s6353_s22 = smov 5  }
   0x4   :  { %s6473_s17 = sld [smem:[%s7660_s0 + %s6351_s14]]   ;;  %s6354_s26 = smov 6  }
   0x5   :  { %s6478_s21 = sld [smem:[%s7660_s0 + %s6352_s18]]   ;;  %s6355_s30 = smov 7  }
   0x6   :  { %s6483_s25 = sld [smem:[%s7660_s0 + %s6353_s22]]   ;;  %s6356_s4 = smov 8  }
   0x7   :  { %7747 = sst [smem:[#allocation2_spill]] %s6458_s5  ;;  %s6357_s10 = smov 9  }
   0x8   :  { %s6488_s29 = sld [smem:[%s7660_s0 + %s6354_s26]]   ;;  %s6358_s15 = smov 10  }
   0x9   :  { %7748 = sst [smem:[#allocation3_spill]] %s6468_s13  ;;  %s6359_s20 = smov 11  }
   0xa   :  { %s6493_s3 = sld [smem:[%s7660_s0 + %s6355_s30]]   ;;  %s6360_s26 = smov 12  }
   0xb   :  { %s6498_s8 = sld [smem:[%s7660_s0 + %s6356_s4]]   ;;  %s6361_s1 = smov 13  }
   0xc   :  { %s6503_s14 = sld [smem:[%s7660_s0 + %s6357_s10]]   ;;  %s6362_s7 = smov 14  }
   0xd   :  { %s6508_s19 = sld [smem:[%s7660_s0 + %s6358_s15]]   ;;  %s6363_s15 = smov 15  }
   0xe   :  { %s6513_s24 = sld [smem:[%s7660_s0 + %s6359_s20]]   ;;  %s6364_s22 = smov 16  }
   0xf   :  { %s6518_s30 = sld [smem:[%s7660_s0 + %s6360_s26]]   ;;  %s6365_s28 = smov 17  }
  0x10   :  { %7749 = sst [smem:[#allocation4_spill]] %s6493_s3 }
  0x11   :  { %7750 = sst [smem:[#allocation5_spill]] %s6498_s8 }
  0x12   :  { %7751 = sst [smem:[#allocation6_spill]] %s6503_s14 }
  0x13   :  { %s6523_s6 = sld [smem:[%s7660_s0 + %s6361_s1]]  }
  0x14   :  { %s6528_s12 = sld [smem:[%s7660_s0 + %s6362_s7]]   ;;  %s6366_s7 = smov 18  }
  0x15   :  { %s6533_s20 = sld [smem:[%s7660_s0 + %s6363_s15]]   ;;  %s6367_s15 = smov 19  }
  0x16   :  { %s6538_s27 = sld [smem:[%s7660_s0 + %s6364_s22]]   ;;  %s6368_s22 = smov 20  }
  0x17   :  { %s6543_s4 = sld [smem:[%s7660_s0 + %s6365_s28]]   ;;  %s6369_s28 = smov 21  }
  0x19   :  { %7752 = sst [smem:[#allocation7_spill]] %s6523_s6 }
  0x1a   :  { %7753 = sst [smem:[#allocation8_spill]] %s6528_s12 }
  0x1b   :  { %7754 = sst [smem:[#allocation9_spill]] %s6533_s20 }
  0x1c   :  { %7755 = sst [smem:[#allocation10_spill]] %s6538_s27 }
  0x1d   :  { %7756 = sst [smem:[#allocation11_spill]] %s6543_s4 }
  0x1e   :  { %s6548_s6 = sld [smem:[%s7660_s0 + %s6366_s7]]   ;;  %s6370_s7 = smov 22  }
  0x1f   :  { %s6553_s20 = sld [smem:[%s7660_s0 + %s6367_s15]]   ;;  %s6371_s15 = smov 23  }
  0x20   :  { %s6558_s27 = sld [smem:[%s7660_s0 + %s6368_s22]]   ;;  %s6372_s22 = smov 24  }
  0x21   :  { %s6563_s4 = sld [smem:[%s7660_s0 + %s6369_s28]]   ;;  %s6373_s28 = smov 25  }
  0x24   :  { %7757 = sst [smem:[#allocation12_spill]] %s6548_s6 }
  0x25   :  { %7758 = sst [smem:[#allocation13_spill]] %s6553_s20 }
  0x26   :  { %7759 = sst [smem:[#allocation14_spill]] %s6558_s27 }
  0x27   :  { %7760 = sst [smem:[#allocation15_spill]] %s6563_s4 }
  0x28   :  { %s6568_s6 = sld [smem:[%s7660_s0 + %s6370_s7]]   ;;  %s6374_s7 = smov 26  }
  0x29   :  { %s6573_s20 = sld [smem:[%s7660_s0 + %s6371_s15]]   ;;  %s6375_s15 = smov 27  }
  0x2a   :  { %s6578_s27 = sld [smem:[%s7660_s0 + %s6372_s22]]   ;;  %s6376_s22 = smov 28  }
  0x2b   :  { %s6583_s4 = sld [smem:[%s7660_s0 + %s6373_s28]]   ;;  %s6377_s28 = smov 29  }
  0x2e   :  { %7761 = sst [smem:[#allocation16_spill]] %s6568_s6 }
  0x2f   :  { %7762 = sst [smem:[#allocation17_spill]] %s6573_s20 }
  0x30   :  { %7763 = sst [smem:[#allocation18_spill]] %s6578_s27 }
  0x31   :  { %7764 = sst [smem:[#allocation19_spill]] %s6583_s4 }
  0x32   :  { %s6588_s6 = sld [smem:[%s7660_s0 + %s6374_s7]]   ;;  %s6378_s7 = smov 30  }
  0x33   :  { %s6593_s20 = sld [smem:[%s7660_s0 + %s6375_s15]]   ;;  %s6379_s15 = smov 31  }
  0x34   :  { %s6598_s27 = sld [smem:[%s7660_s0 + %s6376_s22]]   ;;  %s6380_s22 = smov 32  }
  0x35   :  { %s6603_s4 = sld [smem:[%s7660_s0 + %s6377_s28]]   ;;  %s6381_s28 = smov 33  }
  0x38   :  { %7765 = sst [smem:[#allocation20_spill]] %s6588_s6 }
  0x39   :  { %7766 = sst [smem:[#allocation21_spill]] %s6593_s20 }
  0x3a   :  { %7767 = sst [smem:[#allocation22_spill]] %s6598_s27 }
  0x3b   :  { %7768 = sst [smem:[#allocation23_spill]] %s6603_s4 }
  0x3c   :  { %s6608_s6 = sld [smem:[%s7660_s0 + %s6378_s7]]   ;;  %s6382_s7 = smov 34  }
  0x3d   :  { %s6613_s20 = sld [smem:[%s7660_s0 + %s6379_s15]]   ;;  %s6383_s15 = smov 35  }
  0x3e   :  { %s6618_s27 = sld [smem:[%s7660_s0 + %s6380_s22]]   ;;  %s6384_s22 = smov 36  }
  0x3f   :  { %s6623_s4 = sld [smem:[%s7660_s0 + %s6381_s28]]   ;;  %s6385_s28 = smov 37  }
  0x42   :  { %7769 = sst [smem:[#allocation24_spill]] %s6608_s6 }
  0x43   :  { %7770 = sst [smem:[#allocation25_spill]] %s6613_s20 }
  0x44   :  { %7771 = sst [smem:[#allocation26_spill]] %s6618_s27 }
  0x45   :  { %7772 = sst [smem:[#allocation27_spill]] %s6623_s4 }
  0x46   :  { %s6628_s6 = sld [smem:[%s7660_s0 + %s6382_s7]]   ;;  %s6386_s7 = smov 38  }
  0x47   :  { %s6633_s20 = sld [smem:[%s7660_s0 + %s6383_s15]]   ;;  %s6387_s15 = smov 39  }
  0x48   :  { %s6638_s27 = sld [smem:[%s7660_s0 + %s6384_s22]]   ;;  %s6388_s22 = smov 40  }
  0x49   :  { %s6643_s4 = sld [smem:[%s7660_s0 + %s6385_s28]]   ;;  %s6660_s28 = smov 0  }
  0x4c   :  { %7773 = sst [smem:[#allocation28_spill]] %s6628_s6 }
  0x4d   :  { %7774 = sst [smem:[#allocation29_spill]] %s6633_s20 }
  0x4e   :  { %7775 = sst [smem:[#allocation30_spill]] %s6638_s27 }
  0x4f   :  { %s6648_s6 = sld [smem:[%s7660_s0 + %s6386_s7]]  }
  0x50   :  { %s6653_s20 = sld [smem:[%s7660_s0 + %s6387_s15]]  }
  0x51   :  { %s6658_s27 = sld [smem:[%s7660_s0 + %s6388_s22]]  }
  0x52 LB: > { %s7776_s3 = sld [smem:[#allocation4_spill]]  ;;  %s5011_s1 = sadd.s32 4294967295, %s6347_s28   ;;  %s6347_s28 = sphi %s6660_s28, %s91_s28  }
  0x53   : > { %p5015_p0 = scmp.ge.s32.totalorder %s6347_s28, 1  ;;  %p1103_p1 = scmp.lt.s32.totalorder %s6347_s28, 3 }
  0x55   : > { %p1104_p2 = pnand %p5015_p0, %p1103_p1 }
  0x56   : > { %p1201_p3 = scmp.lt.s32.totalorder (!%p1104_p2), %s5011_s1, 1  ;;  %s7777_s5 = sld [smem:[#allocation2_spill]] (!%p1104_p2)  ;;  %v6389_v3 = vmov (!%p1104_p2), 0.0|0.0   ;;  %v6403_v6 = vmov (!%p1104_p2), 0.0   ;;  %vm7732_vm0 = vmmov (!%p1104_p2), 0   ;;  %v6406_v7 = vmov (!%p1104_p2), 1  }
  0x57   : > { %1107 = sbr.rel (%p1104_p2) target bundleno = 6455 (0x1937), region = 180  ;;  %5573 = vmatprep.subr.bf16.mxu1 (!%p1104_p2), %v6389_v3  ;;  %s6390_s7 = smov (!%p1104_p2), 79   ;;  %1426 = vmatprep.mubr.f32.mxu0 (!%p1104_p2), %v6403_v6  ;;  %v6407_v8 = vmov (!%p1104_p2), 0   ;;  %v1217_v9 = vld [vmem:[%s6473_s17] sm:$0xff] (!%p1104_p2)  ;;  %v6410_v10 = vmov (!%p1104_p2), 2   ;;  %vm1246_vm1 = vcmask (!%p1104_p2), 146432  }
  0x58   : > { %s6391_s10 = smov (!%p1104_p2), 19   ;;  %s6392_s11 = smov (!%p1104_p2), 78   ;;  %5296 = vmatprep.mubr.msk.f32.mxu1 (!%p1104_p2), %vm7732_vm0, %v6403_v6  ;;  %6032 = vset.pattern.permute.xlu0 (!%p1104_p2), %v6406_v7  ;;  %vm1230_vm2 = vcmask (!%p1104_p2), 154624   ;;  %vm7686_vm3 = vcmask (!%p1104_p2), 7168   ;;  %vm1262_vm4 = vcmask (!%p1104_p2), 138240   ;;  %vm1291_vm5 = vcmask (!%p1104_p2), 1039360  }
  0x59   : > { %s6393_s15 = smov (!%p1104_p2), 18   ;;  %s7677_s16 = smov (!%p1104_p2), 1   ;;  %6031 = vset.pattern.permute.xlu1 (!%p1104_p2), %v6407_v8  ;;  %vm1300_vm6 = vcmask (!%p1104_p2), 547840   ;;  %vm1308_vm7 = vcmask (!%p1104_p2), 908288   ;;  %vm1325_vm8 = vcmask (!%p1104_p2), 900096   ;;  %vm1317_vm9 = vcmask (!%p1104_p2), 416768  }
  0x5a   : > { %s7675_s18 = smov (!%p1104_p2), 17   ;;  %s6396_s22 = smov (!%p1104_p2), 61   ;;  %vm1334_vm10 = vcmask (!%p1104_p2), 408576   ;;  %vm1342_vm11 = vcmask (!%p1104_p2), 891904   ;;  %vm7685_vm12 = vcmask (!%p1104_p2), 588800   ;;  %vm1351_vm13 = vcmask (!%p1104_p2), 400384  }
  0x5b   : > { %s6397_s23 = smov (!%p1104_p2), 77   ;;  %s7679_s26 = smov (!%p1104_p2), 127   ;;  %vm7731_vm14 = vcmask (!%p1104_p2), 130048  }
  0x5c   : > { %s7778_s13 = sld [smem:[#allocation3_spill]] (!%p1104_p2)  ;;  %s7784_s14 = sld [smem:[#allocation6_spill]] (!%p1104_p2) }
  0x5d   : > { %s7794_s8 = sld [smem:[#allocation5_spill]] (!%p1104_p2)  ;;  %s7797_s12 = sld [smem:[#allocation8_spill]] (!%p1104_p2) }
  0x5e   : > { %s7898_s1 = smov (!%p1201_p3, %s5011_s1), 1 }
  0x5f   : > { %s5886_s0 = smul.u32 24, %s7898_s1 }
  0x61   : > { %s1205_s2 = scalar_lea.vmem %s7777_s5, %s5886_s0  ;;  %s7682_s0 = smov 111  }
  0x62   : > { %v6672_v0 = vld [vmem:[%s1205_s2 + $0x10] sm:$0xff]  ;;  %v6674_v1 = vld [vmem:[%s1205_s2] sm:$0xff]  ;;  %v6676_v2 = vld [vmem:[%s1205_s2 + $0x8] sm:$0xff]  ;;  %s7684_s2 = smov 67   ;;  %s7810_s5 = smov 90  }
  0x63   : > { %1219 = vrot.lane.b32.xlu1 %v6672_v0, %s6390_s7  ;;  %v5996_v4 = vpack.i.bf16 %v6676_v2, %v6674_v1  ;;  %v6016_v5 = vpack.i.bf16 %v6672_v0, %v6676_v2 }
  0x65   : > { %5997 = vrot.lane.b32.xlu0 %v5996_v4, %s6391_s10 }
  0x67   : > { %1237 = vrot.lane.b32.xlu1 %v6672_v0, %s6392_s11 }
  0x69   : > { %6002 = vrot.lane.b32.xlu0 %v5996_v4, %s6393_s15 }
  0x6b   : > { %1244 = vrot.lane.b32.xlu1 %v6672_v0, %s6393_s15 }
  0x6d   : > { %1228 = vrot.lane.b32.xlu0 %v6672_v0, %s6391_s10 }
  0x6f   : > { %6012 = vrot.lane.b32.xlu1 %v5996_v4, %s7677_s16 }
  0x71   : > { %6007 = vrot.lane.b32.xlu0 %v5996_v4, %s7675_s18 }
  0x73   : > { %1269 = vrot.lane.b32.xlu1 %v6672_v0, %s6396_s22 }
  0x75   : > { %1253 = vrot.lane.b32.xlu0 %v6672_v0, %s6397_s23 }
  0x77   : > { %1276 = vrot.lane.b32.xlu1 %v6672_v0, %s7677_s16  ;;  %s7681_s16 = smov 51  }
  0x79   : > { %1260 = vrot.lane.b32.xlu0 %v6672_v0, %s7675_s18  ;;  %s6401_s18 = smov 110  }
  0x7b   : > { %1285 = vrot.lane.b32.xlu1 %v6674_v1, %s7679_s26 }
  0x7d   : > { %6017 = vrot.lane.b32.xlu0 %v6016_v5, %s7679_s26  ;;  %s6405_s26 = smov 109  }
  0x7f   : > { %6022 = vrot.lane.b32.xlu1 %v6016_v5, %s7682_s0 }
  0x81   : > { %1297 = vrot.lane.b32.xlu0 %v6674_v1, %s7684_s2 }
  0x83   : > { %1302 = vrot.lane.b32.xlu1 %v6674_v1, %s7682_s0  ;;  %s6409_s0 = smov 49  }
  0x85   : > { %6027 = vrot.lane.b32.xlu0 %v6016_v5, %s6401_s18 }
  0x87   : > { %1314 = vrot.lane.b32.xlu1 %v6674_v1, %s7681_s16  ;;  %s6408_s16 = smov 50  }
  0x89   : > { %1319 = vrot.lane.b32.xlu0 %v6674_v1, %s6401_s18 }
  0x8b   : > { %1338 = vrot.lane.b32.xlu1 %v6676_v2, %s6405_s26 }
  0x8d   : > { %1331 = vrot.lane.b32.xlu0 %v6674_v1, %s6408_s16 }
  0x8f   : > { %1336 = vrot.lane.b32.xlu1 %v6674_v1, %s6405_s26 }
  0x91   : > { %1340 = vrot.lane.b32.xlu0 %v6672_v0, %s6405_s26 }
  0x93   : > { %1355 = vperm.xlu1 %6031, %v1217_v9  }
  0x95   : > { %1348 = vrot.lane.b32.xlu0 %v6674_v1, %s6409_s0 }
  0x97   : > { %6033 = vset.pattern.permute.xlu1 %v6410_v10 }
  0x98   : > { %1514 = vperm.xlu1 %6033, %v1217_v9  }
  0x99   : > { %1507 = vperm.xlu0 %6032, %v1217_v9  }
  0x9c   : > { %6070 = vset.pattern.permute.xlu1 %v6406_v7 }
  0x9d   : > { %6069 = vset.pattern.permute.xlu0 %v6407_v8 }
  0xd5   : > { %v1220_v11 = vpop.permute.xlu1 %1219 }
  0xd7   : > { %v5998_v12 = vpop.permute.xlu0 %5997 }
  0xd8   : > { %v6000_v14 = vunpack.i.h.bf16 %v5998_v12  ;;  %v5999_v15 = vunpack.i.l.bf16 %v5998_v12 }
  0xd9   : > { %v1238_v13 = vpop.permute.xlu1 %1237 }
  0xda   : > { %v1231_v20 = vsel %vm1230_vm2, %v5999_v15, %v6000_v14  ;;  %v1236_v22 = vsel %vm1230_vm2, %v1220_v11, %v5999_v15 }
  0xdb   : > { %v6003_v16 = vpop.permute.xlu0 %6002 }
  0xdc   : > { %v6005_v17 = vunpack.i.h.bf16 %v6003_v16  ;;  %v6004_v18 = vunpack.i.l.bf16 %v6003_v16 }
  0xdd   : > { %v1245_v19 = vpop.permute.xlu1 %1244 }
  0xde   : > { %v1247_v21 = vsel %vm1246_vm1, %v6004_v18, %v6005_v17  ;;  %v1252_v23 = vsel %vm1246_vm1, %v1238_v13, %v6004_v18  ;;  %v1248_v27 = vsel %vm1246_vm1, %v6005_v17, %v1245_v19 }
  0xdf   : > { %v1229_v24 = vpop.permute.xlu0 %1228  ;;  %v5557_v25 = vpack.c.bf16 %v1247_v21, %v1231_v20  ;;  %v5559_v26 = vpack.c.bf16 %v1252_v23, %v1236_v22 }
  0xe0   : > { %v1232_v28 = vsel %vm1230_vm2, %v6000_v14, %v1229_v24 }
  0xe1   : > { %5558 = vmatprep.subr.bf16.mxu0 %v5557_v25  ;;  %v6013_v29 = vpop.permute.xlu1 %6012  ;;  %v5574_v30 = vpack.c.bf16 %v1248_v27, %v1232_v28  ;;  %v1216_v25 = vld [vmem:[%s7778_s13] sm:$0xff]  ;;  %v1522_v28 = vlaneseq  ;;  %s7838_s13 = smov 35  }
  0xe2   : > { %5560 = vmatpush1.bf16.msra.mxu0 %v5559_v26  ;;  %v6015_v31 = vunpack.i.h.bf16 %v6013_v29  ;;  %v6014_v32 = vunpack.i.l.bf16 %v6013_v29 }
  0xe3   : > { %v6008_v33 = vpop.permute.xlu0 %6007  ;;  %5575 = vmatpush3.bf16.msra.mxu1 %v5574_v30  ;;  %v6773_v29 = vshrl.u32 %v1522_v28, 7 }
  0xe4   : > { %v6010_v34 = vunpack.i.h.bf16 %v6008_v33  ;;  %v6009_v35 = vunpack.i.l.bf16 %v6008_v33  ;;  %v1279_v36 = vsel %vm7686_vm3, %v6014_v32, %v6015_v31  ;;  %5576 = vmatprep.subr.bf16.mxu1 %v6389_v3 }
  0xe5   : > { %v1270_v37 = vpop.permute.xlu1 %1269 }
  0xe6   : > { %v1284_v38 = vsel %vm7686_vm3, %v1270_v37, %v6014_v32  ;;  %v1263_v39 = vsel %vm1262_vm4, %v6009_v35, %v6010_v34 }
  0xe7   : > { %v1254_v40 = vpop.permute.xlu0 %1253  ;;  %v5561_v41 = vpack.c.bf16 %v1279_v36, %v1263_v39 }
  0xe8   : > { %v1268_v42 = vsel %vm1262_vm4, %v1254_v40, %v6009_v35 }
  0xe9   : > { %v5563_v43 = vpack.c.bf16 %v1284_v38, %v1268_v42  ;;  %5562 = vmatprep.subr.bf16.mxu0 %v5561_v41  ;;  %v1277_v44 = vpop.permute.xlu1 %1276 }
  0xea   : > { %v1280_v45 = vsel %vm7686_vm3, %v6015_v31, %v1277_v44  ;;  %v1524_v31 = vsub.s32 0, %v6773_v29 }
  0xeb   : > { %v1261_v46 = vpop.permute.xlu0 %1260  ;;  %5564 = vmatpush1.bf16.msra.mxu0 %v5563_v43 }
  0xec   : > { %v1264_v47 = vsel %vm1262_vm4, %v6010_v34, %v1261_v46  ;;  %v1212_v34 = vld [vmem:[%s6463_s9 + $0x8] sm:$0xf] }
  0xed   : > { %v5577_v48 = vpack.c.bf16 %v1280_v45, %v1264_v47  ;;  %v1286_v49 = vpop.permute.xlu1 %1285  ;;  %v1533_v38 = vrot.slane %v1212_v34, %v1524_v31 }
  0xef   : > { %v6018_v50 = vpop.permute.xlu0 %6017  ;;  %5578 = vmatpush3.bf16.msra.mxu1 %v5577_v48  ;;  %v1548_v43 = vrot.slane %v1533_v38, %v1524_v31 }
  0xf0   : > { %v6020_v51 = vunpack.i.h.bf16 %v6018_v50  ;;  %v6019_v52 = vunpack.i.l.bf16 %v6018_v50  ;;  %5579 = vmatprep.subr.bf16.mxu1 %v6389_v3 }
  0xf1   : > { %v6023_v53 = vpop.permute.xlu1 %6022 }
  0xf2   : > { %v1293_v54 = vsel %vm1291_vm5, %v6019_v52, %v6020_v51  ;;  %v1292_v55 = vsel %vm1291_vm5, %v1286_v49, %v6019_v52  ;;  %v6025_v59 = vunpack.i.h.bf16 %v6023_v53  ;;  %v6024_v60 = vunpack.i.l.bf16 %v6023_v53  ;;  %v1211_v49 = vld [vmem:[%s6463_s9] sm:$0xff] }
  0xf3   : > { %v1298_v56 = vpop.permute.xlu0 %1297  ;;  %v5565_v57 = vpack.c.bf16 %v1293_v54, %v6676_v2  ;;  %v5567_v58 = vpack.c.bf16 %v1292_v55, %v6674_v1  ;;  %v1525_v52 = vrot.slane %v1211_v49, %v1524_v31  ;;  %v1528_v53 = vsub.s32 4, %v6773_v29 }
  0xf4   : > { %v1301_v61 = vsel %vm1300_vm6, %v6020_v51, %v1298_v56  ;;  %v1310_v11 = vsel %vm1308_vm7, %v6024_v60, %v6025_v59 }
  0xf5   : > { %v5580_v62 = vpack.c.bf16 %v1301_v61, %v6672_v0  ;;  %5566 = vmatprep.subr.bf16.mxu0 %v5565_v57  ;;  %v1303_v63 = vpop.permute.xlu1 %1302  ;;  %v1529_v55 = vrot.slane %v1211_v49, %v1528_v53  ;;  %v1540_v56 = vrot.slane %v1525_v52, %v1524_v31 }
  0xf6   : > { %5568 = vmatpush1.bf16.msra.mxu0 %v5567_v58  ;;  %v1309_v2 = vsel %vm1308_vm7, %v1303_v63, %v6024_v60 }
  0xf7   : > { %v6028_v4 = vpop.permute.xlu0 %6027  ;;  %5581 = vmatpush3.bf16.msra.mxu1 %v5580_v62  ;;  %v1544_v58 = vrot.slane %v1529_v55, %v1524_v31 }
  0xf8   : > { %v6030_v5 = vunpack.i.h.bf16 %v6028_v4  ;;  %v6029_v9 = vunpack.i.l.bf16 %v6028_v4  ;;  %5582 = vmatprep.subr.bf16.mxu1 %v6389_v3  ;;  %v1553_v4 = vld [vmem:[%s6483_s25] sm:$0xff] }
  0xf9   : > { %v1315_v1 = vpop.permute.xlu1 %1314 }
  0xfa   : > { %v1327_v12 = vsel %vm1325_vm8, %v6029_v9, %v6030_v5  ;;  %v1318_v18 = vsel %vm1317_vm9, %v6025_v59, %v1315_v1 }
  0xfb   : > { %v1320_v13 = vpop.permute.xlu0 %1319  ;;  %v5569_v0 = vpack.c.bf16 %v1327_v12, %v1310_v11 }
  0xfc   : > { %v1326_v14 = vsel %vm1325_vm8, %v1320_v13, %v6029_v9 }
  0xfd   : > { %v5571_v15 = vpack.c.bf16 %v1326_v14, %v1309_v2  ;;  %5570 = vmatprep.subr.bf16.mxu0 %v5569_v0  ;;  %v1339_v16 = vpop.permute.xlu1 %1338 }
  0xff   : > { %v1332_v17 = vpop.permute.xlu0 %1331  ;;  %5572 = vmatpush1.bf16.msra.mxu0 %v5571_v15 }
 0x100   : > { %v1335_v19 = vsel %vm1334_vm10, %v6030_v5, %v1332_v17 }
 0x101   : > { %v5583_v20 = vpack.c.bf16 %v1335_v19, %v1318_v18  ;;  %v1337_v21 = vpop.permute.xlu1 %1336 }
 0x102   : > { %v1343_v23 = vsel %vm1342_vm11, %v1337_v21, %v1339_v16 }
 0x103   : > { %v1341_v22 = vpop.permute.xlu0 %1340  ;;  %5584 = vmatpush3.bf16.msra.mxu1 %v5583_v20 }
 0x104   : > { %v1344_v24 = vsel %vm1342_vm11, %v1339_v16, %v1341_v22  ;;  %5294 = vmatprep.subr.mxu1 %v6403_v6 }
 0x105   : > { %1378 = vmatprep.subr.mxu0 %v1344_v24 }
 0x106   : > { %1379 = vmatpush1.msra.mxu0 %v1343_v23 }
 0x107   : > { %v1349_v26 = vpop.permute.xlu0 %1348  ;;  %5019 = vmatmul.mubr.msk.f32.vlgmr.msra.gmra.mrb[0].mxu0 %vm7685_vm12, %v1216_v25 }
 0x108   : > { %v1352_v27 = vsel %vm1351_vm13, %v1341_v22, %v1349_v26  ;;  %1749 = vmatprep.mubr.f32.mxu0 %v6403_v6 }
 0x109   : > { %5295 = vmatpush3.msra.mxu1 %v1352_v27 }
 0x10a   : > { %5297 = vmatmul.mubr.msk.f32.vlgmr.msra.gmra.mrb[0].mxu1 %vm7685_vm12, %v1216_v25  ;;  %5601 = vmatprep.subr.bf16.mxu1 %v6389_v3 }
 0x10b   : > { %5317 = vmatprep.mubr.msk.f32.mxu1 %vm7732_vm0, %v6403_v6 }
 0x112   : > { %v1356_v32 = vpop.permute.xlu1 %1355 }
 0x117   : > { %v1515_v41 = vpop.permute.xlu1 %1514 }
 0x118   : > { %v1508_v39 = vpop.permute.xlu0 %1507 }
 0x1da   : > { %v1428_v30 = vpop.f32.mrb[0].mxu0 }
 0x1db   : > { %v1430_v33 = vpop.f32.mrb[1].mxu0  ;;  %v1429_v45 = vadd.f32 %v1428_v30, %v1356_v32 }
 0x1dc   : > { %v1431_v48 = vadd.f32 %v1430_v33, %v1356_v32 }
 0x1dd   : > { %v1499_v35 = vpop.f32.mrb[0].mxu1  ;;  %v1503_v47 = vmax.f32 %v1429_v45, 0.0 }
 0x1de   : > { %v1500_v36 = vadd.f32 %v1499_v35, %v1356_v32  ;;  %v5298_v37 = vpop.f32.mrb[1].mxu1  ;;  %v1504_v50 = vmax.f32 %v1431_v48, 0.0 }
 0x1df   : > { %v1510_v51 = vmul.f32 %v1508_v39, %v1503_v47 }
 0x1e0   : > { %v1505_v40 = vmax.f32 %v1500_v36, 0.0  ;;  %v1511_v54 = vmul.f32 %v1508_v39, %v1504_v50 }
 0x1e1   : > { %v1517_v57 = vadd.f32 %v1515_v41, %v1510_v51 }
 0x1e2   : > { %v1512_v42 = vmul.f32 %v1508_v39, %v1505_v40  ;;  %v1518_v59 = vadd.f32 %v1515_v41, %v1511_v54 }
 0x1e3   : > { %v6797_v60 = vmul.f32 %v1540_v56, %v1517_v57 }
 0x1e4   : > { %v1519_v44 = vadd.f32 %v1515_v41, %v1512_v42  ;;  %v6803_v61 = vmul.f32 %v1544_v58, %v1518_v59 }
 0x1e6   : > { %v6777_v46 = vmul.f32 %v1548_v43, %v1519_v44  ;;  %v6034_v62 = vpack.i.bf16 %v6803_v61, %v6797_v60 }
 0x1e8   : > { %1572 = vrot.lane.b32.xlu0 %v6777_v46, %s6392_s11  ;;  %1555 = vrot.lane.b32.xlu1 %v6777_v46, %s6390_s7  ;;  %s7779_s7 = smov 1   ;;  %s7780_s11 = smov 17   ;;  %v6054_v63 = vpack.i.bf16 %v6777_v46, %v6803_v61 }
 0x1ec   : > { %1579 = vrot.lane.b32.xlu0 %v6777_v46, %s6393_s15  ;;  %1564 = vrot.lane.b32.xlu1 %v6777_v46, %s6391_s10 }
 0x1f0   : > { %1602 = vrot.lane.b32.xlu0 %v6777_v46, %s6396_s22  ;;  %1587 = vrot.lane.b32.xlu1 %v6777_v46, %s6397_s23  ;;  %s7781_s22 = smov 127   ;;  %s7782_s23 = smov 111  }
 0x1f4   : > { %1609 = vrot.lane.b32.xlu0 %v6777_v46, %s7779_s7  ;;  %1594 = vrot.lane.b32.xlu1 %v6777_v46, %s7780_s11 }
 0x1f8   : > { %1628 = vrot.lane.b32.xlu1 %v6797_v60, %s7684_s2  ;;  %1617 = vrot.lane.b32.xlu0 %v6797_v60, %s7781_s22  ;;  %s7783_s2 = smov 51  }
 0x1fc   : > { %1647 = vrot.lane.b32.xlu1 %v6797_v60, %s6401_s18  ;;  %1632 = vrot.lane.b32.xlu0 %v6797_v60, %s7782_s23 }
 0x200   : > { %6035 = vrot.lane.b32.xlu1 %v6034_v62, %s6391_s10  ;;  %6040 = vrot.lane.b32.xlu0 %v6034_v62, %s6393_s15  ;;  %s7785_s10 = smov 67   ;;  %s7693_s15 = smov 11  }
 0x204   : > { %6045 = vrot.lane.b32.xlu1 %v6034_v62, %s7780_s11  ;;  %6050 = vrot.lane.b32.xlu0 %v6034_v62, %s7779_s7  ;;  %s7689_s11 = smov 29  }
 0x208   : > { %1658 = vrot.lane.b32.xlu1 %v6797_v60, %s6408_s16  ;;  %1643 = vrot.lane.b32.xlu0 %v6797_v60, %s7783_s2  ;;  %s6418_s2 = smov 37  }
 0x20c   : > { %6055 = vrot.lane.b32.xlu1 %v6054_v63, %s7781_s22  ;;  %6060 = vrot.lane.b32.xlu0 %v6054_v63, %s7782_s23  ;;  %s7691_s23 = smov 99  }
 0x210   : > { %6065 = vrot.lane.b32.xlu1 %v6054_v63, %s6401_s18  ;;  %1664 = vrot.lane.b32.xlu0 %v6803_v61, %s6405_s26 }
 0x214   : > { %1666 = vrot.lane.b32.xlu1 %v6777_v46, %s6405_s26  ;;  %1662 = vrot.lane.b32.xlu0 %v6797_v60, %s6405_s26 }
 0x218   : > { %1673 = vrot.lane.b32.xlu1 %v6797_v60, %s6409_s0  ;;  %1679 = vperm.xlu0 %6069, %v1553_v4  }
 0x21c   : > { %1830 = vperm.xlu1 %6070, %v1553_v4  }
 0x220   : > { %6071 = vset.pattern.permute.xlu1 %v6410_v10 }
 0x221   : > { %1837 = vperm.xlu1 %6071, %v1553_v4  }
 0x225   : > { %6072 = vset.pattern.permute.xlu1 %v6407_v8 }
 0x25a   : > { %v1573_v5 = vpop.permute.xlu0 %1572  ;;  %v1556_v9 = vpop.permute.xlu1 %1555 }
 0x25e   : > { %v1580_v11 = vpop.permute.xlu0 %1579  ;;  %v1565_v1 = vpop.permute.xlu1 %1564 }
 0x262   : > { %v1603_v2 = vpop.permute.xlu0 %1602  ;;  %v1588_v12 = vpop.permute.xlu1 %1587 }
 0x266   : > { %v1610_v13 = vpop.permute.xlu0 %1609  ;;  %v1595_v0 = vpop.permute.xlu1 %1594 }
 0x26a   : > { %v1629_v14 = vpop.permute.xlu1 %1628  ;;  %v1618_v15 = vpop.permute.xlu0 %1617 }
 0x26e   : > { %v6835_v16 = vpop.permute.xlu1 %1647  ;;  %v1633_v17 = vpop.permute.xlu0 %1632 }
 0x272   : > { %v6036_v18 = vpop.permute.xlu1 %6035  ;;  %v6041_v19 = vpop.permute.xlu0 %6040 }
 0x273   : > { %v6038_v20 = vunpack.i.h.bf16 %v6036_v18  ;;  %v6037_v21 = vunpack.i.l.bf16 %v6036_v18  ;;  %v6043_v22 = vunpack.i.h.bf16 %v6041_v19  ;;  %v6042_v23 = vunpack.i.l.bf16 %v6041_v19 }
 0x275   : > { %v1567_v24 = vsel %vm1230_vm2, %v6038_v20, %v1565_v1  ;;  %v1571_v25 = vsel %vm1230_vm2, %v1556_v9, %v6037_v21  ;;  %v1582_v26 = vsel %vm1246_vm1, %v6043_v22, %v1580_v11  ;;  %v1586_v27 = vsel %vm1246_vm1, %v1573_v5, %v6042_v23 }
 0x276   : > { %v6046_v28 = vpop.permute.xlu1 %6045  ;;  %v6051_v30 = vpop.permute.xlu0 %6050  ;;  %v1566_v31 = vsel %vm1230_vm2, %v6037_v21, %v6038_v20  ;;  %v1581_v32 = vsel %vm1246_vm1, %v6042_v23, %v6043_v22  ;;  %v5602_v33 = vpack.c.bf16 %v1582_v26, %v1567_v24  ;;  %v5587_v34 = vpack.c.bf16 %v1586_v27, %v1571_v25  ;;  %v1552_v21 = vld [vmem:[%s6478_s21] sm:$0xff] }
 0x277   : > { %v6048_v35 = vunpack.i.h.bf16 %v6046_v28  ;;  %v6047_v36 = vunpack.i.l.bf16 %v6046_v28  ;;  %v6053_v37 = vunpack.i.h.bf16 %v6051_v30  ;;  %v6052_v38 = vunpack.i.l.bf16 %v6051_v30 }
 0x278   : > { %v5585_v39 = vpack.c.bf16 %v1581_v32, %v1566_v31  ;;  %5603 = vmatpush3.bf16.msra.mxu1 %v5602_v33  ;;  %vm6411_vm2 = vmmov 1  }
 0x279   : > { %v1597_v40 = vsel %vm1262_vm4, %v6048_v35, %v1595_v0  ;;  %v1601_v41 = vsel %vm1262_vm4, %v1588_v12, %v6047_v36  ;;  %v1612_v42 = vsel %vm7686_vm3, %v6053_v37, %v1610_v13  ;;  %v1616_v43 = vsel %vm7686_vm3, %v1603_v2, %v6052_v38  ;;  %5604 = vmatprep.subr.bf16.mxu1 %v6389_v3 }
 0x27a   : > { %5586 = vmatprep.subr.bf16.mxu0 %v5585_v39  ;;  %v1659_v44 = vpop.permute.xlu1 %1658  ;;  %v1644_v45 = vpop.permute.xlu0 %1643  ;;  %v1596_v47 = vsel %vm1262_vm4, %v6047_v36, %v6048_v35  ;;  %v1611_v48 = vsel %vm7686_vm3, %v6052_v38, %v6053_v37  ;;  %v5605_v49 = vpack.c.bf16 %v1612_v42, %v1597_v40  ;;  %v5591_v51 = vpack.c.bf16 %v1616_v43, %v1601_v41 }
 0x27b   : > { %5588 = vmatpush1.bf16.msra.mxu0 %v5587_v34  ;;  %v5589_v50 = vpack.c.bf16 %v1611_v48, %v1596_v47  ;;  %v6906_v47 = vld [vmem:[%s6488_s29] sm:$0xff] }
 0x27c   : > { %5606 = vmatpush3.bf16.msra.mxu1 %v5605_v49  ;;  %v1945_v48 = vld [vmem:[%s7784_s14] sm:$0xf]  ;;  %v1941_v49 = vld [vmem:[%s7776_s3 + $0x8] sm:$0xff]  ;;  %s7841_s14 = smov 30  }
 0x27d   : > { %5590 = vmatprep.subr.bf16.mxu0 %v5589_v50  ;;  %5607 = vmatprep.subr.bf16.mxu1 %v6389_v3  ;;  %v1943_v50 = vld [vmem:[%s7776_s3 + $0x18] sm:$0xff] }
 0x27e   : > { %v6056_v52 = vpop.permute.xlu1 %6055  ;;  %v6061_v53 = vpop.permute.xlu0 %6060 }
 0x27f   : > { %5592 = vmatpush1.bf16.msra.mxu0 %v5591_v51  ;;  %v6058_v54 = vunpack.i.h.bf16 %v6056_v52  ;;  %v6057_v55 = vunpack.i.l.bf16 %v6056_v52  ;;  %v6063_v56 = vunpack.i.h.bf16 %v6061_v53  ;;  %v6062_v57 = vunpack.i.l.bf16 %v6061_v53  ;;  %v1947_v51 = vld [vmem:[%s6513_s24] sm:$0xff] }
 0x281   : > { %v1631_v58 = vsel %vm1300_vm6, %v6058_v54, %v1629_v14  ;;  %v1623_v59 = vsel %vm1291_vm5, %v1618_v15, %v6057_v55  ;;  %v1624_v63 = vsel %vm1291_vm5, %v6057_v55, %v6058_v54  ;;  %v1646_v2 = vsel %vm1317_vm9, %v6063_v56, %v1644_v45  ;;  %v1942_v45 = vld [vmem:[%s7776_s3 + $0x10] sm:$0xff] }
 0x282   : > { %v6066_v62 = vpop.permute.xlu1 %6065  ;;  %v5608_v4 = vpack.c.bf16 %v1631_v58, %v6777_v46  ;;  %v5595_v5 = vpack.c.bf16 %v1623_v59, %v6797_v60  ;;  %v5593_v1 = vpack.c.bf16 %v1624_v63, %v6803_v61  ;;  %v1638_v12 = vsel %vm1308_vm7, %v1633_v17, %v6062_v57  ;;  %v1665_v13 = vpop.permute.xlu0 %1664 }
 0x283   : > { %v6068_v9 = vunpack.i.h.bf16 %v6066_v62  ;;  %v6067_v11 = vunpack.i.l.bf16 %v6066_v62  ;;  %v1639_v0 = vsel %vm1308_vm7, %v6062_v57, %v6063_v56 }
 0x284   : > { %5609 = vmatpush3.bf16.msra.mxu1 %v5608_v4  ;;  %5594 = vmatprep.subr.bf16.mxu0 %v5593_v1 }
 0x285   : > { %v1661_v14 = vsel %vm1334_vm10, %v6068_v9, %v1659_v44  ;;  %v1653_v15 = vsel %vm1325_vm8, %v6835_v16, %v6067_v11  ;;  %5610 = vmatprep.subr.bf16.mxu1 %v6389_v3  ;;  %v1654_v46 = vsel %vm1325_vm8, %v6067_v11, %v6068_v9  ;;  %5596 = vmatpush1.bf16.msra.mxu0 %v5595_v5  ;;  %v1940_v44 = vld [vmem:[%s7776_s3] sm:$0xff]  ;;  %s7806_s3 = smov 118  }
 0x286   : > { %v1667_v60 = vpop.permute.xlu1 %1666  ;;  %v5597_v61 = vpack.c.bf16 %v1654_v46, %v1639_v0  ;;  %v5611_v18 = vpack.c.bf16 %v1661_v14, %v1646_v2  ;;  %v5599_v17 = vpack.c.bf16 %v1653_v15, %v1638_v12  ;;  %v1663_v19 = vpop.permute.xlu0 %1662 }
 0x287   : > { %v1669_v16 = vsel %vm1342_vm11, %v1665_v13, %v1667_v60  ;;  %v1668_v23 = vsel %vm1342_vm11, %v1663_v19, %v1665_v13 }
 0x288   : > { %5598 = vmatprep.subr.bf16.mxu0 %v5597_v61  ;;  %5612 = vmatpush3.bf16.msra.mxu1 %v5611_v18 }
 0x289   : > { %5315 = vmatprep.subr.mxu1 %v6403_v6  ;;  %5600 = vmatpush1.bf16.msra.mxu0 %v5599_v17 }
 0x28a   : > { %v1674_v20 = vpop.permute.xlu1 %1673  ;;  %1701 = vmatprep.subr.mxu0 %v1669_v16 }
 0x28b   : > { %v1676_v22 = vsel %vm1351_vm13, %v1667_v60, %v1674_v20 }
 0x28c   : > { %5316 = vmatpush3.msra.mxu1 %v1676_v22 }
 0x28d   : > { %5318 = vmatmul.mubr.msk.f32.vlgmr.msra.gmra.mrb[2].mxu1 %vm7685_vm12, %v1552_v21  ;;  %1702 = vmatpush1.msra.mxu0 %v1668_v23  ;;  %v6412_v23 = vmov 1.0  }
 0x28e   : > { %5021 = vmatmul.mubr.msk.f32.vlgmr.msra.gmra.mrb[2].mxu0 %vm7685_vm12, %v1552_v21  ;;  %5324 = vmatprep.mubr.msk.f32.mxu1 %vm7731_vm14, %v6906_v47 }
 0x28f   : > { %2086 = vmatprep.mubr.f32.mxu0 %v6403_v6 }
 0x297   : > { %v1680_v24 = vpop.permute.xlu0 %1679 }
 0x29b   : > { %v1831_v25 = vpop.permute.xlu1 %1830 }
 0x2a0   : > { %v1838_v35 = vpop.permute.xlu1 %1837 }
 0x360   : > { %v1822_v26 = vpop.f32.mrb[2].mxu1 }
 0x361   : > { %v1823_v27 = vadd.f32 %v1822_v26, %v1680_v24  ;;  %v5319_v28 = vpop.f32.mrb[3].mxu1  ;;  %v1751_v30 = vpop.f32.mrb[2].mxu0 }
 0x362   : > { %v1752_v32 = vadd.f32 %v1751_v30, %v1680_v24  ;;  %v1753_v33 = vpop.f32.mrb[3].mxu0 }
 0x363   : > { %v1828_v31 = vmax.f32 %v1823_v27, 0.0  ;;  %v1754_v34 = vadd.f32 %v1753_v33, %v1680_v24 }
 0x364   : > { %v1826_v36 = vmax.f32 %v1752_v32, 0.0 }
 0x365   : > { %v1835_v37 = vmul.f32 %v1831_v25, %v1828_v31  ;;  %v1827_v38 = vmax.f32 %v1754_v34, 0.0 }
 0x366   : > { %v1833_v39 = vmul.f32 %v1831_v25, %v1826_v36 }
 0x367   : > { %v6873_v40 = vadd.f32 %v1838_v35, %v1835_v37  ;;  %v1834_v41 = vmul.f32 %v1831_v25, %v1827_v38  ;;  %v1937_v37 = vld [vmem:[%s6488_s29 + $0x8] sm:$0xff]  ;;  %v1938_v38 = vld [vmem:[%s6488_s29 + $0x10] sm:$0xff] }
 0x368   : > { %v6875_v42 = vadd.f32 %v1838_v35, %v1833_v39  ;;  %v1939_v39 = vld [vmem:[%s6488_s29 + $0x18] sm:$0xff] }
 0x369   : > { %1850 = vrot.lane.b32.xlu1 %v6873_v40, %s7781_s22  ;;  %v6881_v43 = vadd.f32 %v1838_v35, %v1834_v41 }
 0x36a   : > { %1846 = vrot.lane.b32.xlu0 %v6875_v42, %s7781_s22 }
 0x36d   : > { %1865 = vrot.lane.b32.xlu1 %v6873_v40, %s6401_s18 }
 0x36e   : > { %1848 = vrot.lane.b32.xlu0 %v6881_v43, %s7781_s22 }
 0x371   : > { %1880 = vrot.lane.b32.xlu1 %v6873_v40, %s6405_s26 }
 0x372   : > { %1863 = vrot.lane.b32.xlu0 %v6881_v43, %s6401_s18 }
 0x375   : > { %1861 = vrot.lane.b32.xlu1 %v6875_v42, %s6401_s18  ;;  %s7688_s18 = smov 10  }
 0x376   : > { %1878 = vrot.lane.b32.xlu0 %v6881_v43, %s6405_s26 }
 0x379   : > { %1857 = vrot.lane.b32.xlu1 %v6875_v42, %s7785_s10  ;;  %s7699_s10 = smov 91  }
 0x37a   : > { %1876 = vrot.lane.b32.xlu0 %v6875_v42, %s6405_s26  ;;  %s6416_s26 = smov 38  }
 0x37d   : > { %1887 = vrot.lane.b32.xlu1 %v6875_v42, %s6409_s0  ;;  %s7687_s0 = smov 9  }
 0x37e   : > { %1872 = vrot.lane.b32.xlu0 %v6875_v42, %s6408_s16  ;;  %s6414_s16 = smov 39  }
 0x381   : > { %1996 = vperm.xlu1 %6072, %v1941_v49  }
 0x382   : > { %1991 = vperm.xlu0 %6069, %v1940_v44  }
 0x385   : > { %2006 = vperm.xlu1 %6072, %v1943_v50  }
 0x386   : > { %2001 = vperm.xlu0 %6069, %v1942_v45  }
 0x389   : > { %2363 = vperm.xlu1 %6072, %v1947_v51  }
 0x38a   : > { %2210 = vperm.xlu0 %6069, %v1945_v48  }
 0x38d   : > { %6073 = vset.pattern.permute.xlu1 %v6406_v7 }
 0x3db   : > { %v1851_v52 = vpop.permute.xlu1 %1850 }
 0x3dc   : > { %v1847_v53 = vpop.permute.xlu0 %1846 }
 0x3df   : > { %v1866_v54 = vpop.permute.xlu1 %1865 }
 0x3e0   : > { %v1849_v55 = vpop.permute.xlu0 %1848 }
 0x3e1   : > { %v1853_v59 = vsel %vm1291_vm5, %v1849_v55, %v1851_v52  ;;  %v1852_v15 = vsel %vm1291_vm5, %v1847_v53, %v1849_v55 }
 0x3e2   : > { %v1892_v5 = vmax.f32 %v6881_v43, %v1853_v59  ;;  %v1891_v21 = vmax.f32 %v6875_v42, %v1852_v15 }
 0x3e3   : > { %v1881_v56 = vpop.permute.xlu1 %1880 }
 0x3e4   : > { %v1864_v57 = vpop.permute.xlu0 %1863 }
 0x3e5   : > { %v1868_v63 = vsel %vm1325_vm8, %v1864_v57, %v1866_v54 }
 0x3e7   : > { %v1862_v58 = vpop.permute.xlu1 %1861 }
 0x3e8   : > { %v1879_v62 = vpop.permute.xlu0 %1878  ;;  %v1867_v46 = vsel %vm1325_vm8, %v1862_v58, %v1864_v57 }
 0x3e9   : > { %v1883_v4 = vsel %vm1342_vm11, %v1879_v62, %v1881_v56 }
 0x3ea   : > { %v1895_v9 = vmax.f32 %v1868_v63, %v1883_v4 }
 0x3eb   : > { %v1858_v11 = vpop.permute.xlu1 %1857 }
 0x3ec   : > { %v6919_v1 = vmax.f32 %v1892_v5, %v1895_v9  ;;  %v1877_v2 = vpop.permute.xlu0 %1876  ;;  %v1860_v0 = vsel %vm1300_vm6, %v1851_v52, %v1858_v11 }
 0x3ed   : > { %v1882_v12 = vsel %vm1342_vm11, %v1877_v2, %v1879_v62  ;;  %v1893_v20 = vmax.f32 %v6873_v40, %v1860_v0 }
 0x3ee   : > { %vm1901_vm15 = vcmp.eq.f32.partialorder %v6881_v43, %v6919_v1  ;;  %vm1907_vm1 = vcmp.eq.f32.partialorder %v1853_v59, %v6919_v1  ;;  %v1894_v18 = vmax.f32 %v1867_v46, %v1882_v12  ;;  %vm1919_vm8 = vcmp.eq.f32.partialorder %v1868_v63, %v6919_v1 }
 0x3ef   : > { %v1888_v13 = vpop.permute.xlu1 %1887  ;;  %vm1904_vm4 = vmxor %vm1901_vm15, %vm6411_vm2 }
 0x3f0   : > { %v1890_v14 = vsel %vm1351_vm13, %v1881_v56, %v1888_v13  ;;  %v1873_v60 = vpop.permute.xlu0 %1872  ;;  %vm6933_vm7 = vmand %vm1904_vm4, %vm1907_vm1  ;;  %v6958_v25 = vmax.f32 %v1891_v21, %v1894_v18 }
 0x3f1   : > { %v1875_v17 = vsel %vm1334_vm10, %v1866_v54, %v1873_v60  ;;  %vm6943_vm6 = vmor %vm1901_vm15, %vm6933_vm7 }
 0x3f2   : > { %v1896_v16 = vmax.f32 %v1875_v17, %v1890_v14  ;;  %vm1916_vm5 = vmxor %vm6943_vm6, %vm6411_vm2  ;;  %vm1918_vm3 = vcmp.eq.f32.partialorder %v1867_v46, %v6958_v25 }
 0x3f3   : > { %vm1922_vm9 = vmand %vm1916_vm5, %vm1919_vm8 }
 0x3f4   : > { %v6953_v22 = vmax.f32 %v1893_v20, %v1896_v16  ;;  %v1928_v24 = vsel %vm1922_vm9, 0.0, %v6412_v23  ;;  %vm5023_vm10 = vmneg %vm6943_vm6 }
 0x3f5   : > { %v1931_v26 = vsel %vm6933_vm7, 1.0, %v1928_v24  ;;  %vm5027_vm11 = vmneg %vm1901_vm15  ;;  %vm1900_vm7 = vcmp.eq.f32.partialorder %v6875_v42, %v6958_v25 }
 0x3f6   : > { %vm1902_vm13 = vcmp.eq.f32.partialorder %v6873_v40, %v6953_v22  ;;  %vm1908_vm1 = vcmp.eq.f32.partialorder %v1860_v0, %v6953_v22  ;;  %v5613_v27 = vpack.c.bf16 %v1931_v26, %v6412_v23  ;;  %vm5614_vm4 = vmpackc.low %vm5027_vm11, %vm5023_vm10  ;;  %vm1920_vm9 = vcmp.eq.f32.partialorder %v1875_v17, %v6953_v22 }
 0x3f7   : > { %vm1905_vm6 = vmxor %vm1902_vm13, %vm6411_vm2  ;;  %vm1906_vm10 = vcmp.eq.f32.partialorder %v1852_v15, %v6958_v25 }
 0x3f8   : > { %vm6973_vm5 = vmand %vm1905_vm6, %vm1908_vm1  ;;  %5615 = vmatprep.subr.msk.bf16.mxu0 %vm5614_vm4, %v5613_v27  ;;  %v1944_v27 = vld [vmem:[%s7794_s8] sm:$0xf]  ;;  %s7714_s8 = smov 97  }
 0x3f9   : > { %vm6982_vm15 = vmor %vm1902_vm13, %vm6973_vm5 }
 0x3fa   : > { %vm1917_vm8 = vmxor %vm6982_vm15, %vm6411_vm2 }
 0x3fb   : > { %vm1923_vm11 = vmand %vm1917_vm8, %vm1920_vm9 }
 0x3fc   : > { %vm1903_vm1 = vmxor %vm1900_vm7, %vm6411_vm2  ;;  %v1929_v31 = vsel %vm1923_vm11, 0.0, %v6412_v23 }
 0x3fd   : > { %vm1909_vm4 = vmand %vm1903_vm1, %vm1906_vm10  ;;  %v1932_v32 = vsel %vm6973_vm5, 1.0, %v1929_v31  ;;  %vm7707_vm1 = vcmask 97280  }
 0x3fe   : > { %vm1912_vm6 = vmor %vm1900_vm7, %vm1909_vm4  ;;  %v5619_v35 = vpack.c.bf16 %v1932_v32, %v6412_v23 }
 0x3ff   : > { %vm1915_vm12 = vmxor %vm1912_vm6, %vm6411_vm2 }
 0x400   : > { %vm1921_vm8 = vmand %vm1915_vm12, %vm1918_vm3  ;;  %v1997_v42 = vpop.permute.xlu1 %1996 }
 0x401   : > { %v1927_v33 = vsel %vm1921_vm8, 0.0, %v6412_v23  ;;  %vm5025_vm9 = vmneg %vm1912_vm6  ;;  %v1992_v40 = vpop.permute.xlu0 %1991  ;;  %vm7705_vm6 = vcmask 89088   ;;  %vm2685_vm8 = vcmask 80896  }
 0x402   : > { %v1930_v34 = vsel %vm1909_vm4, 1.0, %v1927_v33  ;;  %vm5029_vm10 = vmneg %vm1900_vm7  ;;  %v1964_v33 = vld [vmem:[%s6518_s30 + $0x80] sm:$0xff]  ;;  %vm2521_vm4 = vcmask 556032  }
 0x403   : > { %v5616_v36 = vpack.c.bf16 %v1930_v34, %v6412_v23  ;;  %vm5617_vm11 = vmpackc.low %vm5029_vm10, %vm5025_vm9  ;;  %v1965_v34 = vld [vmem:[%s6518_s30 + $0x88] sm:$0xff]  ;;  %vm2693_vm9 = vcmask 72704   ;;  %vm7798_vm10 = vcmask 7168  }
 0x404   : > { %vm5035_vm5 = vmneg %vm6982_vm15  ;;  %v2007_v59 = vpop.permute.xlu1 %2006  ;;  %vm7706_vm15 = vcmask 1043456  }
 0x405   : > { %5618 = vmatpush1.bf16.msk.msra.mxu0 %vm5617_vm11, %v5616_v36  ;;  %vm5037_vm3 = vmneg %vm1902_vm13  ;;  %v2002_v54 = vpop.permute.xlu0 %2001  ;;  %vm7733_vm13 = vcmask 261120   ;;  %v5649_v36 = vpack.c.bf16 %v1965_v34, %v1964_v33  ;;  %vm2708_vm11 = vcmask 809984  }
 0x406   : > { %vm5620_vm12 = vmpackc.low %vm5037_vm3, %vm5035_vm5  ;;  %5633 = vmatprep.subr.bf16.mxu0 %v6389_v3  ;;  %vm2716_vm5 = vcmask 744448   ;;  %vm2724_vm3 = vcmask 736256  }
 0x407   : > { %5621 = vmatprep.subr.msk.bf16.mxu1 %vm5620_vm12, %v5619_v35  ;;  %vm7069_vm7 = vmpackc.low %vm7706_vm15, %vm6411_vm2 }
 0x408   : > { %5031 = vmatmul.mubr.msk.f32.vlgmr.msra.gmra.mrb[4].mxu0 %vm7731_vm14, %v6906_v47  ;;  %5624 = vmatpush3.bf16.msk.msra.mxu1 %vm5620_vm12, %v5619_v35  ;;  %v1948_v35 = vld [vmem:[%s6518_s30] sm:$0xff]  ;;  %vm2732_vm12 = vcmask 728064  }
 0x409   : > { %2092 = vmatprep.mubr.f32.mxu0 %v6403_v6 }
 0x40b   : > { %5325 = vmatmul.mubr.msk.f32.vlgmr.msra.gmra.mrb[4].mxu1 %vm7731_vm14, %v1937_v37 }
 0x40c   : > { %5032 = vmatmul.mubr.msk.f32.gmra.mrb[6].mxu0 %vm7731_vm14, %v1937_v37  ;;  %5327 = vmatprep.mubr.msk.f32.mxu1 %vm7731_vm14, %v1938_v38  ;;  %v1949_v37 = vld [vmem:[%s6518_s30 + $0x8] sm:$0xff] }
 0x40d   : > { %2098 = vmatprep.mubr.f32.mxu0 %v6403_v6 }
 0x40f   : > { %5328 = vmatmul.mubr.msk.f32.gmra.mrb[6].mxu1 %vm7731_vm14, %v1939_v39 }
 0x410   : > { %5033 = vmatmul.mubr.msk.f32.gmra.mrb[8].mxu0 %vm7731_vm14, %v1938_v38  ;;  %2281 = vmatprep.mubr.f32.mxu1 %v6403_v6  ;;  %v1966_v38 = vld [vmem:[%s6518_s30 + $0x90] sm:$0xff] }
 0x411   : > { %2104 = vmatprep.mubr.f32.mxu0 %v6403_v6 }
 0x414   : > { %5034 = vmatmul.mubr.msk.f32.gmra.mrb[10].mxu0 %vm7731_vm14, %v1939_v39  ;;  %v1967_v39 = vld [vmem:[%s6518_s30 + $0x98] sm:$0xff] }
 0x415   : > { %5338 = vmatprep.mubr.msk.f32.mxu0 %vm7732_vm0, %v6403_v6 }
 0x4db   : > { %v2088_v41 = vpop.f32.mrb[4].mxu0 }
 0x4dc   : > { %v2090_v43 = vpop.f32.mrb[5].mxu0  ;;  %v2089_v44 = vadd.f32 %v2088_v41, %v1992_v40  ;;  %v5653_v41 = vpack.c.bf16 %v1967_v39, %v1966_v38  ;;  %v1982_v38 = vld [vmem:[%s6518_s30 + $0x110] sm:$0xff]  ;;  %v1983_v39 = vld [vmem:[%s6518_s30 + $0x118] sm:$0xff] }
 0x4dd   : > { %v2091_v47 = vadd.f32 %v2090_v43, %v1992_v40  ;;  %v1951_v43 = vld [vmem:[%s6518_s30 + $0x18] sm:$0xff] }
 0x4de   : > { %v5326_v45 = vpop.f32.mrb[4].mxu1  ;;  %v2196_v57 = vmax.f32 %v2089_v44, 0.0  ;;  %v1968_v44 = vld [vmem:[%s6518_s30 + $0xa0] sm:$0xff] }
 0x4df   : > { %v2094_v48 = vpop.f32.mrb[6].mxu0  ;;  %v2183_v49 = vadd.f32 %v5326_v45, %v1997_v42  ;;  %v2177_v50 = vpop.f32.mrb[5].mxu1  ;;  %v2197_v4 = vmax.f32 %v2091_v47, 0.0  ;;  %v1969_v45 = vld [vmem:[%s6518_s30 + $0xa8] sm:$0xff] }
 0x4e0   : > { %v2095_v51 = vadd.f32 %v2094_v48, %v1997_v42  ;;  %v2096_v52 = vpop.f32.mrb[7].mxu0  ;;  %v2178_v53 = vadd.f32 %v2177_v50, %v1992_v40  ;;  %v5651_v40 = vpack.c.bf16 %v1949_v37, %v1948_v35  ;;  %v5657_v48 = vpack.c.bf16 %v1969_v45, %v1968_v44  ;;  %v1953_v50 = vld [vmem:[%s6518_s30 + $0x28] sm:$0xff]  ;;  %v1946_v35 = vld [vmem:[%s6508_s19] sm:$0xff]  ;;  %v1979_v44 = vld [vmem:[%s6518_s30 + $0xf8] sm:$0xff] }
 0x4e1   : > { %v2097_v55 = vadd.f32 %v2096_v52, %v1997_v42  ;;  %v2201_v56 = vmax.f32 %v2183_v49, 0.0  ;;  %v1950_v42 = vld [vmem:[%s6518_s30 + $0x10] sm:$0xff]  ;;  %v1952_v49 = vld [vmem:[%s6518_s30 + $0x20] sm:$0xff]  ;;  %v1971_v52 = vld [vmem:[%s6518_s30 + $0xb8] sm:$0xff] }
 0x4e2   : > { %v2199_v58 = vmax.f32 %v2095_v51, 0.0  ;;  %v2198_v62 = vmax.f32 %v2178_v53, 0.0  ;;  %v5329_v63 = vpop.f32.mrb[6].mxu1  ;;  %v5655_v47 = vpack.c.bf16 %v1951_v43, %v1950_v42  ;;  %v1970_v51 = vld [vmem:[%s6518_s30 + $0xb0] sm:$0xff]  ;;  %v5659_v53 = vpack.c.bf16 %v1953_v50, %v1952_v49  ;;  %v1981_v37 = vld [vmem:[%s6518_s30 + $0x108] sm:$0xff]  ;;  %v1987_v50 = vld [vmem:[%s6518_s30 + $0x138] sm:$0xff] }
 0x4e3   : > { %v2200_v5 = vmax.f32 %v2097_v55, 0.0  ;;  %v2100_v9 = vpop.f32.mrb[8].mxu0  ;;  %v2193_v11 = vadd.f32 %v5329_v63, %v2007_v59  ;;  %v2187_v2 = vpop.f32.mrb[7].mxu1  ;;  %v1954_v55 = vld [vmem:[%s6518_s30 + $0x30] sm:$0xff]  ;;  %v1956_v63 = vld [vmem:[%s6518_s30 + $0x40] sm:$0xff] }
 0x4e4   : > { %v5627_v12 = vpack.c.bf16 %v2199_v58, %v2196_v57  ;;  %v5634_v13 = vpack.c.bf16 %v2201_v56, %v2198_v62  ;;  %v2102_v0 = vpop.f32.mrb[9].mxu0  ;;  %v2188_v14 = vadd.f32 %v2187_v2, %v2002_v54  ;;  %v2101_v60 = vadd.f32 %v2100_v9, %v2002_v54  ;;  %v1955_v56 = vld [vmem:[%s6518_s30 + $0x38] sm:$0xff]  ;;  %v1972_v57 = vld [vmem:[%s6518_s30 + $0xc0] sm:$0xff]  ;;  %v1973_v58 = vld [vmem:[%s6518_s30 + $0xc8] sm:$0xff] }
 0x4e5   : > { %v5625_v15 = vpack.c.bf16 %v2200_v5, %v2197_v4  ;;  %v2207_v46 = vmax.f32 %v2193_v11, 0.0  ;;  %v2103_v18 = vadd.f32 %v2102_v0, %v2002_v54  ;;  %v5661_v54 = vpack.c.bf16 %v1971_v52, %v1970_v51  ;;  %v1957_v4 = vld [vmem:[%s6518_s30 + $0x48] sm:$0xff]  ;;  %v1974_v5 = vld [vmem:[%s6518_s30 + $0xd0] sm:$0xff]  ;;  %v1975_v9 = vld [vmem:[%s6518_s30 + $0xd8] sm:$0xff] }
 0x4e6   : > { %v2204_v61 = vmax.f32 %v2188_v14, 0.0  ;;  %5635 = vmatpush3.bf16.msra.mxu0 %v5634_v13  ;;  %v2202_v24 = vmax.f32 %v2101_v60, 0.0  ;;  %v5665_v62 = vpack.c.bf16 %v1973_v58, %v1972_v57  ;;  %v5667_v11 = vpack.c.bf16 %v1957_v4, %v1956_v63  ;;  %v1959_v13 = vld [vmem:[%s6518_s30 + $0x58] sm:$0xff]  ;;  %v1976_v0 = vld [vmem:[%s6518_s30 + $0xe0] sm:$0xff]  ;;  %v1977_v14 = vld [vmem:[%s6518_s30 + $0xe8] sm:$0xff] }
 0x4e7   : > { %v2106_v17 = vpop.f32.mrb[10].mxu0  ;;  %5626 = vmatprep.subr.bf16.mxu1 %v5625_v15  ;;  %5636 = vmatprep.subr.bf16.mxu0 %v6389_v3  ;;  %v2203_v28 = vmax.f32 %v2103_v18, 0.0  ;;  %v5669_v2 = vpack.c.bf16 %v1975_v9, %v1974_v5  ;;  %v1960_v60 = vld [vmem:[%s6518_s30 + $0x60] sm:$0xff]  ;;  %v1978_v43 = vld [vmem:[%s6518_s30 + $0xf0] sm:$0xff] }
 0x4e8   : > { %v5637_v19 = vpack.c.bf16 %v2207_v46, %v2204_v61  ;;  %v2107_v20 = vadd.f32 %v2106_v17, %v2007_v59  ;;  %v2108_v16 = vpop.f32.mrb[11].mxu0  ;;  %5628 = vmatpush1.bf16.msra.mxu1 %v5627_v12  ;;  %v1958_v12 = vld [vmem:[%s6518_s30 + $0x50] sm:$0xff]  ;;  %v5673_v46 = vpack.c.bf16 %v1977_v14, %v1976_v0  ;;  %v1961_v61 = vld [vmem:[%s6518_s30 + $0x68] sm:$0xff] }
 0x4e9   : > { %v2109_v21 = vadd.f32 %v2108_v16, %v2007_v59  ;;  %v5663_v59 = vpack.c.bf16 %v1955_v56, %v1954_v55  ;;  %v5671_v15 = vpack.c.bf16 %v1959_v13, %v1958_v12  ;;  %v5675_v18 = vpack.c.bf16 %v1961_v61, %v1960_v60  ;;  %v1962_v45 = vld [vmem:[%s6518_s30 + $0x70] sm:$0xff]  ;;  %v2364_v55 = vpop.permute.xlu1 %2363  ;;  %v2669_v13 = vld [vmem:[%s7797_s12] sm:$0xff]  ;;  %s7835_s12 = smov 5  }
 0x4ea   : > { %v2205_v26 = vmax.f32 %v2107_v20, 0.0  ;;  %5638 = vmatpush3.bf16.msra.mxu0 %v5637_v19  ;;  %v2211_v20 = vpop.permute.xlu0 %2210  ;;  %v1986_v49 = vld [vmem:[%s6518_s30 + $0x130] sm:$0xff] }
 0x4eb   : > { %v2206_v30 = vmax.f32 %v2109_v21, 0.0  ;;  %5650 = vmatprep.subr.bf16.mxu0 %v5649_v36  ;;  %v1980_v36 = vld [vmem:[%s6518_s30 + $0x100] sm:$0xff]  ;;  %v5691_v52 = vpack.c.bf16 %v1987_v50, %v1986_v49 }
 0x4ec   : > { %v5631_v31 = vpack.c.bf16 %v2205_v26, %v2202_v24 }
 0x4ed   : > { %v5629_v32 = vpack.c.bf16 %v2206_v30, %v2203_v28  ;;  %5339 = vmatmul.mubr.msk.f32.vlgmr.msra.gmra.mrb[12].mxu0 %vm7733_vm13, %v1944_v27 }
 0x4ee   : > { %5652 = vmatpush3.bf16.msra.mxu0 %v5651_v40  ;;  %v1984_v40 = vld [vmem:[%s6518_s30 + $0x120] sm:$0xff] }
 0x4ef   : > { %5630 = vmatprep.subr.bf16.mxu1 %v5629_v32  ;;  %5654 = vmatprep.subr.bf16.mxu0 %v5653_v41  ;;  %v1985_v41 = vld [vmem:[%s6518_s30 + $0x128] sm:$0xff] }
 0x4f0   : > { %5632 = vmatpush1.bf16.msra.mxu1 %v5631_v31  ;;  %v5688_v42 = vpack.c.bf16 %v1985_v41, %v1984_v40 }
 0x4f2   : > { %5656 = vmatpush3.bf16.msra.mxu0 %v5655_v47  ;;  %v5677_v47 = vpack.c.bf16 %v1979_v44, %v1978_v43 }
 0x4f3   : > { %5043 = vmatmul.mubr.msk.f32.vlgmr.msra.gmra.mrb[8].mxu1 %vm7733_vm13, %v1944_v27  ;;  %5658 = vmatprep.subr.bf16.mxu0 %v5657_v48  ;;  %v1963_v48 = vld [vmem:[%s6518_s30 + $0x78] sm:$0xff] }
 0x4f4   : > { %2444 = vmatprep.mubr.f32.mxu1 %v6403_v6  ;;  %v5679_v51 = vpack.c.bf16 %v1963_v48, %v1962_v45  ;;  %v2825_v45 = vsub.s32 1, %v6773_v29 }
 0x4f6   : > { %5660 = vmatpush3.bf16.msra.mxu0 %v5659_v53  ;;  %v1988_v53 = vld [vmem:[%s6518_s30 + $0x140] sm:$0xf] }
 0x4f7   : > { %5662 = vmatprep.subr.bf16.mxu0 %v5661_v54 }
 0x4fa   : > { %5664 = vmatpush3.bf16.msra.mxu0 %v5663_v59 }
 0x4fb   : > { %5666 = vmatprep.subr.bf16.mxu0 %v5665_v62 }
 0x4fe   : > { %5668 = vmatpush3.bf16.msra.mxu0 %v5667_v11 }
 0x4ff   : > { %5670 = vmatprep.subr.bf16.mxu0 %v5669_v2 }
 0x502   : > { %5672 = vmatpush3.bf16.msra.mxu0 %v5671_v15 }
 0x503   : > { %5674 = vmatprep.subr.bf16.mxu0 %v5673_v46 }
 0x506   : > { %5676 = vmatpush3.bf16.msra.mxu0 %v5675_v18 }
 0x507   : > { %5678 = vmatprep.subr.bf16.mxu0 %v5677_v47 }
 0x50a   : > { %5680 = vmatpush3.bf16.msra.mxu0 %v5679_v51  ;;  %v7169_v51 = vld [vmem:[%s6463_s9] sm:$0xff] }
 0x50b   : > { %5705 = vmatprep.subr.bf16.mxu0 %v6389_v3 }
 0x5c0   : > { %v2354_v17 = vpop.f32.mrb[12].mxu0 }
 0x5c1   : > { %v5340_v19 = vpop.f32.mrb[13].mxu0  ;;  %v2355_v27 = vadd.f32 %v2354_v17, %v2211_v20 }
 0x5c3   : > { %v2360_v33 = vmax.f32 %v2355_v27, 0.0 }
 0x5c6   : > { %v2283_v16 = vpop.f32.mrb[8].mxu1 }
 0x5c7   : > { %v2284_v21 = vadd.f32 %v2283_v16, %v2211_v20  ;;  %v2285_v24 = vpop.f32.mrb[9].mxu1 }
 0x5c8   : > { %v2286_v26 = vadd.f32 %v2285_v24, %v2211_v20 }
 0x5c9   : > { %v2358_v28 = vmax.f32 %v2284_v21, 0.0 }
 0x5ca   : > { %v2359_v30 = vmax.f32 %v2286_v26, 0.0 }
 0x5cb   : > { %v5642_v34 = vpack.c.bf16 %v2358_v28, %v6958_v25  ;;  %v5682_v25 = vpack.c.bf16 %v1981_v37, %v1980_v36 }
 0x5cc   : > { %v5639_v32 = vpack.c.bf16 %v2359_v30, %v6919_v1  ;;  %v5646_v1 = vpack.c.bf16 %v2360_v33, %v6953_v22  ;;  %v5685_v22 = vpack.c.bf16 %v1983_v39, %v1982_v38 }
 0x5ce   : > { %5641 = vmatprep.subr.msk.bf16.mxu1 %vm7069_vm7, %v5639_v32 }
 0x5cf   : > { %5644 = vmatpush1.bf16.msk.msra.mxu1 %vm7069_vm7, %v5642_v34 }
 0x5d0   : > { %5645 = vmatprep.subr.bf16.mxu1 %v6389_v3 }
 0x5d2   : > { %5047 = vmatmul.mubr.msk.f32.vlgmr.msra.gmra.mrb[10].mxu1 %vm7707_vm1, %v1946_v35 }
 0x5d3   : > { %5648 = vmatpush3.bf16.msk.msra.mxu1 %vm7069_vm7, %v5646_v1  ;;  %5345 = vmatprep.mubr.msk.f32.mxu1 %vm7732_vm0, %v6403_v6 }
 0x5d4   : > { %5681 = vmatprep.subr.bf16.mxu1 %v6389_v3 }
 0x5d6   : > { %5346 = vmatmul.mubr.msk.f32.vlgmr.msra.gmra.mrb[12].mxu1 %vm7707_vm1, %v1946_v35 }
 0x5d7   : > { %5683 = vmatpush3.bf16.msra.mxu1 %v5682_v25  ;;  %5366 = vmatprep.mubr.msk.f32.mxu1 %vm7732_vm0, %v6403_v6 }
 0x5d8   : > { %5684 = vmatprep.subr.bf16.mxu1 %v6389_v3 }
 0x5db   : > { %5686 = vmatpush3.bf16.msra.mxu1 %v5685_v22 }
 0x5dc   : > { %5687 = vmatprep.subr.bf16.mxu1 %v6389_v3 }
 0x5df   : > { %5689 = vmatpush3.bf16.msra.mxu1 %v5688_v42 }
 0x5e0   : > { %5690 = vmatprep.subr.bf16.mxu1 %v6389_v3 }
 0x5e3   : > { %5692 = vmatpush3.bf16.msra.mxu1 %v5691_v52  ;;  %v2826_v52 = vrot.slane %v7169_v51, %v2825_v45 }
 0x5e4   : > { %5364 = vmatprep.subr.mxu1 %v6403_v6 }
 0x5e7   : > { %5365 = vmatpush3.msk.msra.mxu1 %vm7706_vm15, %v1988_v53 }
 0x5e8   : > { %5693 = vmatprep.subr.bf16.mxu1 %v6389_v3 }
 0x6a5   : > { %v2446_v54 = vpop.f32.mrb[10].mxu1 }
 0x6a6   : > { %v2448_v56 = vpop.f32.mrb[11].mxu1  ;;  %v2447_v58 = vadd.f32 %v2446_v54, %v2364_v55 }
 0x6a7   : > { %v2449_v57 = vadd.f32 %v2448_v56, %v2364_v55 }
 0x6a9   : > { %v2517_v59 = vpop.f32.mrb[12].mxu1  ;;  %2592 = vmatprep.mubr.f32.mxu0 %v2449_v57 }
 0x6aa   : > { %v2518_v62 = vadd.f32 %v2517_v59, %v2364_v55  ;;  %v5347_v63 = vpop.f32.mrb[13].mxu1  ;;  %2593 = vmatmul.mubr.f32.vlgmr.msra.gmra.mrb[14].mxu0 %v2447_v58 }
 0x6ab   : > { %5408 = vmatprep.mubr.msk.f32.mxu0 %vm7732_vm0, %v6403_v6 }
 0x6ac   : > { %5367 = vmatmul.mubr.msk.f32.vlgmr.msra.gmra.mrb[14].mxu1 %vm2521_vm4, %v2518_v62  ;;  %vm7800_vm4 = vcmask 588800  }
 0x6ad   : > { %5387 = vmatprep.mubr.msk.f32.mxu1 %vm7732_vm0, %v6403_v6 }
 0x77d   : > { %v5169_v4 = vpop.f32.mrb[14].mxu0 }
 0x77e   : > { %v5170_v5 = vpop.f32.mrb[15].mxu0 }
 0x77f   : > { %v5171_v9 = vadd.f32 %v5170_v5, %v5169_v4  ;;  %v2664_v11 = vpop.f32.mrb[14].mxu1 }
 0x780   : > { %v5368_v2 = vpop.f32.mrb[15].mxu1 }
 0x781   : > { %v7115_v12 = vadd.f32 %v5171_v9, %v2664_v11 }
 0x783   : > { %2674 = vrot.lane.b32.xlu1 %v7115_v12, %s7693_s15  ;;  %2671 = vrot.lane.b32.xlu0 %v7115_v12, %s6414_s16  ;;  %s7700_s15 = smov 117  }
 0x787   : > { %2682 = vrot.lane.b32.xlu1 %v7115_v12, %s7688_s18  ;;  %2679 = vrot.lane.b32.xlu0 %v7115_v12, %s6416_s26  ;;  %s7697_s18 = smov 90  }
 0x78b   : > { %2690 = vrot.lane.b32.xlu1 %v7115_v12, %s7687_s0  ;;  %2687 = vrot.lane.b32.xlu0 %v7115_v12, %s6418_s2  ;;  %s6422_s0 = smov 119  }
 0x78f   : > { %2698 = vrot.lane.b32.xlu1 %v7115_v12, %s7779_s7  ;;  %2695 = vrot.lane.b32.xlu0 %v7115_v12, %s7689_s11  ;;  %s7702_s11 = smov 118  }
 0x793   : > { %2705 = vrot.lane.b32.xlu1 %v7115_v12, %s7691_s23  ;;  %2702 = vrot.lane.b32.xlu0 %v7115_v12, %s7781_s22  ;;  %s7695_s23 = smov 89  }
 0x797   : > { %2713 = vrot.lane.b32.xlu1 %v7115_v12, %s7699_s10  ;;  %2710 = vrot.lane.b32.xlu0 %v7115_v12, %s6422_s0  ;;  %s7803_s10 = smov 29  }
 0x79b   : > { %2721 = vrot.lane.b32.xlu1 %v7115_v12, %s7697_s18  ;;  %2718 = vrot.lane.b32.xlu0 %v7115_v12, %s7702_s11  ;;  %s7802_s18 = smov 11   ;;  %s7805_s11 = smov 9  }
 0x79f   : > { %2729 = vrot.lane.b32.xlu1 %v7115_v12, %s7695_s23  ;;  %2726 = vrot.lane.b32.xlu0 %v7115_v12, %s7700_s15  ;;  %s7799_s23 = sld [smem:[#allocation7_spill]]  ;;  %s7804_s15 = smov 10  }
 0x7a3   : > { %2736 = vperm.xlu0 %6069, %v2669_v13   ;;  %2814 = vperm.xlu1 %6073, %v2669_v13  }
 0x7a5   : > { %v2668_v22 = vld [vmem:[%s7799_s23] sm:$0xff]  ;;  %s7801_s23 = sld [smem:[#allocation10_spill]] }
 0x7a7   : > { %6074 = vset.pattern.permute.xlu0 %v6410_v10 }
 0x7a8   : > { %2819 = vperm.xlu0 %6074, %v2669_v13  }
 0x7ab   : > { %v2829_v55 = vld [vmem:[%s7801_s23] sm:$0xff]  ;;  %s7815_s23 = sld [smem:[#allocation11_spill]] }
 0x7ac   : > { %6075 = vset.pattern.permute.xlu0 %v6407_v8 }
 0x7f5   : > { %v2675_v0 = vpop.permute.xlu1 %2674  ;;  %v2672_v14 = vpop.permute.xlu0 %2671 }
 0x7f6   : > { %v2678_v60 = vsel %vm7705_vm6, %v2672_v14, %v2675_v0 }
 0x7f9   : > { %v2683_v15 = vpop.permute.xlu1 %2682  ;;  %v2680_v46 = vpop.permute.xlu0 %2679 }
 0x7fa   : > { %v2686_v61 = vsel %vm2685_vm8, %v2680_v46, %v2683_v15 }
 0x7fb   : > { %v5694_v18 = vpack.c.bf16 %v2686_v61, %v2678_v60 }
 0x7fd   : > { %v2691_v17 = vpop.permute.xlu1 %2690  ;;  %5695 = vmatpush3.bf16.msra.mxu1 %v5694_v18  ;;  %v2688_v19 = vpop.permute.xlu0 %2687 }
 0x7fe   : > { %5696 = vmatprep.subr.bf16.mxu1 %v6389_v3  ;;  %v2694_v21 = vsel %vm2693_vm9, %v2688_v19, %v2691_v17 }
 0x801   : > { %v2699_v20 = vpop.permute.xlu1 %2698  ;;  %v2696_v16 = vpop.permute.xlu0 %2695 }
 0x802   : > { %v2701_v24 = vsel %vm7798_vm10, %v2696_v16, %v2699_v20 }
 0x803   : > { %v5697_v26 = vpack.c.bf16 %v2701_v24, %v2694_v21 }
 0x805   : > { %v2706_v27 = vpop.permute.xlu1 %2705  ;;  %5698 = vmatpush3.bf16.msra.mxu1 %v5697_v26  ;;  %v2703_v28 = vpop.permute.xlu0 %2702 }
 0x806   : > { %v2709_v30 = vsel %vm2708_vm11, %v2703_v28, %v2706_v27  ;;  %5699 = vmatprep.subr.bf16.mxu1 %v6389_v3 }
 0x807   : > { %v5700_v32 = vpack.c.bf16 %v2709_v30, %v7115_v12 }
 0x809   : > { %v2714_v33 = vpop.permute.xlu1 %2713  ;;  %5701 = vmatpush3.bf16.msra.mxu1 %v5700_v32  ;;  %v2711_v34 = vpop.permute.xlu0 %2710 }
 0x80a   : > { %5702 = vmatprep.subr.bf16.mxu1 %v6389_v3  ;;  %v2717_v37 = vsel %vm2716_vm5, %v2711_v34, %v2714_v33 }
 0x80d   : > { %v2722_v35 = vpop.permute.xlu1 %2721  ;;  %v2719_v36 = vpop.permute.xlu0 %2718 }
 0x80e   : > { %v2725_v1 = vsel %vm2724_vm3, %v2719_v36, %v2722_v35 }
 0x80f   : > { %v5703_v25 = vpack.c.bf16 %v2725_v1, %v2717_v37 }
 0x811   : > { %v2730_v38 = vpop.permute.xlu1 %2729  ;;  %5704 = vmatpush3.bf16.msra.mxu1 %v5703_v25  ;;  %v2727_v39 = vpop.permute.xlu0 %2726 }
 0x812   : > { %5385 = vmatprep.subr.mxu1 %v6403_v6  ;;  %v2733_v40 = vsel %vm2732_vm12, %v2727_v39, %v2730_v38  ;;  %v3013_v39 = vld [vmem:[%s7815_s23] sm:$0xff] }
 0x815   : > { %5386 = vmatpush3.msra.mxu1 %v2733_v40 }
 0x816   : > { %5388 = vmatmul.mubr.msk.f32.vlgmr.msra.gmra.mrb[16].mxu1 %vm7800_vm4, %v2668_v22 }
 0x817   : > { %5415 = vmatprep.mubr.msk.f32.mxu1 %vm7731_vm14, %v3013_v39 }
 0x822   : > { %v2737_v41 = vpop.permute.xlu0 %2736  ;;  %v2815_v47 = vpop.permute.xlu1 %2814 }
 0x827   : > { %v2820_v49 = vpop.permute.xlu0 %2819 }
 0x8e9   : > { %v2808_v42 = vpop.f32.mrb[16].mxu1 }
 0x8ea   : > { %v2809_v43 = vadd.f32 %v2808_v42, %v2737_v41  ;;  %v5389_v44 = vpop.f32.mrb[17].mxu1 }
 0x8ec   : > { %v2812_v48 = vmax.f32 %v2809_v43, 0.0 }
 0x8ee   : > { %v2817_v50 = vmul.f32 %v2815_v47, %v2812_v48 }
 0x8f0   : > { %v2822_v53 = vadd.f32 %v2820_v49, %v2817_v50 }
 0x8f2   : > { %v2827_v54 = vmul.f32 %v2826_v52, %v2822_v53 }
 0x8f4   : > { %2838 = vrot.lane.b32.xlu0 %v2827_v54, %s6416_s26  ;;  %2831 = vrot.lane.b32.xlu1 %v2827_v54, %s6414_s16  ;;  %s7807_s26 = smov 99   ;;  %s7808_s16 = smov 117  }
 0x8f8   : > { %2845 = vrot.lane.b32.xlu0 %v2827_v54, %s6418_s2  ;;  %2834 = vrot.lane.b32.xlu1 %v2827_v54, %s7802_s18  ;;  %s7809_s2 = smov 91  }
 0x8fc   : > { %2852 = vrot.lane.b32.xlu0 %v2827_v54, %s7803_s10  ;;  %2841 = vrot.lane.b32.xlu1 %v2827_v54, %s7804_s15  ;;  %s7811_s15 = smov 89  }
 0x900   : > { %2859 = vrot.lane.b32.xlu0 %v2827_v54, %s7781_s22  ;;  %2848 = vrot.lane.b32.xlu1 %v2827_v54, %s7805_s11  ;;  %s7814_s11 = sld [smem:[#allocation12_spill]] }
 0x904   : > { %2866 = vrot.lane.b32.xlu0 %v2827_v54, %s6422_s0  ;;  %2855 = vrot.lane.b32.xlu1 %v2827_v54, %s7779_s7  ;;  %s7812_s0 = sld [smem:[#allocation9_spill]] }
 0x906   : > { %v3017_v38 = vld [vmem:[%s7814_s11] sm:$0xff]  ;;  %v3019_v22 = vld [vmem:[%s7814_s11 + $0x10] sm:$0xff]  ;;  %v3018_v41 = vld [vmem:[%s7814_s11 + $0x8] sm:$0xff] }
 0x907   : > { %v3020_v42 = vld [vmem:[%s7814_s11 + $0x18] sm:$0xff]  ;;  %s7824_s11 = sld [smem:[#allocation19_spill]] }
 0x908   : > { %2873 = vrot.lane.b32.xlu0 %v2827_v54, %s7806_s3  ;;  %2862 = vrot.lane.b32.xlu1 %v2827_v54, %s7807_s26 }
 0x90a   : > { %v2828_v27 = vld [vmem:[%s7812_s0] sm:$0xff]  ;;  %s7817_s0 = sld [smem:[#allocation16_spill]] }
 0x90c   : > { %2880 = vrot.lane.b32.xlu0 %v2827_v54, %s7808_s16  ;;  %2869 = vrot.lane.b32.xlu1 %v2827_v54, %s7809_s2  ;;  %s7816_s2 = sld [smem:[#allocation14_spill]] }
 0x910   : > { %2876 = vrot.lane.b32.xlu1 %v2827_v54, %s7810_s5  ;;  %2889 = vperm.xlu0 %6075, %v2829_v55   ;;  %v3024_v43 = vld [vmem:[%s7817_s0] sm:$0xff]  ;;  %s7823_s0 = sld [smem:[#allocation18_spill]] }
 0x912   : > { %v3022_v40 = vld [vmem:[%s7816_s2] sm:$0xf]  ;;  %s7709_s2 = smov 7  }
 0x914   : > { %2883 = vrot.lane.b32.xlu1 %v2827_v54, %s7811_s15 }
 0x918   : > { %2967 = vperm.xlu1 %6073, %v2829_v55  }
 0x91c   : > { %6076 = vset.pattern.permute.xlu1 %v6410_v10 }
 0x91d   : > { %2972 = vperm.xlu1 %6076, %v2829_v55  }
 0x921   : > { %6077 = vset.pattern.permute.xlu1 %v6407_v8 }
 0x966   : > { %v2839_v56 = vpop.permute.xlu0 %2838  ;;  %v2832_v57 = vpop.permute.xlu1 %2831 }
 0x96a   : > { %v2846_v58 = vpop.permute.xlu0 %2845  ;;  %v2835_v59 = vpop.permute.xlu1 %2834 }
 0x96b   : > { %v2837_v63 = vsel %vm7705_vm6, %v2832_v57, %v2835_v59 }
 0x96e   : > { %v2842_v62 = vpop.permute.xlu1 %2841  ;;  %v2853_v5 = vpop.permute.xlu0 %2852 }
 0x96f   : > { %v2844_v4 = vsel %vm2685_vm8, %v2839_v56, %v2842_v62  ;;  %vm7813_vm8 = vmmov %vm7800_vm4 }
 0x970   : > { %v5706_v9 = vpack.c.bf16 %v2844_v4, %v2837_v63  ;;  %v3014_v63 = vld [vmem:[%s7815_s23 + $0x8] sm:$0xff]  ;;  %v3015_v4 = vld [vmem:[%s7815_s23 + $0x10] sm:$0xff] }
 0x972   : > { %5707 = vmatpush3.bf16.msra.mxu0 %v5706_v9  ;;  %v2849_v11 = vpop.permute.xlu1 %2848  ;;  %v2860_v2 = vpop.permute.xlu0 %2859 }
 0x973   : > { %5708 = vmatprep.subr.bf16.mxu0 %v6389_v3  ;;  %v2851_v13 = vsel %vm2693_vm9, %v2846_v58, %v2849_v11 }
 0x976   : > { %v2856_v12 = vpop.permute.xlu1 %2855  ;;  %v2867_v60 = vpop.permute.xlu0 %2866 }
 0x977   : > { %v2858_v0 = vsel %vm7798_vm10, %v2853_v5, %v2856_v12  ;;  %v3016_v5 = vld [vmem:[%s7815_s23 + $0x18] sm:$0xff] }
 0x978   : > { %v5709_v14 = vpack.c.bf16 %v2858_v0, %v2851_v13 }
 0x97a   : > { %5710 = vmatpush3.bf16.msra.mxu0 %v5709_v14  ;;  %v2863_v15 = vpop.permute.xlu1 %2862  ;;  %v2874_v17 = vpop.permute.xlu0 %2873 }
 0x97b   : > { %v2865_v46 = vsel %vm2708_vm11, %v2860_v2, %v2863_v15  ;;  %5711 = vmatprep.subr.bf16.mxu0 %v6389_v3 }
 0x97c   : > { %v5712_v61 = vpack.c.bf16 %v2865_v46, %v2827_v54 }
 0x97e   : > { %5713 = vmatpush3.bf16.msra.mxu0 %v5712_v61  ;;  %v2870_v18 = vpop.permute.xlu1 %2869  ;;  %v2881_v26 = vpop.permute.xlu0 %2880 }
 0x97f   : > { %5714 = vmatprep.subr.bf16.mxu0 %v6389_v3  ;;  %v2872_v20 = vsel %vm2716_vm5, %v2867_v60, %v2870_v18 }
 0x982   : > { %v2877_v19 = vpop.permute.xlu1 %2876 }
 0x983   : > { %v2879_v16 = vsel %vm2724_vm3, %v2874_v17, %v2877_v19 }
 0x984   : > { %v5715_v21 = vpack.c.bf16 %v2879_v16, %v2872_v20 }
 0x986   : > { %5716 = vmatpush3.bf16.msra.mxu0 %v5715_v21  ;;  %v2884_v24 = vpop.permute.xlu1 %2883 }
 0x987   : > { %5406 = vmatprep.subr.mxu0 %v6403_v6  ;;  %v2886_v28 = vsel %vm2732_vm12, %v2881_v26, %v2884_v24 }
 0x98a   : > { %5407 = vmatpush3.msra.mxu0 %v2886_v28 }
 0x98b   : > { %5409 = vmatmul.mubr.msk.f32.vlgmr.msra.gmra.mrb[16].mxu0 %vm7813_vm8, %v2828_v27  ;;  %5733 = vmatprep.subr.bf16.mxu0 %v6389_v3 }
 0x98c   : > { %5465 = vmatprep.mubr.msk.f32.mxu0 %vm7732_vm0, %v6403_v6 }
 0x98f   : > { %v2890_v30 = vpop.permute.xlu0 %2889 }
 0x997   : > { %v2968_v32 = vpop.permute.xlu1 %2967 }
 0x99c   : > { %v2973_v37 = vpop.permute.xlu1 %2972 }
 0xa5e   : > { %v2961_v33 = vpop.f32.mrb[16].mxu0 }
 0xa5f   : > { %v2962_v34 = vadd.f32 %v2961_v33, %v2890_v30  ;;  %v5410_v35 = vpop.f32.mrb[17].mxu0 }
 0xa61   : > { %v2965_v36 = vmax.f32 %v2962_v34, 0.0 }
 0xa63   : > { %v2970_v1 = vmul.f32 %v2968_v32, %v2965_v36 }
 0xa65   : > { %v2975_v25 = vadd.f32 %v2973_v37, %v2970_v1 }
 0xa67   : > { %2980 = vrot.lane.b32.xlu1 %v2975_v25, %s7807_s26  ;;  %2977 = vrot.lane.b32.xlu0 %v2975_v25, %s7781_s22 }
 0xa6b   : > { %2987 = vrot.lane.b32.xlu1 %v2975_v25, %s7810_s5  ;;  %2984 = vrot.lane.b32.xlu0 %v2975_v25, %s7806_s3  ;;  %s7818_s5 = sld [smem:[#allocation13_spill]]  ;;  %s7819_s3 = sld [smem:[#allocation17_spill]] }
 0xa6f   : > { %2994 = vrot.lane.b32.xlu1 %v2975_v25, %s7811_s15  ;;  %2991 = vrot.lane.b32.xlu0 %v2975_v25, %s7808_s16  ;;  %s7820_s15 = sld [smem:[#allocation15_spill]] }
 0xa71   : > { %v3021_v26 = vld [vmem:[%s7818_s5] sm:$0xf]  ;;  %v3026_v28 = vld [vmem:[%s7819_s3 + $0x8] sm:$0xff]  ;;  %v3027_v30 = vld [vmem:[%s7819_s3 + $0x10] sm:$0xff]  ;;  %s7710_s5 = smov 6  }
 0xa72   : > { %v3025_v27 = vld [vmem:[%s7819_s3] sm:$0xff]  ;;  %v3028_v33 = vld [vmem:[%s7819_s3 + $0x18] sm:$0xff]  ;;  %v3030_v36 = vld [vmem:[%s7819_s3 + $0x28] sm:$0xff] }
 0xa73   : > { %3040 = vperm.xlu0 %6075, %v3017_v38   ;;  %3045 = vperm.xlu1 %6077, %v3018_v41   ;;  %v5734_v32 = vpack.c.bf16 %v3026_v28, %v3025_v27  ;;  %v5737_v34 = vpack.c.bf16 %v3028_v33, %v3027_v30  ;;  %v3029_v35 = vld [vmem:[%s7819_s3 + $0x20] sm:$0xff]  ;;  %v3031_v1 = vld [vmem:[%s7819_s3 + $0x30] sm:$0xff] }
 0xa74   : > { %v5740_v37 = vpack.c.bf16 %v3030_v36, %v3029_v35  ;;  %v3033_v39 = vld [vmem:[%s7819_s3 + $0x40] sm:$0xff]  ;;  %v3035_v41 = vld [vmem:[%s7819_s3 + $0x50] sm:$0xff]  ;;  %v3397_v36 = vld [vmem:[%s7823_s0 + $0x8] sm:$0xff] }
 0xa75   : > { %5735 = vmatpush3.bf16.msra.mxu0 %v5734_v32 }
 0xa76   : > { %5736 = vmatprep.subr.bf16.mxu0 %v6389_v3 }
 0xa77   : > { %3050 = vperm.xlu0 %6075, %v3019_v22   ;;  %3055 = vperm.xlu1 %6077, %v3020_v42   ;;  %v3034_v22 = vld [vmem:[%s7819_s3 + $0x48] sm:$0xff]  ;;  %v3036_v42 = vld [vmem:[%s7819_s3 + $0x58] sm:$0xff] }
 0xa79   : > { %5738 = vmatpush3.bf16.msra.mxu0 %v5737_v34 }
 0xa7a   : > { %5739 = vmatprep.subr.bf16.mxu0 %v6389_v3 }
 0xa7b   : > { %3161 = vperm.xlu0 %6075, %v3022_v40   ;;  %3240 = vperm.xlu1 %6077, %v3024_v43   ;;  %v5746_v40 = vpack.c.bf16 %v3034_v22, %v3033_v39  ;;  %v5749_v43 = vpack.c.bf16 %v3036_v42, %v3035_v41  ;;  %v3579_v41 = vsub.s32 2, %v6773_v29 }
 0xa7d   : > { %5741 = vmatpush3.bf16.msra.mxu0 %v5740_v37 }
 0xa7e   : > { %5742 = vmatprep.subr.bf16.mxu0 %v6389_v3 }
 0xad9   : > { %v2981_v44 = vpop.permute.xlu1 %2980  ;;  %v2978_v45 = vpop.permute.xlu0 %2977 }
 0xada   : > { %v2983_v49 = vsel %vm2708_vm11, %v2978_v45, %v2981_v44 }
 0xadb   : > { %v2998_v55 = vmax.f32 %v2975_v25, %v2983_v49 }
 0xadd   : > { %v2988_v47 = vpop.permute.xlu1 %2987  ;;  %v2985_v48 = vpop.permute.xlu0 %2984 }
 0xade   : > { %v2990_v53 = vsel %vm2724_vm3, %v2985_v48, %v2988_v47 }
 0xae1   : > { %v2995_v50 = vpop.permute.xlu1 %2994  ;;  %v2992_v52 = vpop.permute.xlu0 %2991 }
 0xae2   : > { %v2997_v54 = vsel %vm2732_vm12, %v2992_v52, %v2995_v50  ;;  %v3023_v52 = vld [vmem:[%s7820_s15] sm:$0xff]  ;;  %s7718_s15 = smov 98  }
 0xae3   : > { %v2999_v56 = vmax.f32 %v2990_v53, %v2997_v54 }
 0xae5   : > { %v7225_v57 = vmax.f32 %v2998_v55, %v2999_v56 }
 0xae7   : > { %vm3001_vm9 = vcmp.eq.f32.partialorder %v2975_v25, %v7225_v57  ;;  %vm3003_vm5 = vcmp.eq.f32.partialorder %v2983_v49, %v7225_v57  ;;  %vm3007_vm3 = vcmp.eq.f32.partialorder %v2990_v53, %v7225_v57  ;;  %v3032_v25 = vld [vmem:[%s7819_s3 + $0x38] sm:$0xff]  ;;  %v3037_v53 = vld [vmem:[%s7819_s3 + $0x60] sm:$0xf]  ;;  %s7712_s3 = smov 5  }
 0xae8   : > { %vm3002_vm4 = vmxor %vm3001_vm9, %vm6411_vm2  ;;  %v5743_v38 = vpack.c.bf16 %v3032_v25, %v3031_v1 }
 0xae9   : > { %vm3004_vm10 = vmand %vm3002_vm4, %vm3003_vm5  ;;  %vm3415_vm5 = vcmask 48128   ;;  %vm7730_vm4 = vcmask 39936  }
 0xaea   : > { %vm3005_vm11 = vmor %vm3001_vm9, %vm3004_vm10  ;;  %5744 = vmatpush3.bf16.msra.mxu0 %v5743_v38 }
 0xaeb   : > { %vm3006_vm8 = vmxor %vm3005_vm11, %vm6411_vm2  ;;  %5745 = vmatprep.subr.bf16.mxu0 %v6389_v3 }
 0xaec   : > { %vm3008_vm12 = vmand %vm3006_vm8, %vm3007_vm3  ;;  %vm3446_vm8 = vcmask 252928   ;;  %vm3454_vm3 = vcmask 244736  }
 0xaed   : > { %v3010_v58 = vsel %vm3008_vm12, 0.0, %v6412_v23  ;;  %vm5054_vm6 = vmneg %vm3005_vm11  ;;  %vm3438_vm11 = vcmask 285696   ;;  %vm3462_vm12 = vcmask 236544  }
 0xaee   : > { %v3011_v59 = vsel %vm3004_vm10, 1.0, %v3010_v58  ;;  %vm5056_vm15 = vmneg %vm3001_vm9  ;;  %5747 = vmatpush3.bf16.msra.mxu0 %v5746_v40  ;;  %vm3407_vm9 = vcmask 56320   ;;  %vm7826_vm10 = vcmask 7168  }
 0xaef   : > { %v5717_v62 = vpack.c.bf16 %v3011_v59, %v6412_v23  ;;  %vm5718_vm1 = vmpackc.low %vm5056_vm15, %vm5054_vm6  ;;  %5748 = vmatprep.subr.bf16.mxu0 %v6389_v3  ;;  %vm7821_vm15 = vcmask 97280   ;;  %vm3319_vm6 = vcmask 818176  }
 0xaf1   : > { %5719 = vmatprep.subr.msk.bf16.mxu1 %vm5718_vm1, %v5717_v62 }
 0xaf2   : > { %5722 = vmatpush3.bf16.msk.msra.mxu1 %vm5718_vm1, %v5717_v62  ;;  %v3046_v9 = vpop.permute.xlu1 %3045  ;;  %v3041_v11 = vpop.permute.xlu0 %3040  ;;  %5750 = vmatpush3.bf16.msra.mxu0 %v5749_v43  ;;  %vm7822_vm1 = vcmask 1043456   ;;  %v3399_v62 = vld [vmem:[%s7824_s11 + $0x8] sm:$0xff] }
 0xaf3   : > { %5723 = vmatprep.subr.bf16.mxu1 %v6389_v3  ;;  %5463 = vmatprep.subr.mxu0 %v6403_v6 }
 0xaf5   : > { %5416 = vmatmul.mubr.msk.f32.vlgmr.msra.gmra.mrb[18].mxu1 %vm7731_vm14, %v3014_v63  ;;  %v3398_v63 = vld [vmem:[%s7824_s11] sm:$0xff]  ;;  %s7834_s11 = smov 6  }
 0xaf6   : > { %5418 = vmatprep.mubr.msk.f32.mxu1 %vm7731_vm14, %v3015_v4  ;;  %v3056_v15 = vpop.permute.xlu1 %3055  ;;  %v3051_v61 = vpop.permute.xlu0 %3050  ;;  %5464 = vmatpush3.msk.msra.mxu0 %vm7822_vm1, %v3037_v53  ;;  %vm7842_vm1 = vmmov %vm7826_vm10 }
 0xaf9   : > { %5419 = vmatmul.mubr.msk.f32.gmra.mrb[20].mxu1 %vm7731_vm14, %v3016_v5 }
 0xafa   : > { %5429 = vmatprep.mubr.msk.f32.mxu1 %vm7732_vm0, %v6403_v6  ;;  %v3162_v44 = vpop.permute.xlu0 %3161  ;;  %v3241_v54 = vpop.permute.xlu1 %3240 }
 0xbc8   : > { %v5417_v2 = vpop.f32.mrb[18].mxu1 }
 0xbc9   : > { %v3142_v12 = vadd.f32 %v5417_v2, %v3046_v9  ;;  %v3136_v13 = vpop.f32.mrb[19].mxu1 }
 0xbca   : > { %v3137_v0 = vadd.f32 %v3136_v13, %v3041_v11 }
 0xbcb   : > { %v3156_v14 = vmax.f32 %v3142_v12, 0.0 }
 0xbcc   : > { %v3155_v46 = vmax.f32 %v3137_v0, 0.0  ;;  %v5420_v60 = vpop.f32.mrb[20].mxu1 }
 0xbcd   : > { %v3152_v18 = vadd.f32 %v5420_v60, %v3056_v15  ;;  %v3146_v17 = vpop.f32.mrb[21].mxu1 }
 0xbce   : > { %v5724_v19 = vpack.c.bf16 %v3156_v14, %v3155_v46  ;;  %v3147_v20 = vadd.f32 %v3146_v17, %v3051_v61 }
 0xbcf   : > { %v3158_v16 = vmax.f32 %v3152_v18, 0.0 }
 0xbd0   : > { %v3157_v21 = vmax.f32 %v3147_v20, 0.0  ;;  %5725 = vmatpush3.bf16.msra.mxu1 %v5724_v19 }
 0xbd1   : > { %5726 = vmatprep.subr.bf16.mxu1 %v6389_v3 }
 0xbd2   : > { %v5727_v24 = vpack.c.bf16 %v3158_v16, %v3157_v21 }
 0xbd4   : > { %5728 = vmatpush3.bf16.msra.mxu1 %v5727_v24 }
 0xbd5   : > { %5729 = vmatprep.subr.bf16.mxu1 %v6389_v3 }
 0xbd7   : > { %5430 = vmatmul.mubr.msk.f32.vlgmr.msra.gmra.mrb[22].mxu1 %vm7733_vm13, %v3021_v26 }
 0xbd8   : > { %5436 = vmatprep.mubr.msk.f32.mxu1 %vm7732_vm0, %v6403_v6 }
 0xcaa   : > { %v3233_v45 = vpop.f32.mrb[22].mxu1 }
 0xcab   : > { %v3234_v47 = vadd.f32 %v3233_v45, %v3162_v44  ;;  %v5431_v48 = vpop.f32.mrb[23].mxu1 }
 0xcac   : > { %v3580_v48 = vrot.slane %v7169_v51, %v3579_v41 }
 0xcad   : > { %v3237_v49 = vmax.f32 %v3234_v47, 0.0 }
 0xcaf   : > { %v5730_v50 = vpack.c.bf16 %v3237_v49, %v7225_v57  ;;  %v3396_v57 = vld [vmem:[%s7823_s0] sm:$0xff]  ;;  %s7833_s0 = smov 93  }
 0xcb1   : > { %5732 = vmatpush3.bf16.msk.msra.mxu1 %vm7069_vm7, %v5730_v50  ;;  %vm7825_vm7 = vcmask 588800  }
 0xcb4   : > { %5437 = vmatmul.mubr.msk.f32.vlgmr.msra.gmra.mrb[24].mxu1 %vm7821_vm15, %v3023_v52  ;;  %vm7827_vm15 = vmmov %vm7825_vm7 }
 0xcb5   : > { %5486 = vmatprep.mubr.msk.f32.mxu1 %vm7825_vm7, %v3396_v57 }
 0xd87   : > { %v3315_v55 = vpop.f32.mrb[24].mxu1 }
 0xd88   : > { %v3316_v56 = vadd.f32 %v3315_v55, %v3241_v54  ;;  %v5438_v58 = vpop.f32.mrb[25].mxu1 }
 0xd8a   : > { %5466 = vmatmul.mubr.msk.f32.vlgmr.msra.gmra.mrb[18].mxu0 %vm3319_vm6, %v3316_v56  ;;  %vm7843_vm6 = vmmov %vm7842_vm1 }
 0xe5d   : > { %v7274_v59 = vpop.f32.mrb[18].mxu0 }
 0xe5e   : > { %3404 = vrot.lane.b32.xlu1 %v7274_v59, %s7709_s2  ;;  %3401 = vrot.lane.b32.xlu0 %v7274_v59, %s7807_s26  ;;  %v5467_v31 = vpop.f32.mrb[19].mxu0  ;;  %s7715_s2 = smov 93  }
 0xe62   : > { %3412 = vrot.lane.b32.xlu1 %v7274_v59, %s7710_s5  ;;  %3409 = vrot.lane.b32.xlu0 %v7274_v59, %s7718_s15  ;;  %s7716_s5 = smov 35   ;;  %s7722_s15 = smov 121  }
 0xe66   : > { %3420 = vrot.lane.b32.xlu1 %v7274_v59, %s7712_s3  ;;  %3417 = vrot.lane.b32.xlu0 %v7274_v59, %s7714_s8  ;;  %s7721_s3 = smov 31   ;;  %s7726_s8 = smov 123  }
 0xe6a   : > { %3428 = vrot.lane.b32.xlu1 %v7274_v59, %s7779_s7  ;;  %3425 = vrot.lane.b32.xlu0 %v7274_v59, %s7715_s2  ;;  %s7719_s2 = smov 30  }
 0xe6e   : > { %3435 = vrot.lane.b32.xlu1 %v7274_v59, %s7716_s5  ;;  %3432 = vrot.lane.b32.xlu0 %v7274_v59, %s7781_s22  ;;  %s7724_s5 = smov 122  }
 0xe72   : > { %3443 = vrot.lane.b32.xlu1 %v7274_v59, %s7721_s3  ;;  %3440 = vrot.lane.b32.xlu0 %v7274_v59, %s7726_s8  ;;  %s7829_s3 = sld [smem:[#allocation20_spill]]  ;;  %s7832_s8 = sld [smem:[#allocation21_spill]] }
 0xe76   : > { %3451 = vrot.lane.b32.xlu1 %v7274_v59, %s7719_s2  ;;  %3448 = vrot.lane.b32.xlu0 %v7274_v59, %s7724_s5  ;;  %s7828_s2 = smov 98   ;;  %s7831_s5 = smov 7  }
 0xe78   : > { %v3584_v51 = vld [vmem:[%s7829_s3 + $0x8] sm:$0xff]  ;;  %v3587_v31 = vld [vmem:[%s7832_s8] sm:$0xff] }
 0xe7a   : > { %3459 = vrot.lane.b32.xlu1 %v7274_v59, %s7803_s10  ;;  %3456 = vrot.lane.b32.xlu0 %v7274_v59, %s7722_s15  ;;  %s7830_s15 = smov 97  }
 0xe7e   : > { %3471 = vperm.xlu1 %6077, %v3399_v62   ;;  %3466 = vperm.xlu0 %6075, %v3398_v63  }
 0xe82   : > { %6078 = vset.pattern.permute.xlu0 %v6406_v7  ;;  %6079 = vset.pattern.permute.xlu1 %v6406_v7 }
 0xe83   : > { %3558 = vperm.xlu0 %6078, %v3398_v63   ;;  %3562 = vperm.xlu1 %6079, %v3399_v62  }
 0xe87   : > { %6081 = vset.pattern.permute.xlu0 %v6410_v10  ;;  %6080 = vset.pattern.permute.xlu1 %v6410_v10 }
 0xe88   : > { %3572 = vperm.xlu0 %6081, %v3399_v62   ;;  %3568 = vperm.xlu1 %6080, %v3398_v63  }
 0xe8c   : > { %6163 = vset.pattern.permute.xlu1 %v6407_v8  ;;  %6162 = vset.pattern.permute.xlu0 %v6407_v8 }
 0xed0   : > { %v3405_v4 = vpop.permute.xlu1 %3404  ;;  %v3402_v5 = vpop.permute.xlu0 %3401 }
 0xed1   : > { %v3408_v2 = vsel %vm3407_vm9, %v3402_v5, %v3405_v4 }
 0xed4   : > { %v3413_v9 = vpop.permute.xlu1 %3412  ;;  %v3410_v11 = vpop.permute.xlu0 %3409 }
 0xed5   : > { %v3416_v12 = vsel %vm3415_vm5, %v3410_v11, %v3413_v9 }
 0xed6   : > { %v5751_v13 = vpack.c.bf16 %v3416_v12, %v3408_v2 }
 0xed8   : > { %v3421_v0 = vpop.permute.xlu1 %3420  ;;  %5752 = vmatprep.subr.bf16.mxu1 %v5751_v13  ;;  %v3418_v14 = vpop.permute.xlu0 %3417 }
 0xed9   : > { %5754 = vmatpush3.bf16.msra.mxu1 %v5751_v13  ;;  %v3424_v60 = vsel %vm7730_vm4, %v3418_v14, %v3421_v0 }
 0xedc   : > { %v3429_v15 = vpop.permute.xlu1 %3428  ;;  %v3426_v46 = vpop.permute.xlu0 %3425 }
 0xedd   : > { %v3431_v61 = vsel %vm7826_vm10, %v3426_v46, %v3429_v15 }
 0xede   : > { %v5755_v18 = vpack.c.bf16 %v3431_v61, %v3424_v60 }
 0xee0   : > { %v3436_v17 = vpop.permute.xlu1 %3435  ;;  %5756 = vmatprep.subr.bf16.mxu1 %v5755_v18  ;;  %v3433_v19 = vpop.permute.xlu0 %3432 }
 0xee1   : > { %v3439_v20 = vsel %vm3438_vm11, %v3433_v19, %v3436_v17  ;;  %5758 = vmatpush3.bf16.msra.mxu1 %v5755_v18 }
 0xee2   : > { %v5759_v16 = vpack.c.bf16 %v3439_v20, %v7274_v59  ;;  %v3588_v59 = vld [vmem:[%s7832_s8 + $0x8] sm:$0xff]  ;;  %s6444_s8 = smov 113  }
 0xee4   : > { %v3444_v21 = vpop.permute.xlu1 %3443  ;;  %5760 = vmatprep.subr.bf16.mxu1 %v5759_v16  ;;  %v3441_v24 = vpop.permute.xlu0 %3440 }
 0xee5   : > { %5762 = vmatpush3.bf16.msra.mxu1 %v5759_v16  ;;  %v3447_v28 = vsel %vm3446_vm8, %v3441_v24, %v3444_v21 }
 0xee8   : > { %v3452_v26 = vpop.permute.xlu1 %3451  ;;  %v3449_v27 = vpop.permute.xlu0 %3448 }
 0xee9   : > { %v3455_v30 = vsel %vm3454_vm3, %v3449_v27, %v3452_v26 }
 0xeea   : > { %v5763_v32 = vpack.c.bf16 %v3455_v30, %v3447_v28 }
 0xeec   : > { %v3460_v33 = vpop.permute.xlu1 %3459  ;;  %5764 = vmatprep.subr.bf16.mxu1 %v5763_v32  ;;  %v3457_v34 = vpop.permute.xlu0 %3456 }
 0xeed   : > { %5766 = vmatpush3.bf16.msra.mxu1 %v5763_v32  ;;  %v3463_v35 = vsel %vm3462_vm12, %v3457_v34, %v3460_v33 }
 0xeee   : > { %5484 = vmatprep.subr.mxu1 %v3463_v35 }
 0xef1   : > { %5485 = vmatpush3.msra.mxu1 %v3463_v35 }
 0xef2   : > { %5487 = vmatmul.mubr.msk.f32.vlgmr.msra.gmra.mrb[26].mxu1 %vm7827_vm15, %v3397_v36  ;;  %5767 = vmatprep.subr.bf16.mxu1 %v6389_v3 }
 0xef3   : > { %5069 = vmatprep.mubr.msk.f32.mxu1 %vm7731_vm14, %v3584_v51 }
 0xefd   : > { %v3467_v37 = vpop.permute.xlu0 %3466  ;;  %v3472_v1 = vpop.permute.xlu1 %3471 }
 0xf02   : > { %v3559_v25 = vpop.permute.xlu0 %3558  ;;  %v3563_v38 = vpop.permute.xlu1 %3562 }
 0xf07   : > { %v3573_v45 = vpop.permute.xlu0 %3572  ;;  %v3569_v49 = vpop.permute.xlu1 %3568 }
 0xfc5   : > { %v5488_v39 = vpop.f32.mrb[26].mxu1 }
 0xfc6   : > { %v3552_v22 = vadd.f32 %v5488_v39, %v3472_v1  ;;  %v3546_v40 = vpop.f32.mrb[27].mxu1 }
 0xfc7   : > { %v3547_v42 = vadd.f32 %v3546_v40, %v3467_v37 }
 0xfc8   : > { %v3556_v43 = vmax.f32 %v3552_v22, 0.0 }
 0xfc9   : > { %v3555_v44 = vmax.f32 %v3547_v42, 0.0 }
 0xfca   : > { %v3566_v47 = vmul.f32 %v3563_v38, %v3556_v43 }
 0xfcb   : > { %v3565_v50 = vmul.f32 %v3559_v25, %v3555_v44 }
 0xfcc   : > { %v3576_v52 = vadd.f32 %v3573_v45, %v3566_v47 }
 0xfcd   : > { %v3575_v53 = vadd.f32 %v3569_v49, %v3565_v50 }
 0xfce   : > { %v7332_v54 = vmul.f32 %v3580_v48, %v3576_v52 }
 0xfcf   : > { %v7334_v55 = vmul.f32 %v3580_v48, %v3575_v53 }
 0xfd1   : > { %v6092_v56 = vpack.i.bf16 %v7332_v54, %v7334_v55  ;;  %v5780_v58 = vpack.c.bf16 %v7332_v54, %v7334_v55 }
 0xfd3   : > { %6093 = vrot.lane.b32.xlu0 %v6092_v56, %s7828_s2  ;;  %6083 = vrot.lane.b32.xlu1 %v6092_v56, %s7807_s26  ;;  %s7836_s2 = smov 123   ;;  %s7837_s26 = smov 122  }
 0xfd7   : > { %6103 = vrot.lane.b32.xlu0 %v6092_v56, %s7830_s15  ;;  %6088 = vrot.lane.b32.xlu1 %v6092_v56, %s7831_s5  ;;  %s7839_s15 = smov 121   ;;  %s7840_s5 = smov 31  }
 0xfdb   : > { %6113 = vrot.lane.b32.xlu0 %v6092_v56, %s7833_s0  ;;  %6098 = vrot.lane.b32.xlu1 %v6092_v56, %s7834_s11  ;;  %s7844_s11 = sld [smem:[#allocation22_spill]]  ;;  %s7845_s0 = sld [smem:[#allocation23_spill]] }
 0xfdf   : > { %6123 = vrot.lane.b32.xlu0 %v6092_v56, %s7781_s22  ;;  %6108 = vrot.lane.b32.xlu1 %v6092_v56, %s7835_s12 }
 0xfe3   : > { %6133 = vrot.lane.b32.xlu0 %v6092_v56, %s7836_s2  ;;  %6118 = vrot.lane.b32.xlu1 %v6092_v56, %s7779_s7 }
 0xfe7   : > { %6143 = vrot.lane.b32.xlu0 %v6092_v56, %s7837_s26  ;;  %6128 = vrot.lane.b32.xlu1 %v6092_v56, %s7838_s13 }
 0xfeb   : > { %6153 = vrot.lane.b32.xlu0 %v6092_v56, %s7839_s15  ;;  %6138 = vrot.lane.b32.xlu1 %v6092_v56, %s7840_s5  ;;  %s7739_s5 = smov 4  }
 0xfef   : > { %6148 = vrot.lane.b32.xlu1 %v6092_v56, %s7841_s14  ;;  %3705 = vperm.xlu0 %6162, %v3587_v31  }
 0xff3   : > { %6158 = vrot.lane.b32.xlu1 %v6092_v56, %s7803_s10  ;;  %6165 = vset.pattern.permute.xlu0 %v6406_v7 }
 0xff4   : > { %3801 = vperm.xlu0 %6165, %v3588_v59  }
 0xff7   : > { %3710 = vperm.xlu1 %6163, %v3588_v59  }
 0xff8   : > { %6167 = vset.pattern.permute.xlu0 %v6407_v8 }
 0xffb   : > { %6164 = vset.pattern.permute.xlu1 %v6406_v7 }
 0xffc   : > { %3797 = vperm.xlu1 %6164, %v3587_v31  }
0x1000   : > { %6166 = vset.pattern.permute.xlu1 %v6410_v10 }
0x1001   : > { %3807 = vperm.xlu1 %6166, %v3587_v31  }
0x1005   : > { %3811 = vperm.xlu1 %6166, %v3588_v59  }
0x1009   : > { %6168 = vset.pattern.permute.xlu1 %v6407_v8 }
0x1045   : > { %v6094_v57 = vpop.permute.xlu0 %6093  ;;  %v6084_v62 = vpop.permute.xlu1 %6083 }
0x1046   : > { %v6086_v5 = vunpack.i.h.bf16 %v6084_v62  ;;  %v6085_v9 = vunpack.i.l.bf16 %v6084_v62  ;;  %v6096_v46 = vunpack.i.h.bf16 %v6094_v57  ;;  %v6095_v60 = vunpack.i.l.bf16 %v6094_v57 }
0x1049   : > { %v6104_v63 = vpop.permute.xlu0 %6103  ;;  %v6089_v4 = vpop.permute.xlu1 %6088 }
0x104a   : > { %v6091_v11 = vunpack.i.h.bf16 %v6089_v4  ;;  %v6090_v2 = vunpack.i.l.bf16 %v6089_v4  ;;  %v6106_v21 = vunpack.i.h.bf16 %v6104_v63  ;;  %v6105_v24 = vunpack.i.l.bf16 %v6104_v63 }
0x104c   : > { %v3603_v12 = vsel %vm3407_vm9, %v6085_v9, %v6090_v2  ;;  %v3604_v13 = vsel %vm3407_vm9, %v6086_v5, %v6091_v11 }
0x104d   : > { %v5768_v0 = vpack.c.bf16 %v3604_v13, %v3603_v12  ;;  %v6114_v14 = vpop.permute.xlu0 %6113  ;;  %v6099_v15 = vpop.permute.xlu1 %6098 }
0x104e   : > { %v6101_v61 = vunpack.i.h.bf16 %v6099_v15  ;;  %v6100_v18 = vunpack.i.l.bf16 %v6099_v15  ;;  %v6116_v35 = vunpack.i.h.bf16 %v6114_v14  ;;  %v6115_v36 = vunpack.i.l.bf16 %v6114_v14 }
0x104f   : > { %5769 = vmatpush1.bf16.msra.mxu1 %v5768_v0 }
0x1050   : > { %v3618_v17 = vsel %vm3415_vm5, %v6096_v46, %v6101_v61  ;;  %v3617_v19 = vsel %vm3415_vm5, %v6095_v60, %v6100_v18  ;;  %5770 = vmatprep.subr.bf16.mxu1 %v6389_v3  ;;  %v3583_v61 = vld [vmem:[%s7829_s3] sm:$0xff]  ;;  %v3586_v18 = vld [vmem:[%s7829_s3 + $0x18] sm:$0xff] }
0x1051   : > { %v5771_v20 = vpack.c.bf16 %v3618_v17, %v3617_v19  ;;  %v6109_v16 = vpop.permute.xlu1 %6108  ;;  %v6124_v28 = vpop.permute.xlu0 %6123  ;;  %v3585_v17 = vld [vmem:[%s7829_s3 + $0x10] sm:$0xff]  ;;  %s7865_s3 = sld [smem:[#allocation29_spill]] }
0x1052   : > { %v6111_v26 = vunpack.i.h.bf16 %v6109_v16  ;;  %v6110_v27 = vunpack.i.l.bf16 %v6109_v16  ;;  %v6126_v43 = vunpack.i.h.bf16 %v6124_v28  ;;  %v6125_v44 = vunpack.i.l.bf16 %v6124_v28 }
0x1053   : > { %5772 = vmatpush1.bf16.msra.mxu1 %v5771_v20 }
0x1054   : > { %v3632_v30 = vsel %vm7730_vm4, %v6106_v21, %v6111_v26  ;;  %v3631_v32 = vsel %vm7730_vm4, %v6105_v24, %v6110_v27  ;;  %5773 = vmatprep.subr.bf16.mxu1 %v6389_v3 }
0x1055   : > { %v5774_v33 = vpack.c.bf16 %v3632_v30, %v3631_v32  ;;  %v6119_v34 = vpop.permute.xlu1 %6118  ;;  %v6134_v39 = vpop.permute.xlu0 %6133 }
0x1056   : > { %v6121_v37 = vunpack.i.h.bf16 %v6119_v34  ;;  %v6120_v1 = vunpack.i.l.bf16 %v6119_v34  ;;  %v6136_v53 = vunpack.i.h.bf16 %v6134_v39  ;;  %v6135_v56 = vunpack.i.l.bf16 %v6134_v39  ;;  %v3890_v39 = vld [vmem:[%s7844_s11] sm:$0xff] }
0x1057   : > { %5775 = vmatpush1.bf16.msra.mxu1 %v5774_v33  ;;  %5497 = vmatprep.mubr.msk.f32.mxu0 %vm7733_vm13, %v3890_v39 }
0x1058   : > { %v3646_v25 = vsel %vm7842_vm1, %v6116_v35, %v6121_v37  ;;  %v3645_v38 = vsel %vm7843_vm6, %v6115_v36, %v6120_v1  ;;  %5776 = vmatprep.subr.bf16.mxu1 %v6389_v3 }
0x1059   : > { %v5777_v22 = vpack.c.bf16 %v3646_v25, %v3645_v38  ;;  %v6129_v40 = vpop.permute.xlu1 %6128  ;;  %v6144_v52 = vpop.permute.xlu0 %6143 }
0x105a   : > { %v6131_v41 = vunpack.i.h.bf16 %v6129_v40  ;;  %v6130_v42 = vunpack.i.l.bf16 %v6129_v40  ;;  %v6146_v4 = vunpack.i.h.bf16 %v6144_v52  ;;  %v6145_v5 = vunpack.i.l.bf16 %v6144_v52  ;;  %v3898_v40 = vld [vmem:[%s7845_s0] sm:$0xff] }
0x105b   : > { %5778 = vmatpush1.bf16.msra.mxu1 %v5777_v22  ;;  %v3899_v22 = vld [vmem:[%s7845_s0 + $0x8] sm:$0xff] }
0x105c   : > { %5779 = vmatprep.subr.bf16.mxu1 %v6389_v3  ;;  %v3660_v47 = vsel %vm3438_vm11, %v6126_v43, %v6131_v41  ;;  %v3659_v48 = vsel %vm3438_vm11, %v6125_v44, %v6130_v42  ;;  %v3900_v41 = vld [vmem:[%s7845_s0 + $0x10] sm:$0xff]  ;;  %v3901_v42 = vld [vmem:[%s7845_s0 + $0x18] sm:$0xff]  ;;  %v3902_v43 = vld [vmem:[%s7845_s0 + $0x20] sm:$0xff] }
0x105d   : > { %v6139_v45 = vpop.permute.xlu1 %6138  ;;  %v5783_v51 = vpack.c.bf16 %v3660_v47, %v3659_v48  ;;  %v6154_v9 = vpop.permute.xlu0 %6153  ;;  %v3903_v44 = vld [vmem:[%s7845_s0 + $0x28] sm:$0xff]  ;;  %v3905_v47 = vld [vmem:[%s7845_s0 + $0x38] sm:$0xff] }
0x105e   : > { %v6141_v49 = vunpack.i.h.bf16 %v6139_v45  ;;  %v6140_v50 = vunpack.i.l.bf16 %v6139_v45  ;;  %v6156_v13 = vunpack.i.h.bf16 %v6154_v9  ;;  %v6155_v0 = vunpack.i.l.bf16 %v6154_v9  ;;  %v3904_v45 = vld [vmem:[%s7845_s0 + $0x30] sm:$0xff]  ;;  %s7742_s0 = smov 115  }
0x105f   : > { %5781 = vmatpush1.bf16.msra.mxu1 %v5780_v58 }
0x1060   : > { %5782 = vmatprep.subr.bf16.mxu1 %v6389_v3  ;;  %v3674_v31 = vsel %vm3446_vm8, %v6136_v53, %v6141_v49  ;;  %v3673_v57 = vsel %vm3446_vm8, %v6135_v56, %v6140_v50 }
0x1061   : > { %v6149_v59 = vpop.permute.xlu1 %6148  ;;  %v5786_v54 = vpack.c.bf16 %v3674_v31, %v3673_v57 }
0x1062   : > { %v6151_v62 = vunpack.i.h.bf16 %v6149_v59  ;;  %v6150_v63 = vunpack.i.l.bf16 %v6149_v59 }
0x1063   : > { %5784 = vmatpush1.bf16.msra.mxu1 %v5783_v51 }
0x1064   : > { %5785 = vmatprep.subr.bf16.mxu1 %v6389_v3  ;;  %v3688_v58 = vsel %vm3454_vm3, %v6146_v4, %v6151_v62  ;;  %v3687_v11 = vsel %vm3454_vm3, %v6145_v5, %v6150_v63 }
0x1065   : > { %v6159_v55 = vpop.permute.xlu1 %6158  ;;  %v5789_v14 = vpack.c.bf16 %v3688_v58, %v3687_v11 }
0x1066   : > { %v6161_v2 = vunpack.i.h.bf16 %v6159_v55  ;;  %v6160_v12 = vunpack.i.l.bf16 %v6159_v55 }
0x1067   : > { %5787 = vmatpush1.bf16.msra.mxu1 %v5786_v54 }
0x1068   : > { %5788 = vmatprep.subr.bf16.mxu1 %v6389_v3  ;;  %v3702_v15 = vsel %vm3462_vm12, %v6156_v13, %v6161_v2  ;;  %v3701_v46 = vsel %vm3462_vm12, %v6155_v0, %v6160_v12 }
0x1069   : > { %v5792_v60 = vpack.c.bf16 %v3702_v15, %v3701_v46 }
0x106b   : > { %5790 = vmatpush1.bf16.msra.mxu1 %v5789_v14 }
0x106c   : > { %5791 = vmatprep.subr.bf16.mxu1 %v6389_v3 }
0x106e   : > { %v3706_v16 = vpop.permute.xlu0 %3705 }
0x106f   : > { %5793 = vmatpush1.bf16.msra.mxu1 %v5792_v60 }
0x1070   : > { %5828 = vmatprep.subr.bf16.mxu1 %v6389_v3 }
0x1072   : > { %3784 = vmatmul.mubr.f32.vlgmr.msra.gmra.mrb[28].mxu1 %v3583_v61 }
0x1073   : > { %5070 = vmatprep.mubr.msk.f32.mxu1 %vm7731_vm14, %v3586_v18  ;;  %v3802_v35 = vpop.permute.xlu0 %3801 }
0x1076   : > { %3789 = vmatmul.mubr.f32.gmra.mrb[30].mxu1 %v3585_v17  ;;  %v3711_v19 = vpop.permute.xlu1 %3710 }
0x107b   : > { %v3798_v20 = vpop.permute.xlu1 %3797 }
0x1080   : > { %v3808_v28 = vpop.permute.xlu1 %3807 }
0x1084   : > { %v3812_v25 = vpop.permute.xlu1 %3811 }
0x1145   : > { %v3785_v21 = vpop.f32.mrb[28].mxu1 }
0x1146   : > { %v3786_v24 = vadd.f32 %v3785_v21, %v3706_v16  ;;  %v3787_v26 = vpop.f32.mrb[29].mxu1 }
0x1147   : > { %v6439_v26 = vmov 1.0|1.0  }
0x1148   : > { %v3794_v27 = vmax.f32 %v3786_v24, 0.0 }
0x1149   : > { %v3790_v30 = vpop.f32.mrb[30].mxu1 }
0x114a   : > { %v3804_v32 = vmul.f32 %v3798_v20, %v3794_v27  ;;  %v3791_v33 = vadd.f32 %v3790_v30, %v3711_v19  ;;  %v3792_v34 = vpop.f32.mrb[31].mxu1  ;;  %v3892_v27 = vld [vmem:[%s7844_s11 + $0x10] sm:$0xff]  ;;  %v3894_v30 = vld [vmem:[%s7844_s11 + $0x20] sm:$0xff] }
0x114b   : > { %v3897_v34 = vld [vmem:[%s7844_s11 + $0x38] sm:$0xff] }
0x114c   : > { %v7397_v36 = vadd.f32 %v3808_v28, %v3804_v32  ;;  %v3795_v37 = vmax.f32 %v3791_v33, 0.0  ;;  %v3893_v28 = vld [vmem:[%s7844_s11 + $0x18] sm:$0xff]  ;;  %v3895_v32 = vld [vmem:[%s7844_s11 + $0x28] sm:$0xff]  ;;  %v3896_v33 = vld [vmem:[%s7844_s11 + $0x30] sm:$0xff] }
0x114e   : > { %v3805_v1 = vmul.f32 %v3802_v35, %v3795_v37  ;;  %3818 = vrot.lane.b32.xlu0 %v7397_v36, %s7781_s22 }
0x1150   : > { %v7401_v38 = vadd.f32 %v3812_v25, %v3805_v1 }
0x1152   : > { %3820 = vrot.lane.b32.xlu1 %v7401_v38, %s7781_s22  ;;  %3824 = vrot.lane.b32.xlu0 %v7397_v36, %s7838_s13 }
0x1156   : > { %3826 = vrot.lane.b32.xlu1 %v7401_v38, %s7838_s13  ;;  %3832 = vrot.lane.b32.xlu0 %v7397_v36, %s7837_s26  ;;  %s7846_s13 = sld [smem:[#allocation25_spill]] }
0x115a   : > { %3834 = vrot.lane.b32.xlu1 %v7401_v38, %s7837_s26  ;;  %3838 = vrot.lane.b32.xlu0 %v7397_v36, %s7841_s14  ;;  %s7861_s26 = sld [smem:[#allocation26_spill]] }
0x115c   : > { %v3907_v48 = vld [vmem:[%s7846_s13] sm:$0x3f]  ;;  %s7741_s13 = smov 116  }
0x115e   : > { %3840 = vrot.lane.b32.xlu1 %v7401_v38, %s7841_s14  ;;  %3846 = vrot.lane.b32.xlu0 %v7397_v36, %s7839_s15  ;;  %s7847_s14 = sld [smem:[#allocation27_spill]] }
0x1162   : > { %3848 = vrot.lane.b32.xlu1 %v7401_v38, %s7839_s15  ;;  %3852 = vrot.lane.b32.xlu0 %v7397_v36, %s7803_s10  ;;  %s7862_s15 = sld [smem:[#allocation28_spill]] }
0x1164   : > { %v3910_v49 = vld [vmem:[%s7847_s14] sm:$0xff]  ;;  %v3911_v50 = vld [vmem:[%s7847_s14 + $0x8] sm:$0xff]  ;;  %s7745_s14 = smov 15  }
0x1166   : > { %3854 = vrot.lane.b32.xlu1 %v7401_v38, %s7803_s10  ;;  %3919 = vperm.xlu0 %6167, %v3898_v40   ;;  %s7860_s10 = sld [smem:[#allocation24_spill]] }
0x1168   : > { %v3914_v18 = vld [vmem:[%s7862_s15 + $0x10] sm:$0xff] }
0x116a   : > { %3924 = vperm.xlu1 %6168, %v3899_v22   ;;  %3934 = vperm.xlu0 %6167, %v3901_v42  }
0x116e   : > { %3929 = vperm.xlu1 %6168, %v3900_v41   ;;  %3944 = vperm.xlu0 %6167, %v3903_v44  }
0x1172   : > { %3939 = vperm.xlu1 %6168, %v3902_v43   ;;  %3954 = vperm.xlu0 %6167, %v3905_v47  }
0x1176   : > { %3949 = vperm.xlu1 %6168, %v3904_v45   ;;  %4176 = vperm.xlu0 %6167, %v3910_v49  }
0x117a   : > { %4096 = vperm.xlu1 %6168, %v3907_v48  }
0x117e   : > { %4181 = vperm.xlu1 %6168, %v3911_v50  }
0x11c0   : > { %v3819_v52 = vpop.permute.xlu0 %3818 }
0x11c4   : > { %v3821_v53 = vpop.permute.xlu1 %3820  ;;  %v3825_v56 = vpop.permute.xlu0 %3824 }
0x11c5   : > { %v3830_v4 = vsel %vm3438_vm11, %v3819_v52, %v3825_v56 }
0x11c6   : > { %v3860_v58 = vmax.f32 %v7397_v36, %v3830_v4 }
0x11c8   : > { %v3827_v51 = vpop.permute.xlu1 %3826  ;;  %v3833_v59 = vpop.permute.xlu0 %3832 }
0x11c9   : > { %v3831_v2 = vsel %vm3438_vm11, %v3821_v53, %v3827_v51 }
0x11ca   : > { %v3861_v15 = vmax.f32 %v7401_v38, %v3831_v2 }
0x11cc   : > { %v3835_v31 = vpop.permute.xlu1 %3834  ;;  %v3839_v57 = vpop.permute.xlu0 %3838 }
0x11cd   : > { %v3844_v54 = vsel %vm3454_vm3, %v3833_v59, %v3839_v57 }
0x11d0   : > { %v3841_v62 = vpop.permute.xlu1 %3840  ;;  %v3847_v63 = vpop.permute.xlu0 %3846 }
0x11d1   : > { %v3845_v0 = vsel %vm3454_vm3, %v3835_v31, %v3841_v62 }
0x11d4   : > { %v3849_v5 = vpop.permute.xlu1 %3848  ;;  %v3853_v9 = vpop.permute.xlu0 %3852 }
0x11d5   : > { %v3858_v55 = vsel %vm3462_vm12, %v3847_v63, %v3853_v9 }
0x11d6   : > { %v3862_v11 = vmax.f32 %v3844_v54, %v3858_v55 }
0x11d8   : > { %v3864_v12 = vmax.f32 %v3860_v58, %v3862_v11  ;;  %v3855_v13 = vpop.permute.xlu1 %3854 }
0x11d9   : > { %v3859_v14 = vsel %vm3462_vm12, %v3849_v5, %v3855_v13  ;;  %v3908_v13 = vld [vmem:[%s7861_s26] sm:$0xff] }
0x11da   : > { %v3863_v46 = vmax.f32 %v3845_v0, %v3859_v14  ;;  %vm3866_vm7 = vcmp.eq.f32.partialorder %v7397_v36, %v3864_v12  ;;  %vm3870_vm9 = vcmp.eq.f32.partialorder %v3830_v4, %v3864_v12 }
0x11db   : > { %vm3868_vm5 = vmxor %vm3866_vm7, %vm6411_vm2 }
0x11dc   : > { %v3865_v60 = vmax.f32 %v3861_v15, %v3863_v46  ;;  %vm7450_vm10 = vmand %vm3868_vm5, %vm3870_vm9  ;;  %vm3878_vm5 = vcmp.eq.f32.partialorder %v3844_v54, %v3864_v12  ;;  %v3912_v15 = vld [vmem:[%s7862_s15] sm:$0xff]  ;;  %v3913_v46 = vld [vmem:[%s7862_s15 + $0x8] sm:$0xff] }
0x11dd   : > { %vm7458_vm11 = vmor %vm3866_vm7, %vm7450_vm10 }
0x11de   : > { %vm3867_vm8 = vcmp.eq.f32.partialorder %v7401_v38, %v3865_v60  ;;  %vm3871_vm3 = vcmp.eq.f32.partialorder %v3831_v2, %v3865_v60  ;;  %vm3876_vm12 = vmxor %vm7458_vm11, %vm6411_vm2  ;;  %v7466_v17 = vpack.c.bf16 %v3865_v60, %v3864_v12  ;;  %vm3879_vm4 = vcmp.eq.f32.partialorder %v3845_v0, %v3865_v60  ;;  %v3906_v12 = vld [vmem:[%s7860_s10] sm:$0x3f]  ;;  %s7740_s10 = smov 3  }
0x11df   : > { %vm3869_vm15 = vmxor %vm3867_vm8, %vm6411_vm2 }
0x11e0   : > { %vm3873_vm1 = vmand %vm3869_vm15, %vm3871_vm3 }
0x11e1   : > { %vm3875_vm6 = vmor %vm3867_vm8, %vm3873_vm1 }
0x11e2   : > { %vm3877_vm9 = vmxor %vm3875_vm6, %vm6411_vm2 }
0x11e3   : > { %vm3880_vm14 = vmand %vm3876_vm12, %vm3878_vm5  ;;  %vm4191_vm5 = vcmask 1045504  }
0x11e4   : > { %vm3881_vm0 = vmand %vm3877_vm9, %vm3879_vm4  ;;  %v3884_v19 = vsel %vm3880_vm14, 0.0, %v6412_v23  ;;  %vm4184_vm9 = vcmask 179200  }
0x11e5   : > { %v3885_v20 = vsel %vm3881_vm0, 0.0, %v6412_v23  ;;  %vm5071_vm13 = vmneg %vm7458_vm11  ;;  %v3886_v16 = vsel %vm7450_vm10, 1.0, %v3884_v19  ;;  %v3891_v23 = vld [vmem:[%s7844_s11 + $0x8] sm:$0xff]  ;;  %v3920_v35 = vpop.permute.xlu0 %3919  ;;  %v3915_v19 = vld [vmem:[%s7862_s15 + $0x18] sm:$0xff]  ;;  %s7866_s11 = sld [smem:[#allocation30_spill]] }
0x11e6   : > { %v3887_v21 = vsel %vm3873_vm1, 1.0, %v3885_v20  ;;  %vm5073_vm3 = vmneg %vm3875_vm6  ;;  %vm7859_vm1 = vmmov 0   ;;  %vm4099_vm6 = vcmask 523264  }
0x11e7   : > { %vm5794_vm2 = vmpackc.low %vm5073_vm3, %vm5071_vm13  ;;  %v5798_v24 = vpack.c.bf16 %v3887_v21, %v3886_v16  ;;  %vm7852_vm13 = vcmask 261120   ;;  %v5820_v16 = vpack.c.bf16 %v3913_v46, %v3912_v15  ;;  %v3909_v21 = vld [vmem:[%s7861_s26 + $0x8] sm:$0xff]  ;;  %vm7863_vm3 = vcmask 1043456  }
0x11e8   : > { %5795 = vmatprep.subr.msk.bf16.mxu0 %vm5794_vm2, %v6439_v26  ;;  %vm5075_vm14 = vmneg %vm3866_vm7 }
0x11e9   : > { %5797 = vmatpush3.bf16.msk.msra.mxu0 %vm5794_vm2, %v6439_v26  ;;  %vm5077_vm0 = vmneg %vm3867_vm8  ;;  %v3925_v36 = vpop.permute.xlu1 %3924  ;;  %v3935_v37 = vpop.permute.xlu0 %3934 }
0x11ea   : > { %vm5799_vm4 = vmpackc.low %vm5077_vm0, %vm5075_vm14  ;;  %vm4270_vm14 = vcmask 293888   ;;  %vm7867_vm0 = vcmask 130048  }
0x11eb   : > { %5800 = vmatprep.subr.msk.bf16.mxu0 %vm5799_vm4, %v5798_v24  ;;  %vm7853_vm10 = vmmov %vm7852_vm13 }
0x11ec   : > { %vm7854_vm7 = vmmov %vm7853_vm10 }
0x11ed   : > { %5803 = vmatpush3.bf16.msk.msra.mxu0 %vm5799_vm4, %v5798_v24  ;;  %vm7855_vm11 = vmmov %vm7854_vm7  ;;  %v3930_v25 = vpop.permute.xlu1 %3929  ;;  %v3945_v45 = vpop.permute.xlu0 %3944  ;;  %v5824_v24 = vpack.c.bf16 %v3915_v19, %v3914_v18  ;;  %vm7868_vm4 = vcmask 39936  }
0x11ee   : > { %5804 = vmatprep.subr.bf16.mxu0 %v6389_v3  ;;  %vm7856_vm8 = vmmov %vm7854_vm7 }
0x11ef   : > { %vm7857_vm12 = vmmov %vm7854_vm7 }
0x11f0   : > { %5498 = vmatmul.mubr.msk.f32.vlgmr.msra.gmra.mrb[20].mxu0 %vm7852_vm13, %v3891_v23  ;;  %vm7858_vm15 = vmmov %vm7854_vm7 }
0x11f1   : > { %5500 = vmatprep.mubr.msk.f32.mxu0 %vm7853_vm10, %v3892_v27  ;;  %v3940_v49 = vpop.permute.xlu1 %3939  ;;  %v3955_v57 = vpop.permute.xlu0 %3954  ;;  %vm7864_vm2 = vmmov %vm7863_vm3  ;;  %vm4389_vm10 = vcmask 31744  }
0x11f2   : > { %vm7869_vm13 = vmmov %vm7868_vm4 }
0x11f4   : > { %5501 = vmatmul.mubr.msk.f32.gmra.mrb[22].mxu0 %vm7854_vm7, %v3893_v28  ;;  %vm4404_vm7 = vcmask 23552  }
0x11f5   : > { %5503 = vmatprep.mubr.msk.f32.mxu0 %vm7855_vm11, %v3894_v30  ;;  %v3950_v4 = vpop.permute.xlu1 %3949  ;;  %v4177_v23 = vpop.permute.xlu0 %4176  ;;  %vm7870_vm11 = vcmask 7168  }
0x11f8   : > { %5504 = vmatmul.mubr.msk.f32.gmra.mrb[24].mxu0 %vm7856_vm8, %v3895_v32  ;;  %vm7871_vm8 = vmmov %vm7870_vm11 }
0x11f9   : > { %5506 = vmatprep.mubr.msk.f32.mxu0 %vm7857_vm12, %v3896_v33  ;;  %v4097_v0 = vpop.permute.xlu1 %4096  ;;  %vm4433_vm12 = vcmask 121856  }
0x11fc   : > { %5507 = vmatmul.mubr.msk.f32.gmra.mrb[26].mxu0 %vm7858_vm15, %v3897_v34  ;;  %vm4448_vm15 = vcmask 105472  }
0x11fd   : > { %5525 = vmatprep.mubr.msk.f32.mxu0 %vm7859_vm1, %v6403_v6  ;;  %v4182_v28 = vpop.permute.xlu1 %4181  ;;  %vm7872_vm1 = vcmask 97280  }
0x12c3   : > { %v5499_v1 = vpop.f32.mrb[20].mxu0 }
0x12c4   : > { %v4053_v38 = vadd.f32 %v5499_v1, %v3925_v36  ;;  %v4047_v39 = vpop.f32.mrb[21].mxu0  ;;  %v4360_v1 = vld [vmem:[%s7866_s11 + $0x8] sm:$0xff] }
0x12c5   : > { %v4048_v22 = vadd.f32 %v4047_v39, %v3920_v35 }
0x12c6   : > { %v4087_v40 = vmax.f32 %v4053_v38, 0.0 }
0x12c7   : > { %v4086_v41 = vmax.f32 %v4048_v22, 0.0  ;;  %v5502_v42 = vpop.f32.mrb[22].mxu0 }
0x12c8   : > { %v4063_v43 = vadd.f32 %v5502_v42, %v3935_v37  ;;  %v4057_v44 = vpop.f32.mrb[23].mxu0  ;;  %v4356_v37 = vld [vmem:[%s7865_s3 + $0x8] sm:$0xff] }
0x12c9   : > { %v5805_v47 = vpack.c.bf16 %v4087_v40, %v4086_v41  ;;  %v4058_v48 = vadd.f32 %v4057_v44, %v3930_v25  ;;  %5094 = vmatprep.mubr.msk.f32.mxu1 %vm7867_vm0, %v4356_v37  ;;  %v4359_v25 = vld [vmem:[%s7866_s11] sm:$0xff] }
0x12ca   : > { %v4089_v50 = vmax.f32 %v4063_v43, 0.0 }
0x12cb   : > { %v4088_v52 = vmax.f32 %v4058_v48, 0.0  ;;  %v5505_v6 = vpop.f32.mrb[24].mxu0  ;;  %5806 = vmatpush3.bf16.msra.mxu0 %v5805_v47 }
0x12cc   : > { %v4073_v53 = vadd.f32 %v5505_v6, %v3945_v45  ;;  %v4067_v56 = vpop.f32.mrb[25].mxu0  ;;  %5807 = vmatprep.subr.bf16.mxu0 %v6389_v3 }
0x12cd   : > { %v5808_v51 = vpack.c.bf16 %v4089_v50, %v4088_v52  ;;  %v4068_v59 = vadd.f32 %v4067_v56, %v3940_v49 }
0x12ce   : > { %v4091_v31 = vmax.f32 %v4073_v53, 0.0 }
0x12cf   : > { %v4090_v62 = vmax.f32 %v4068_v59, 0.0  ;;  %v5508_v63 = vpop.f32.mrb[26].mxu0  ;;  %5809 = vmatpush3.bf16.msra.mxu0 %v5808_v51 }
0x12d0   : > { %v4083_v5 = vadd.f32 %v5508_v63, %v3955_v57  ;;  %v4077_v9 = vpop.f32.mrb[27].mxu0  ;;  %5810 = vmatprep.subr.bf16.mxu0 %v6389_v3 }
0x12d1   : > { %v5811_v54 = vpack.c.bf16 %v4091_v31, %v4090_v62  ;;  %v4078_v55 = vadd.f32 %v4077_v9, %v3950_v4 }
0x12d2   : > { %v4093_v58 = vmax.f32 %v4083_v5, 0.0 }
0x12d3   : > { %v4092_v11 = vmax.f32 %v4078_v55, 0.0  ;;  %5812 = vmatpush3.bf16.msra.mxu0 %v5811_v54 }
0x12d4   : > { %5813 = vmatprep.subr.bf16.mxu0 %v6389_v3 }
0x12d5   : > { %v5814_v2 = vpack.c.bf16 %v4093_v58, %v4092_v11 }
0x12d7   : > { %5815 = vmatpush3.bf16.msra.mxu0 %v5814_v2 }
0x12d8   : > { %5817 = vmatprep.subr.bf16.mxu0 %v7466_v17 }
0x12da   : > { %5526 = vmatmul.mubr.msk.f32.vlgmr.msra.gmra.mrb[28].mxu0 %vm4099_vm6, %v3906_v12  ;;  %vm7873_vm6 = vmmov %vm7872_vm1 }
0x12db   : > { %5819 = vmatpush3.bf16.msra.mxu0 %v7466_v17  ;;  %5534 = vmatprep.mubr.msk.f32.mxu0 %vm4184_vm9, %v3908_v13  ;;  %v3916_v17 = vld [vmem:[%s7862_s15 + $0x20] sm:$0xf] }
0x13ad   : > { %v4169_v14 = vpop.f32.mrb[28].mxu0 }
0x13ae   : > { %v4170_v60 = vadd.f32 %v4169_v14, %v4097_v0  ;;  %v5527_v61 = vpop.f32.mrb[29].mxu0 }
0x13b0   : > { %v4173_v20 = vmax.f32 %v4170_v60, 0.0 }
0x13b2   : > { %5532 = vmatprep.subr.msk.mxu0 %vm4191_vm5, %v4173_v20 }
0x13b3   : > { %5533 = vmatpush3.msk.msra.mxu0 %vm4191_vm5, %v4173_v20 }
0x13b4   : > { %5535 = vmatmul.mubr.msk.f32.vlgmr.msra.gmra.mrb[30].mxu0 %vm4184_vm9, %v3909_v21  ;;  %5821 = vmatprep.subr.bf16.mxu0 %v5820_v16  ;;  %vm7874_vm9 = vcmask 89088  }
0x13b5   : > { %5823 = vmatpush3.bf16.msra.mxu0 %v5820_v16  ;;  %vm7875_vm5 = vmmov %vm7874_vm9 }
0x13b6   : > { %5825 = vmatprep.subr.bf16.mxu0 %v5824_v24 }
0x13b9   : > { %5827 = vmatpush3.bf16.msra.mxu0 %v5824_v24 }
0x13ba   : > { %5545 = vmatprep.subr.msk.mxu0 %vm7863_vm3, %v3916_v17  ;;  %vm7876_vm3 = vmmov %vm7867_vm0 }
0x13bd   : > { %5546 = vmatpush3.msk.msra.mxu0 %vm7864_vm2, %v3916_v17  ;;  %vm7885_vm2 = vmmov %vm7867_vm0 }
0x13be   : > { %5855 = vmatprep.subr.bf16.mxu0 %v6389_v3  ;;  %vm7887_vm0 = vmmov %vm7868_vm4 }
0x1487   : > { %v5536_v26 = vpop.f32.mrb[30].mxu0 }
0x1488   : > { %v4261_v27 = vpop.f32.mrb[31].mxu0  ;;  %v4267_v32 = vadd.f32 %v5536_v26, %v4182_v28 }
0x1489   : > { %v4262_v30 = vadd.f32 %v4261_v27, %v4177_v23 }
0x148b   : > { %5547 = vmatprep.mubr.msk.f32.mxu0 %vm4270_vm14, %v4262_v30 }
0x148c   : > { %5548 = vmatmul.mubr.msk.f32.vlgmr.msra.gmra.mrb[32].mxu0 %vm4270_vm14, %v4267_v32  ;;  %vm7886_vm14 = vmmov %vm7868_vm4 }
0x155f   : > { %v7519_v33 = vpop.f32.mrb[32].mxu0 }
0x1560   : > { %v7521_v34 = vpop.f32.mrb[33].mxu0 }
0x1561   : > { %v6174_v35 = vpack.i.bf16 %v7519_v33, %v7521_v34  ;;  %v5841_v36 = vpack.c.bf16 %v7519_v33, %v7521_v34 }
0x1563   : > { %6175 = vrot.lane.b32.xlu1 %v6174_v35, %s7835_s12  ;;  %6170 = vrot.lane.b32.xlu0 %v6174_v35, %s7808_s16 }
0x1567   : > { %6185 = vrot.lane.b32.xlu1 %v6174_v35, %s7739_s5  ;;  %6180 = vrot.lane.b32.xlu0 %v6174_v35, %s7741_s13  ;;  %s7744_s5 = smov 13   ;;  %s7743_s13 = smov 12  }
0x156b   : > { %6195 = vrot.lane.b32.xlu1 %v6174_v35, %s7740_s10  ;;  %6190 = vrot.lane.b32.xlu0 %v6174_v35, %s7742_s0  ;;  %s6447_s10 = smov 125   ;;  %s7746_s0 = smov 124  }
0x156f   : > { %6205 = vrot.lane.b32.xlu1 %v6174_v35, %s7779_s7  ;;  %6200 = vrot.lane.b32.xlu0 %v6174_v35, %s6444_s8 }
0x1573   : > { %6215 = vrot.lane.b32.xlu1 %v6174_v35, %s7745_s14  ;;  %6210 = vrot.lane.b32.xlu0 %v6174_v35, %s7781_s22  ;;  %s7879_s14 = smov 4  }
0x1577   : > { %6225 = vrot.lane.b32.xlu1 %v6174_v35, %s7744_s5  ;;  %6220 = vrot.lane.b32.xlu0 %v6174_v35, %s6447_s10  ;;  %s7878_s5 = smov 115  }
0x157b   : > { %6235 = vrot.lane.b32.xlu1 %v6174_v35, %s7743_s13  ;;  %6230 = vrot.lane.b32.xlu0 %v6174_v35, %s7746_s0  ;;  %s7877_s13 = smov 116   ;;  %s7880_s0 = smov 3  }
0x157f   : > { %6245 = vrot.lane.b32.xlu1 %v6174_v35, %s7802_s18  ;;  %6240 = vrot.lane.b32.xlu0 %v6174_v35, %s7836_s2 }
0x1583   : > { %4486 = vperm.xlu1 %6168, %v4360_v1   ;;  %4481 = vperm.xlu0 %6167, %v4359_v25  }
0x1587   : > { %6250 = vset.pattern.permute.xlu1 %v6406_v7  ;;  %6249 = vset.pattern.permute.xlu0 %v6406_v7 }
0x1588   : > { %4577 = vperm.xlu1 %6250, %v4360_v1   ;;  %4573 = vperm.xlu0 %6249, %v4359_v25  }
0x158c   : > { %6251 = vset.pattern.permute.xlu1 %v6410_v10  ;;  %6252 = vset.pattern.permute.xlu0 %v6410_v10 }
0x158d   : > { %4583 = vperm.xlu1 %6251, %v4359_v25   ;;  %4587 = vperm.xlu0 %6252, %v4360_v1  }
0x1591   : > { %6334 = vset.pattern.permute.xlu1 %v6407_v8  ;;  %6333 = vset.pattern.permute.xlu0 %v6407_v8 }
0x15d5   : > { %v6176_v38 = vpop.permute.xlu1 %6175  ;;  %v6171_v39 = vpop.permute.xlu0 %6170 }
0x15d6   : > { %v6178_v22 = vunpack.i.h.bf16 %v6176_v38  ;;  %v6177_v40 = vunpack.i.l.bf16 %v6176_v38  ;;  %v6173_v41 = vunpack.i.h.bf16 %v6171_v39  ;;  %v6172_v42 = vunpack.i.l.bf16 %v6171_v39 }
0x15d8   : > { %v4376_v43 = vsel %vm7868_vm4, %v6173_v41, %v6178_v22  ;;  %v4375_v44 = vsel %vm7869_vm13, %v6172_v42, %v6177_v40  ;;  %vm7888_vm4 = vmmov %vm7871_vm8 }
0x15d9   : > { %v5829_v45 = vpack.c.bf16 %v4376_v43, %v4375_v44  ;;  %v6186_v47 = vpop.permute.xlu1 %6185  ;;  %v6181_v48 = vpop.permute.xlu0 %6180  ;;  %vm7889_vm13 = vmmov %vm7888_vm4 }
0x15da   : > { %v6188_v49 = vunpack.i.h.bf16 %v6186_v47  ;;  %v6187_v50 = vunpack.i.l.bf16 %v6186_v47  ;;  %v6183_v52 = vunpack.i.h.bf16 %v6181_v48  ;;  %v6182_v6 = vunpack.i.l.bf16 %v6181_v48 }
0x15db   : > { %5830 = vmatpush1.bf16.msra.mxu1 %v5829_v45 }
0x15dc   : > { %v4391_v8 = vsel %vm4389_vm10, %v6183_v52, %v6188_v49  ;;  %v4390_v53 = vsel %vm4389_vm10, %v6182_v6, %v6187_v50  ;;  %5831 = vmatprep.subr.bf16.mxu1 %v6389_v3  ;;  %v4355_v50 = vld [vmem:[%s7865_s3] sm:$0xff]  ;;  %v4358_v52 = vld [vmem:[%s7865_s3 + $0x18] sm:$0xff]  ;;  %v4357_v6 = vld [vmem:[%s7865_s3 + $0x10] sm:$0xff] }
0x15dd   : > { %v5832_v56 = vpack.c.bf16 %v4391_v8, %v4390_v53  ;;  %v6196_v51 = vpop.permute.xlu1 %6195  ;;  %v6191_v59 = vpop.permute.xlu0 %6190 }
0x15de   : > { %v6198_v31 = vunpack.i.h.bf16 %v6196_v51  ;;  %v6197_v57 = vunpack.i.l.bf16 %v6196_v51  ;;  %v6193_v62 = vunpack.i.h.bf16 %v6191_v59  ;;  %v6192_v63 = vunpack.i.l.bf16 %v6191_v59 }
0x15df   : > { %5833 = vmatpush1.bf16.msra.mxu1 %v5832_v56 }
0x15e0   : > { %v4406_v4 = vsel %vm4404_vm7, %v6193_v62, %v6198_v31  ;;  %v4405_v5 = vsel %vm4404_vm7, %v6192_v63, %v6197_v57  ;;  %5834 = vmatprep.subr.bf16.mxu1 %v6389_v3 }
0x15e1   : > { %v5835_v9 = vpack.c.bf16 %v4406_v4, %v4405_v5  ;;  %v6206_v54 = vpop.permute.xlu1 %6205  ;;  %v6201_v55 = vpop.permute.xlu0 %6200 }
0x15e2   : > { %v6208_v58 = vunpack.i.h.bf16 %v6206_v54  ;;  %v6207_v11 = vunpack.i.l.bf16 %v6206_v54  ;;  %v6203_v2 = vunpack.i.h.bf16 %v6201_v55  ;;  %v6202_v12 = vunpack.i.l.bf16 %v6201_v55 }
0x15e3   : > { %5836 = vmatpush1.bf16.msra.mxu1 %v5835_v9  ;;  %v4594_v54 = vsub.s32 3, %v6773_v29 }
0x15e4   : > { %v4420_v13 = vsel %vm7870_vm11, %v6203_v2, %v6208_v58  ;;  %v4419_v0 = vsel %vm7871_vm8, %v6202_v12, %v6207_v11  ;;  %5837 = vmatprep.subr.bf16.mxu1 %v6389_v3  ;;  %v6340_v2 = vld [vmem:[%s6463_s9] sm:$0xff]  ;;  %vm7891_vm11 = vmmov %vm7872_vm1 }
0x15e5   : > { %v5838_v14 = vpack.c.bf16 %v4420_v13, %v4419_v0  ;;  %v6216_v15 = vpop.permute.xlu1 %6215  ;;  %v6211_v46 = vpop.permute.xlu0 %6210  ;;  %v4595_v12 = vrot.slane %v6340_v2, %v4594_v54  ;;  %vm7892_vm8 = vmmov %vm7875_vm5 }
0x15e6   : > { %v6218_v60 = vunpack.i.h.bf16 %v6216_v15  ;;  %v6217_v61 = vunpack.i.l.bf16 %v6216_v15  ;;  %v6213_v18 = vunpack.i.h.bf16 %v6211_v46  ;;  %v6212_v19 = vunpack.i.l.bf16 %v6211_v46 }
0x15e7   : > { %5839 = vmatpush1.bf16.msra.mxu1 %v5838_v14 }
0x15e8   : > { %5840 = vmatprep.subr.bf16.mxu1 %v6389_v3  ;;  %v4435_v20 = vsel %vm4433_vm12, %v6213_v18, %v6218_v60  ;;  %v4434_v16 = vsel %vm4433_vm12, %v6212_v19, %v6217_v61  ;;  %v4599_v61 = vld [vmem:[%s6643_s4 + $0x8] sm:$0xff]  ;;  %v4602_v19 = vld [vmem:[%s6648_s6] sm:$0xff] }
0x15e9   : > { %v6226_v21 = vpop.permute.xlu1 %6225  ;;  %v6221_v24 = vpop.permute.xlu0 %6220  ;;  %v5844_v28 = vpack.c.bf16 %v4435_v20, %v4434_v16  ;;  %5096 = vmatprep.mubr.msk.f32.mxu0 %vm7885_vm2, %v4599_v61  ;;  %v4603_v18 = vld [vmem:[%s6648_s6 + $0x8] sm:$0xff] }
0x15ea   : > { %v6228_v17 = vunpack.i.h.bf16 %v6226_v21  ;;  %v6227_v26 = vunpack.i.l.bf16 %v6226_v21  ;;  %v6223_v23 = vunpack.i.h.bf16 %v6221_v24  ;;  %v6222_v27 = vunpack.i.l.bf16 %v6221_v24 }
0x15eb   : > { %5842 = vmatpush1.bf16.msra.mxu1 %v5841_v36 }
0x15ec   : > { %5843 = vmatprep.subr.bf16.mxu1 %v6389_v3  ;;  %v4450_v30 = vsel %vm4448_vm15, %v6223_v23, %v6228_v17  ;;  %v4449_v32 = vsel %vm4448_vm15, %v6222_v27, %v6227_v26 }
0x15ed   : > { %v6236_v35 = vpop.permute.xlu1 %6235  ;;  %v6231_v37 = vpop.permute.xlu0 %6230  ;;  %v5847_v22 = vpack.c.bf16 %v4450_v30, %v4449_v32 }
0x15ee   : > { %v6238_v1 = vunpack.i.h.bf16 %v6236_v35  ;;  %v6237_v25 = vunpack.i.l.bf16 %v6236_v35  ;;  %v6233_v38 = vunpack.i.h.bf16 %v6231_v37  ;;  %v6232_v39 = vunpack.i.l.bf16 %v6231_v37 }
0x15ef   : > { %5845 = vmatpush1.bf16.msra.mxu1 %v5844_v28 }
0x15f0   : > { %5846 = vmatprep.subr.bf16.mxu1 %v6389_v3  ;;  %v4464_v33 = vsel %vm7872_vm1, %v6233_v38, %v6238_v1  ;;  %v4463_v34 = vsel %vm7873_vm6, %v6232_v39, %v6237_v25 }
0x15f1   : > { %v6246_v36 = vpop.permute.xlu1 %6245  ;;  %v6241_v40 = vpop.permute.xlu0 %6240  ;;  %v5850_v45 = vpack.c.bf16 %v4464_v33, %v4463_v34 }
0x15f2   : > { %v6248_v41 = vunpack.i.h.bf16 %v6246_v36  ;;  %v6247_v42 = vunpack.i.l.bf16 %v6246_v36  ;;  %v6243_v43 = vunpack.i.h.bf16 %v6241_v40  ;;  %v6242_v44 = vunpack.i.l.bf16 %v6241_v40 }
0x15f3   : > { %5848 = vmatpush1.bf16.msra.mxu1 %v5847_v22 }
0x15f4   : > { %5849 = vmatprep.subr.bf16.mxu1 %v6389_v3  ;;  %v4478_v47 = vsel %vm7874_vm9, %v6243_v43, %v6248_v41  ;;  %v4477_v48 = vsel %vm7875_vm5, %v6242_v44, %v6247_v42 }
0x15f5   : > { %v5853_v49 = vpack.c.bf16 %v4478_v47, %v4477_v48 }
0x15f7   : > { %5851 = vmatpush1.bf16.msra.mxu1 %v5850_v45 }
0x15f8   : > { %5852 = vmatprep.subr.bf16.mxu1 %v6389_v3 }
0x15fb   : > { %5854 = vmatpush1.bf16.msra.mxu1 %v5853_v49 }
0x15fe   : > { %4560 = vmatmul.mubr.f32.vlgmr.msra.gmra.mrb[32].mxu1 %v4355_v50 }
0x15ff   : > { %5095 = vmatprep.mubr.msk.f32.mxu1 %vm7876_vm3, %v4358_v52 }
0x1602   : > { %4565 = vmatmul.mubr.f32.gmra.mrb[34].mxu1 %v4357_v6  ;;  %v4487_v8 = vpop.permute.xlu1 %4486  ;;  %v4482_v53 = vpop.permute.xlu0 %4481 }
0x1607   : > { %v4578_v51 = vpop.permute.xlu1 %4577  ;;  %v4574_v57 = vpop.permute.xlu0 %4573 }
0x160c   : > { %v4584_v55 = vpop.permute.xlu1 %4583  ;;  %v4588_v11 = vpop.permute.xlu0 %4587 }
0x16d1   : > { %v4561_v56 = vpop.f32.mrb[32].mxu1 }
0x16d2   : > { %v4562_v59 = vadd.f32 %v4561_v56, %v4482_v53  ;;  %v4563_v31 = vpop.f32.mrb[33].mxu1 }
0x16d4   : > { %v4570_v62 = vmax.f32 %v4562_v59, 0.0 }
0x16d5   : > { %v4566_v63 = vpop.f32.mrb[34].mxu1 }
0x16d6   : > { %v4580_v4 = vmul.f32 %v4574_v57, %v4570_v62  ;;  %v4567_v5 = vadd.f32 %v4566_v63, %v4487_v8  ;;  %v4568_v9 = vpop.f32.mrb[35].mxu1 }
0x16d8   : > { %v4571_v58 = vmax.f32 %v4567_v5, 0.0  ;;  %v4590_v13 = vadd.f32 %v4584_v55, %v4580_v4 }
0x16da   : > { %v4581_v0 = vmul.f32 %v4578_v51, %v4571_v58  ;;  %v7586_v15 = vmul.f32 %v4595_v12, %v4590_v13 }
0x16dc   : > { %v4591_v14 = vadd.f32 %v4588_v11, %v4581_v0 }
0x16de   : > { %v7588_v46 = vmul.f32 %v4595_v12, %v4591_v14 }
0x16e0   : > { %v6263_v60 = vpack.i.bf16 %v7588_v46, %v7586_v15  ;;  %v5868_v29 = vpack.c.bf16 %v7588_v46, %v7586_v15 }
0x16e2   : > { %6264 = vrot.lane.b32.xlu0 %v6263_v60, %s7877_s13  ;;  %6254 = vrot.lane.b32.xlu1 %v6263_v60, %s7808_s16  ;;  %s7881_s16 = smov 124   ;;  %s7882_s13 = smov 15  }
0x16e6   : > { %6274 = vrot.lane.b32.xlu0 %v6263_v60, %s7878_s5  ;;  %6259 = vrot.lane.b32.xlu1 %v6263_v60, %s7835_s12  ;;  %s7883_s12 = smov 13   ;;  %s7884_s5 = smov 12  }
0x16ea   : > { %6284 = vrot.lane.b32.xlu0 %v6263_v60, %s6444_s8  ;;  %6269 = vrot.lane.b32.xlu1 %v6263_v60, %s7879_s14  ;;  %s5102_s8 = sshll.u32 %s7898_s1, 4 }
0x16ee   : > { %6294 = vrot.lane.b32.xlu0 %v6263_v60, %s7781_s22  ;;  %6279 = vrot.lane.b32.xlu1 %v6263_v60, %s7880_s0 }
0x16f2   : > { %6304 = vrot.lane.b32.xlu0 %v6263_v60, %s6447_s10  ;;  %6289 = vrot.lane.b32.xlu1 %v6263_v60, %s7779_s7  ;;  %s1210_s7 = scalar_lea.vmem %s6658_s27, %s5102_s8 }
0x16f6   : > { %6314 = vrot.lane.b32.xlu0 %v6263_v60, %s7881_s16  ;;  %6299 = vrot.lane.b32.xlu1 %v6263_v60, %s7882_s13 }
0x16fa   : > { %6324 = vrot.lane.b32.xlu0 %v6263_v60, %s7836_s2  ;;  %6309 = vrot.lane.b32.xlu1 %v6263_v60, %s7883_s12 }
0x16fe   : > { %6319 = vrot.lane.b32.xlu1 %v6263_v60, %s7884_s5  ;;  %4720 = vperm.xlu0 %6333, %v4602_v19  }
0x1702   : > { %6329 = vrot.lane.b32.xlu1 %v6263_v60, %s7802_s18  ;;  %6336 = vset.pattern.permute.xlu0 %v6406_v7 }
0x1703   : > { %4816 = vperm.xlu0 %6336, %v4603_v18  }
0x1706   : > { %4725 = vperm.xlu1 %6334, %v4603_v18  }
0x1707   : > { %6338 = vset.pattern.permute.xlu0 %v6410_v10 }
0x170a   : > { %6335 = vset.pattern.permute.xlu1 %v6406_v7 }
0x170b   : > { %4812 = vperm.xlu1 %6335, %v4602_v19  }
0x170f   : > { %6337 = vset.pattern.permute.xlu1 %v6410_v10 }
0x1710   : > { %4822 = vperm.xlu1 %6337, %v4602_v19  }
0x1714   : > { %4826 = vperm.xlu1 %6337, %v4603_v18  }
0x1754   : > { %v6265_v20 = vpop.permute.xlu0 %6264  ;;  %v6255_v16 = vpop.permute.xlu1 %6254 }
0x1755   : > { %v6257_v17 = vunpack.i.h.bf16 %v6255_v16  ;;  %v6256_v26 = vunpack.i.l.bf16 %v6255_v16  ;;  %v6267_v37 = vunpack.i.h.bf16 %v6265_v20  ;;  %v6266_v1 = vunpack.i.l.bf16 %v6265_v20 }
0x1758   : > { %v6275_v21 = vpop.permute.xlu0 %6274  ;;  %v6260_v24 = vpop.permute.xlu1 %6259 }
0x1759   : > { %v6262_v23 = vunpack.i.h.bf16 %v6260_v24  ;;  %v6261_v27 = vunpack.i.l.bf16 %v6260_v24  ;;  %v6277_v34 = vunpack.i.h.bf16 %v6275_v21  ;;  %v6276_v36 = vunpack.i.l.bf16 %v6275_v21 }
0x175b   : > { %v4618_v28 = vsel %vm7886_vm14, %v6256_v26, %v6261_v27  ;;  %v4619_v7 = vsel %vm7887_vm0, %v6257_v17, %v6262_v23 }
0x175c   : > { %v5856_v30 = vpack.c.bf16 %v4619_v7, %v4618_v28  ;;  %v6285_v32 = vpop.permute.xlu0 %6284  ;;  %v6270_v35 = vpop.permute.xlu1 %6269  ;;  %v4598_v7 = vld [vmem:[%s6643_s4] sm:$0xff] }
0x175d   : > { %v6272_v10 = vunpack.i.h.bf16 %v6270_v35  ;;  %v6271_v25 = vunpack.i.l.bf16 %v6270_v35  ;;  %v6287_v48 = vunpack.i.h.bf16 %v6285_v32  ;;  %v6286_v49 = vunpack.i.l.bf16 %v6285_v32  ;;  %v4600_v32 = vld [vmem:[%s6643_s4 + $0x10] sm:$0xff]  ;;  %v4831_v35 = vld [vmem:[%s6653_s20] sm:$0xff] }
0x175e   : > { %5857 = vmatpush1.bf16.msra.mxu0 %v5856_v30  ;;  %v4601_v30 = vld [vmem:[%s6643_s4 + $0x18] sm:$0xff] }
0x175f   : > { %v4633_v38 = vsel %vm4389_vm10, %v6267_v37, %v6272_v10  ;;  %v4632_v39 = vsel %vm4389_vm10, %v6266_v1, %v6271_v25  ;;  %5858 = vmatprep.subr.bf16.mxu0 %v6389_v3  ;;  %v4832_v37 = vld [vmem:[%s6653_s20 + $0x8] sm:$0xff] }
0x1760   : > { %v5859_v22 = vpack.c.bf16 %v4633_v38, %v4632_v39  ;;  %v6280_v33 = vpop.permute.xlu1 %6279  ;;  %v6295_v42 = vpop.permute.xlu0 %6294  ;;  %v5882_v1 = vpack.c.bf16 %v4832_v37, %v4831_v35 }
0x1761   : > { %v6282_v40 = vunpack.i.h.bf16 %v6280_v33  ;;  %v6281_v41 = vunpack.i.l.bf16 %v6280_v33  ;;  %v6297_v57 = vunpack.i.h.bf16 %v6295_v42  ;;  %v6296_v62 = vunpack.i.l.bf16 %v6295_v42 }
0x1762   : > { %5860 = vmatpush1.bf16.msra.mxu0 %v5859_v22  ;;  %5883 = vmatprep.subr.bf16.mxu1 %v5882_v1 }
0x1763   : > { %v4647_v43 = vsel %vm4404_vm7, %v6277_v34, %v6282_v40  ;;  %v4646_v44 = vsel %vm4404_vm7, %v6276_v36, %v6281_v41  ;;  %5861 = vmatprep.subr.bf16.mxu0 %v6389_v3  ;;  %vm7890_vm7 = vmmov %vm7872_vm1  ;;  %5885 = vmatpush3.bf16.msra.mxu1 %v5882_v1 }
0x1764   : > { %v5862_v45 = vpack.c.bf16 %v4647_v43, %v4646_v44  ;;  %v6290_v47 = vpop.permute.xlu1 %6289  ;;  %v6305_v53 = vpop.permute.xlu0 %6304  ;;  %vm7895_vm1 = vmmov %vm7885_vm2 }
0x1765   : > { %v6292_v50 = vunpack.i.h.bf16 %v6290_v47  ;;  %v6291_v52 = vunpack.i.l.bf16 %v6290_v47  ;;  %v6307_v58 = vunpack.i.h.bf16 %v6305_v53  ;;  %v6306_v11 = vunpack.i.l.bf16 %v6305_v53  ;;  %vm7896_vm6 = vmmov %vm7895_vm1 }
0x1766   : > { %5863 = vmatpush1.bf16.msra.mxu0 %v5862_v45 }
0x1767   : > { %v4661_v6 = vsel %vm7888_vm4, %v6287_v48, %v6292_v50  ;;  %v4660_v8 = vsel %vm7889_vm13, %v6286_v49, %v6291_v52  ;;  %5864 = vmatprep.subr.bf16.mxu0 %v6389_v3 }
0x1768   : > { %v5865_v56 = vpack.c.bf16 %v4661_v6, %v4660_v8  ;;  %v6300_v51 = vpop.permute.xlu1 %6299  ;;  %v6315_v55 = vpop.permute.xlu0 %6314 }
0x1769   : > { %v6302_v59 = vunpack.i.h.bf16 %v6300_v51  ;;  %v6301_v31 = vunpack.i.l.bf16 %v6300_v51  ;;  %v6317_v61 = vunpack.i.h.bf16 %v6315_v55  ;;  %v6316_v18 = vunpack.i.l.bf16 %v6315_v55 }
0x176a   : > { %5866 = vmatpush1.bf16.msra.mxu0 %v5865_v56 }
0x176b   : > { %5867 = vmatprep.subr.bf16.mxu0 %v6389_v3  ;;  %v4675_v4 = vsel %vm4433_vm12, %v6297_v57, %v6302_v59  ;;  %v4674_v5 = vsel %vm4433_vm12, %v6296_v62, %v6301_v31  ;;  %vm7893_vm12 = vmmov %vm7875_vm5 }
0x176c   : > { %v6310_v63 = vpop.permute.xlu1 %6309  ;;  %v5871_v2 = vpack.c.bf16 %v4675_v4, %v4674_v5  ;;  %v6325_v19 = vpop.permute.xlu0 %6324 }
0x176d   : > { %v6312_v9 = vunpack.i.h.bf16 %v6310_v63  ;;  %v6311_v54 = vunpack.i.l.bf16 %v6310_v63  ;;  %v6327_v24 = vunpack.i.h.bf16 %v6325_v19  ;;  %v6326_v17 = vunpack.i.l.bf16 %v6325_v19 }
0x176e   : > { %5869 = vmatpush1.bf16.msra.mxu0 %v5868_v29 }
0x176f   : > { %5870 = vmatprep.subr.bf16.mxu0 %v6389_v3  ;;  %v4689_v13 = vsel %vm4448_vm15, %v6307_v58, %v6312_v9  ;;  %v4688_v0 = vsel %vm4448_vm15, %v6306_v11, %v6311_v54  ;;  %vm7894_vm15 = vmmov %vm7885_vm2 }
0x1770   : > { %v6320_v12 = vpop.permute.xlu1 %6319  ;;  %v5874_v15 = vpack.c.bf16 %v4689_v13, %v4688_v0 }
0x1771   : > { %v6322_v14 = vunpack.i.h.bf16 %v6320_v12  ;;  %v6321_v60 = vunpack.i.l.bf16 %v6320_v12 }
0x1772   : > { %5872 = vmatpush1.bf16.msra.mxu0 %v5871_v2 }
0x1773   : > { %5873 = vmatprep.subr.bf16.mxu0 %v6389_v3  ;;  %v4703_v29 = vsel %vm7890_vm7, %v6317_v61, %v6322_v14  ;;  %v4702_v20 = vsel %vm7891_vm11, %v6316_v18, %v6321_v60 }
0x1774   : > { %v6330_v46 = vpop.permute.xlu1 %6329  ;;  %v5877_v26 = vpack.c.bf16 %v4703_v29, %v4702_v20 }
0x1775   : > { %v6332_v16 = vunpack.i.h.bf16 %v6330_v46  ;;  %v6331_v21 = vunpack.i.l.bf16 %v6330_v46 }
0x1776   : > { %5875 = vmatpush1.bf16.msra.mxu0 %v5874_v15 }
0x1777   : > { %5876 = vmatprep.subr.bf16.mxu0 %v6389_v3  ;;  %v4717_v23 = vsel %vm7892_vm8, %v6327_v24, %v6332_v16  ;;  %v4716_v27 = vsel %vm7893_vm12, %v6326_v17, %v6331_v21 }
0x1778   : > { %v5880_v28 = vpack.c.bf16 %v4717_v23, %v4716_v27 }
0x177a   : > { %5878 = vmatpush1.bf16.msra.mxu0 %v5877_v26 }
0x177b   : > { %5879 = vmatprep.subr.bf16.mxu0 %v6389_v3 }
0x177d   : > { %v4721_v38 = vpop.permute.xlu0 %4720 }
0x177e   : > { %5881 = vmatpush1.bf16.msra.mxu0 %v5880_v28 }
0x1781   : > { %4799 = vmatmul.mubr.f32.vlgmr.msra.gmra.mrb[34].mxu0 %v4598_v7 }
0x1782   : > { %5097 = vmatprep.mubr.msk.f32.mxu0 %vm7894_vm15, %v4601_v30  ;;  %v4817_v43 = vpop.permute.xlu0 %4816 }
0x1785   : > { %4804 = vmatmul.mubr.f32.gmra.mrb[36].mxu0 %v4600_v32  ;;  %v4726_v10 = vpop.permute.xlu1 %4725 }
0x178a   : > { %v4813_v25 = vpop.permute.xlu1 %4812 }
0x178f   : > { %v4823_v34 = vpop.permute.xlu1 %4822 }
0x1793   : > { %v4827_v48 = vpop.permute.xlu1 %4826 }
0x1854   : > { %v4800_v39 = vpop.f32.mrb[34].mxu0 }
0x1855   : > { %v4801_v22 = vadd.f32 %v4800_v39, %v4721_v38  ;;  %v4802_v3 = vpop.f32.mrb[35].mxu0 }
0x1857   : > { %v4809_v33 = vmax.f32 %v4801_v22, 0.0 }
0x1858   : > { %v4805_v36 = vpop.f32.mrb[36].mxu0 }
0x1859   : > { %v4819_v40 = vmul.f32 %v4813_v25, %v4809_v33  ;;  %v4806_v41 = vadd.f32 %v4805_v36, %v4726_v10  ;;  %v4807_v42 = vpop.f32.mrb[37].mxu0 }
0x185b   : > { %v4829_v44 = vadd.f32 %v4823_v34, %v4819_v40  ;;  %v4810_v45 = vmax.f32 %v4806_v41, 0.0 }
0x185d   : > { %v4820_v47 = vmul.f32 %v4817_v43, %v4810_v45  ;;  %5554 = vmatprep.mubr.msk.f32.mxu1 %vm7895_vm1, %v4829_v44 }
0x185f   : > { %v4830_v49 = vadd.f32 %v4827_v48, %v4820_v47 }
0x1861   : > { %5555 = vmatmul.mubr.msk.f32.vlgmr.msra.gmra.mrb[36].mxu1 %vm7896_vm6, %v4830_v49 }
0x1934   : > { %v5556_v50 = vpop.f32.mrb[36].mxu1 }
0x1935   : > { %4915 = vst.msk [vmem:[%s1210_s7 + $0x8] sm:$0xff] %vm4389_vm10, %v5556_v50  ;;  %v4905_v52 = vpop.f32.mrb[37].mxu1 }
0x1936   : > { %4914 = vst.msk [vmem:[%s1210_s7] sm:$0xff] %vm4389_vm10, %v4905_v52 }
0x1937 PF: > { %s91_s28 = sadd.s32 1, %s6347_s28  }
0x1938   : > { %p88_p4 = scmp.ge.s32.totalorder %s91_s28, 4  }
0x193a   :  { %90 = sbr.rel (!%p88_p4) target bundleno = 82 (0x52), region = 250 }

</bundles_post_ra>
